<compile_context>
chip_gen: v6e
topology: v6e:2x2x1
jax: 0.10.0
libtpu: 0.0.40
codegen_flags: <defaults>
</compile_context>

<pallas_src>
import functools

import jax
import jax.numpy as jnp
from jax.experimental import pallas as pl
from jax.experimental.pallas import tpu as pltpu


# ----------------------------------------------------------------------------
# Fused forward kernel: conv1+ReLU -> conv2+ReLU -> global-avg-pool -> fc
# One grid step == B batch elements (batch folded into the MXU M dimension).
# ----------------------------------------------------------------------------
def _fused_forward_kernel(x_ref, w1_ref, b1_ref, w2_ref, b2_ref, wfc_ref,
                          bfc_ref, o_ref, pad1_ref, pad2_ref,
                          *, B, H, W, KH, KW):
    # x_ref    : (B, H, W, Cin)        input image block (NHWC)
    # w*_ref   : (KH*KW*Cin, Cout)     im2col-flattened conv weights
    # b*_ref   : (1, Cout)
    # wfc_ref  : (C2, NC), bfc_ref: (1, NC)
    # o_ref    : (1, B, NC)            per-step logits block
    # pad*_ref : (B, H+KH-1, W+KW-1, C) zero-halo padded activation scratch
    ph, pw = (KH - 1) // 2, (KW - 1) // 2
    Hp, Wp = H + KH - 1, W + KW - 1

    def conv_relu(x, pad_ref, w2d_ref, b_ref):
        # x: (B, H, W, Cin) value  ->  (B*H*W, Cout) value.
        cin = x.shape[-1]
        # Zero only the halo strips (tiny vs. a full-buffer fill); done every
        # step so correctness does not depend on which core ran step 0.
        if ph > 0:
            pad_ref[:, 0:ph, :, :] = jnp.zeros((B, ph, Wp, cin), jnp.float32)
        if Hp - ph - H > 0:
            pad_ref[:, ph + H:Hp, :, :] = jnp.zeros(
                (B, Hp - ph - H, Wp, cin), jnp.float32)
        if pw > 0:
            pad_ref[:, ph:ph + H, 0:pw, :] = jnp.zeros(
                (B, H, pw, cin), jnp.float32)
        if Wp - pw - W > 0:
            pad_ref[:, ph:ph + H, pw + W:Wp, :] = jnp.zeros(
                (B, H, Wp - pw - W, cin), jnp.float32)
        # Interior (fully overwritten every step).
        pad_ref[:, ph:ph + H, pw:pw + W, :] = x
        # im2col as an in-register value: lane-concat the KH*KW shifted
        # windows (reads only; no scratch writes / reload round-trip).
        taps = [pad_ref[:, kh:kh + H, kw:kw + W, :]
                for kh in range(KH) for kw in range(KW)]
        col = jnp.concatenate(taps, axis=-1)            # (B, H, W, KH*KW*Cin)
        col2d = col.reshape(B * H * W, KH * KW * cin)   # 2-D M-slab for MXU
        y = jnp.dot(col2d, w2d_ref[...], preferred_element_type=jnp.float32)
        y = y + b_ref[...]                              # broadcast (1, Cout)
        return jnp.maximum(y, 0.0)                      # (B*H*W, Cout)

    x = x_ref[...]                                       # (B, H, W, Cin)
    h1 = conv_relu(x, pad1_ref, w1_ref, b1_ref)          # (B*H*W, C1)
    c1 = w1_ref.shape[1]
    h1 = h1.reshape(B, H, W, c1)
    h2 = conv_relu(h1, pad2_ref, w2_ref, b2_ref)         # (B*H*W, C2)
    c2 = w2_ref.shape[1]

    # Global average pool + linear head, one (B, NC) store per grid step.
    pooled = jnp.mean(h2.reshape(B, H * W, c2), axis=1)  # (B, C2)
    logits = jnp.dot(pooled, wfc_ref[...],
                     preferred_element_type=jnp.float32) + bfc_ref[...]
    o_ref[0] = logits.astype(o_ref.dtype)                # (B, NC)


def parametrized_model_forward_impl(x_nchw, params, *, KH=3, KW=3,
                                    grid_steps=None):
    """Accepts PyTorch-style NCHW float32 input, returns (N, num_classes)."""
    N, Cin, H, W = x_nchw.shape
    w1, b1 = params["w1"], params["b1"]        # (KH, KW, Cin, C1), (C1,)
    w2, b2 = params["w2"], params["b2"]        # (KH, KW, C1, C2), (C2,)
    wfc, bfc = params["wfc"], params["bfc"]    # (C2, NC), (NC,)
    C1, C2, NC = w1.shape[-1], w2.shape[-1], wfc.shape[-1]

    # Two fat steps use both TensorCores of a v7x / megacore chip; on the
    # single-TC v5e/v6e the extra step costs only ~0.35 us.
    if grid_steps is None:
        grid_steps = 2 if (N >= 2 and N % 2 == 0) else 1
    assert N % grid_steps == 0, "batch must divide evenly into grid steps"
    B = N // grid_steps

    # Channel-last for the kernel; tiny (8 KiB) transpose, fused by XLA.
    x = jnp.transpose(x_nchw, (0, 2, 3, 1)).astype(jnp.float32)

    # Flatten conv weights to (KH*KW*Cin, Cout); HWIO memory order already
    # matches the (kh, kw, cin) im2col ordering used in the kernel.
    w1_2d = w1.reshape(KH * KW * Cin, C1)
    w2_2d = w2.reshape(KH * KW * C1, C2)
    b1_2d = b1.reshape(1, C1)
    b2_2d = b2.reshape(1, C2)
    bfc_2d = bfc.reshape(1, NC)

    Hp, Wp = H + KH - 1, W + KW - 1
    kernel = functools.partial(_fused_forward_kernel,
                               B=B, H=H, W=W, KH=KH, KW=KW)

    out = pl.pallas_call(
        kernel,
        out_shape=jax.ShapeDtypeStruct((grid_steps, B, NC), jnp.float32),
        grid=(grid_steps,),
        in_specs=[
            pl.BlockSpec((B, H, W, Cin), lambda n: (n, 0, 0, 0)),
            pl.BlockSpec((KH * KW * Cin, C1), lambda n: (0, 0)),
            pl.BlockSpec((1, C1), lambda n: (0, 0)),
            pl.BlockSpec((KH * KW * C1, C2), lambda n: (0, 0)),
            pl.BlockSpec((1, C2), lambda n: (0, 0)),
            pl.BlockSpec((C2, NC), lambda n: (0, 0)),
            pl.BlockSpec((1, NC), lambda n: (0, 0)),
        ],
        out_specs=pl.BlockSpec((1, B, NC), lambda n: (n, 0, 0)),
        scratch_shapes=[
            pltpu.VMEM((B, Hp, Wp, Cin), jnp.float32),   # padded input
            pltpu.VMEM((B, Hp, Wp, C1), jnp.float32),    # padded h1
        ],
        compiler_params=pltpu.CompilerParams(
            dimension_semantics=("parallel",)),
    )(x, w1_2d, b1_2d, w2_2d, b2_2d, wfc, bfc_2d)
    return out.reshape(N, NC)


parametrized_model_forward = jax.jit(
    parametrized_model_forward_impl,
    static_argnames=("KH", "KW", "grid_steps"))


# ----------------------------------------------------------------------------
# Parameter construction (deterministic) and pure-JAX reference
# ----------------------------------------------------------------------------
def init_params(cin=4, c1=8, c2=8, num_classes=10, k=3):
    k0, k1, k2, k3 = jax.random.split(jax.random.PRNGKey(42), 4)
    w1 = jax.random.normal(k0, (k, k, cin, c1), jnp.float32) * (2.0 / (k * k * cin)) ** 0.5
    b1 = jnp.zeros((c1,), jnp.float32)
    w2 = jax.random.normal(k1, (k, k, c1, c2), jnp.float32) * (2.0 / (k * k * c1)) ** 0.5
    b2 = jnp.zeros((c2,), jnp.float32)
    wfc = jax.random.normal(k2, (c2, num_classes), jnp.float32) * (1.0 / c2) ** 0.5
    bfc = jax.random.normal(k3, (num_classes,), jnp.float32) * 0.01
    return dict(w1=w1, b1=b1, w2=w2, b2=b2, wfc=wfc, bfc=bfc)


def reference_forward(x_nchw, params):
    x = jnp.transpose(x_nchw, (0, 2, 3, 1)).astype(jnp.float32)

    def conv(x, w, b):
        y = jax.lax.conv_general_dilated(
            x, w, window_strides=(1, 1), padding="SAME",
            dimension_numbers=("NHWC", "HWIO", "NHWC"))
        return jnp.maximum(y + b, 0.0)

    h = conv(x, params["w1"], params["b1"])
    h = conv(h, params["w2"], params["b2"])
    pooled = jnp.mean(h, axis=(1, 2))
    return pooled @ params["wfc"] + params["bfc"]


if __name__ == "__main__":
    N, C, H, W = 2, 4, 16, 16
    key = jax.random.PRNGKey(0)
    x = jax.random.normal(key, (N, C, H, W), jnp.float32)   # PyTorch-style NCHW

    params = init_params(cin=C)

    out = parametrized_model_forward(x, params)
    out = jax.block_until_ready(out)

    ref = reference_forward(x, params)
    assert out.shape == (N, 10)
    assert jnp.allclose(out, ref, atol=1e-4, rtol=1e-4), "mismatch vs reference"

    print("KERNEL_OK")
</pallas_src>

<mosaic_0001>
module attributes {stable_mosaic.version = 11 : i64} {
  func.func @_fused_forward_kernel(%arg0: i32, %arg1: memref<1x16x16x4xf32, #tpu.memory_space<vmem>>, %arg2: memref<36x8xf32, #tpu.memory_space<vmem>>, %arg3: memref<1x8xf32, #tpu.memory_space<vmem>>, %arg4: memref<72x8xf32, #tpu.memory_space<vmem>>, %arg5: memref<1x8xf32, #tpu.memory_space<vmem>>, %arg6: memref<8x10xf32, #tpu.memory_space<vmem>>, %arg7: memref<1x10xf32, #tpu.memory_space<vmem>>, %arg8: memref<1x1x10xf32, #tpu.memory_space<vmem>>, %arg9: memref<1x18x18x4xf32, #tpu.memory_space<vmem>>, %arg10: memref<1x18x18x8xf32, #tpu.memory_space<vmem>>) attributes {dimension_semantics = [#tpu.dimension_semantics<parallel>], iteration_bounds = array<i64: 2>, scalar_prefetch = 0 : i64, scratch_operands = 2 : i64, tpu.core_type = #tpu.core_type<tc>, window_params = [{transform_indices = @transform_0, window_bounds = array<i64: 1, 16, 16, 4>}, {pipeline_mode = #tpu.pipeline_mode<synchronous>, transform_indices = @transform_1, window_bounds = array<i64: 36, 8>}, {pipeline_mode = #tpu.pipeline_mode<synchronous>, transform_indices = @transform_2, window_bounds = array<i64: 1, 8>}, {pipeline_mode = #tpu.pipeline_mode<synchronous>, transform_indices = @transform_3, window_bounds = array<i64: 72, 8>}, {pipeline_mode = #tpu.pipeline_mode<synchronous>, transform_indices = @transform_4, window_bounds = array<i64: 1, 8>}, {pipeline_mode = #tpu.pipeline_mode<synchronous>, transform_indices = @transform_5, window_bounds = array<i64: 8, 10>}, {pipeline_mode = #tpu.pipeline_mode<synchronous>, transform_indices = @transform_6, window_bounds = array<i64: 1, 10>}, {transform_indices = @transform_7, window_bounds = array<i64: 1, 1, 10>}]} {
    %c0 = arith.constant 0 : index
    %c0_0 = arith.constant 0 : index
    %c0_1 = arith.constant 0 : index
    %c0_2 = arith.constant 0 : index
    %0 = vector.load %arg1[%c0, %c0_0, %c0_1, %c0_2] : memref<1x16x16x4xf32, #tpu.memory_space<vmem>>, vector<1x16x16x4xf32>
    %cst = arith.constant 0.000000e+00 : f32
    %1 = vector.broadcast %cst : f32 to vector<1x1x18x4xf32>
    %c0_3 = arith.constant 0 : index
    %c0_4 = arith.constant 0 : index
    %c0_5 = arith.constant 0 : index
    %c0_6 = arith.constant 0 : index
    %2 = vector.load %arg9[%c0_3, %c0_4, %c0_5, %c0_6] : memref<1x18x18x4xf32, #tpu.memory_space<vmem>>, vector<1x1x18x4xf32>
    tpu.vector_store %arg9[%c0_3, %c0_4, %c0_5, %c0_6], %1 {strides = array<i32>} : memref<1x18x18x4xf32, #tpu.memory_space<vmem>>, vector<1x1x18x4xf32>,
    %cst_7 = arith.constant 0.000000e+00 : f32
    %3 = vector.broadcast %cst_7 : f32 to vector<1x1x18x4xf32>
    %c0_8 = arith.constant 0 : index
    %c17 = arith.constant 17 : index
    %c0_9 = arith.constant 0 : index
    %c0_10 = arith.constant 0 : index
    %4 = vector.load %arg9[%c0_8, %c17, %c0_9, %c0_10] : memref<1x18x18x4xf32, #tpu.memory_space<vmem>>, vector<1x1x18x4xf32>
    tpu.vector_store %arg9[%c0_8, %c17, %c0_9, %c0_10], %3 {strides = array<i32>} : memref<1x18x18x4xf32, #tpu.memory_space<vmem>>, vector<1x1x18x4xf32>,
    %cst_11 = arith.constant 0.000000e+00 : f32
    %5 = vector.broadcast %cst_11 : f32 to vector<1x16x1x4xf32>
    %c0_12 = arith.constant 0 : index
    %c1 = arith.constant 1 : index
    %c0_13 = arith.constant 0 : index
    %c0_14 = arith.constant 0 : index
    %6 = vector.load %arg9[%c0_12, %c1, %c0_13, %c0_14] : memref<1x18x18x4xf32, #tpu.memory_space<vmem>>, vector<1x16x1x4xf32>
    tpu.vector_store %arg9[%c0_12, %c1, %c0_13, %c0_14], %5 {strides = array<i32>} : memref<1x18x18x4xf32, #tpu.memory_space<vmem>>, vector<1x16x1x4xf32>,
    %cst_15 = arith.constant 0.000000e+00 : f32
    %7 = vector.broadcast %cst_15 : f32 to vector<1x16x1x4xf32>
    %c0_16 = arith.constant 0 : index
    %c1_17 = arith.constant 1 : index
    %c17_18 = arith.constant 17 : index
    %c0_19 = arith.constant 0 : index
    %8 = vector.load %arg9[%c0_16, %c1_17, %c17_18, %c0_19] : memref<1x18x18x4xf32, #tpu.memory_space<vmem>>, vector<1x16x1x4xf32>
    tpu.vector_store %arg9[%c0_16, %c1_17, %c17_18, %c0_19], %7 {strides = array<i32>} : memref<1x18x18x4xf32, #tpu.memory_space<vmem>>, vector<1x16x1x4xf32>,
    %c0_20 = arith.constant 0 : index
    %c1_21 = arith.constant 1 : index
    %c1_22 = arith.constant 1 : index
    %c0_23 = arith.constant 0 : index
    %9 = vector.load %arg9[%c0_20, %c1_21, %c1_22, %c0_23] : memref<1x18x18x4xf32, #tpu.memory_space<vmem>>, vector<1x16x16x4xf32>
    tpu.vector_store %arg9[%c0_20, %c1_21, %c1_22, %c0_23], %0 {strides = array<i32>} : memref<1x18x18x4xf32, #tpu.memory_space<vmem>>, vector<1x16x16x4xf32>,
    %c0_24 = arith.constant 0 : index
    %c0_25 = arith.constant 0 : index
    %c0_26 = arith.constant 0 : index
    %c0_27 = arith.constant 0 : index
    %10 = vector.load %arg9[%c0_24, %c0_25, %c0_26, %c0_27] : memref<1x18x18x4xf32, #tpu.memory_space<vmem>>, vector<1x16x16x4xf32>
    %c0_28 = arith.constant 0 : index
    %c0_29 = arith.constant 0 : index
    %c1_30 = arith.constant 1 : index
    %c0_31 = arith.constant 0 : index
    %11 = vector.load %arg9[%c0_28, %c0_29, %c1_30, %c0_31] : memref<1x18x18x4xf32, #tpu.memory_space<vmem>>, vector<1x16x16x4xf32>
    %c0_32 = arith.constant 0 : index
    %c0_33 = arith.constant 0 : index
    %c2 = arith.constant 2 : index
    %c0_34 = arith.constant 0 : index
    %12 = vector.load %arg9[%c0_32, %c0_33, %c2, %c0_34] : memref<1x18x18x4xf32, #tpu.memory_space<vmem>>, vector<1x16x16x4xf32>
    %c0_35 = arith.constant 0 : index
    %c1_36 = arith.constant 1 : index
    %c0_37 = arith.constant 0 : index
    %c0_38 = arith.constant 0 : index
    %13 = vector.load %arg9[%c0_35, %c1_36, %c0_37, %c0_38] : memref<1x18x18x4xf32, #tpu.memory_space<vmem>>, vector<1x16x16x4xf32>
    %c0_39 = arith.constant 0 : index
    %c1_40 = arith.constant 1 : index
    %c1_41 = arith.constant 1 : index
    %c0_42 = arith.constant 0 : index
    %14 = vector.load %arg9[%c0_39, %c1_40, %c1_41, %c0_42] : memref<1x18x18x4xf32, #tpu.memory_space<vmem>>, vector<1x16x16x4xf32>
    %c0_43 = arith.constant 0 : index
    %c1_44 = arith.constant 1 : index
    %c2_45 = arith.constant 2 : index
    %c0_46 = arith.constant 0 : index
    %15 = vector.load %arg9[%c0_43, %c1_44, %c2_45, %c0_46] : memref<1x18x18x4xf32, #tpu.memory_space<vmem>>, vector<1x16x16x4xf32>
    %c0_47 = arith.constant 0 : index
    %c2_48 = arith.constant 2 : index
    %c0_49 = arith.constant 0 : index
    %c0_50 = arith.constant 0 : index
    %16 = vector.load %arg9[%c0_47, %c2_48, %c0_49, %c0_50] : memref<1x18x18x4xf32, #tpu.memory_space<vmem>>, vector<1x16x16x4xf32>
    %c0_51 = arith.constant 0 : index
    %c2_52 = arith.constant 2 : index
    %c1_53 = arith.constant 1 : index
    %c0_54 = arith.constant 0 : index
    %17 = vector.load %arg9[%c0_51, %c2_52, %c1_53, %c0_54] : memref<1x18x18x4xf32, #tpu.memory_space<vmem>>, vector<1x16x16x4xf32>
    %c0_55 = arith.constant 0 : index
    %c2_56 = arith.constant 2 : index
    %c2_57 = arith.constant 2 : index
    %c0_58 = arith.constant 0 : index
    %18 = vector.load %arg9[%c0_55, %c2_56, %c2_57, %c0_58] : memref<1x18x18x4xf32, #tpu.memory_space<vmem>>, vector<1x16x16x4xf32>
    %19 = tpu.concatenate %10, %11, %12, %13, %14, %15, %16, %17, %18 in 3 : vector<1x16x16x4xf32>, vector<1x16x16x4xf32>, vector<1x16x16x4xf32>, vector<1x16x16x4xf32>, vector<1x16x16x4xf32>, vector<1x16x16x4xf32>, vector<1x16x16x4xf32>, vector<1x16x16x4xf32>, vector<1x16x16x4xf32> -> vector<1x16x16x36xf32>
    %20 = vector.shape_cast %19 : vector<1x16x16x36xf32> to vector<256x36xf32>
    %c0_59 = arith.constant 0 : index
    %c0_60 = arith.constant 0 : index
    %21 = vector.load %arg2[%c0_59, %c0_60] : memref<36x8xf32, #tpu.memory_space<vmem>>, vector<36x8xf32>
    %cst_61 = arith.constant dense<0.000000e+00> : vector<256x8xf32>
    %22 = tpu.matmul %20, %21, %cst_61 {dimension_numbers = #tpu.dot_dimension_numbers<[1], [0], [0], [1], [0, 0, 1, 1], [], []>} : vector<256x36xf32>, vector<36x8xf32>, vector<256x8xf32> -> vector<256x8xf32>
    %c0_62 = arith.constant 0 : index
    %c0_63 = arith.constant 0 : index
    %23 = vector.load %arg3[%c0_62, %c0_63] : memref<1x8xf32, #tpu.memory_space<vmem>>, vector<1x8xf32>
    %24 = vector.broadcast %23 : vector<1x8xf32> to vector<256x8xf32>
    %25 = arith.addf %22, %24 : vector<256x8xf32>
    %cst_64 = arith.constant 0.000000e+00 : f32
    %26 = vector.broadcast %cst_64 : f32 to vector<256x8xf32>
    %27 = arith.maximumf %25, %26 : vector<256x8xf32>
    %28 = vector.shape_cast %27 : vector<256x8xf32> to vector<1x16x16x8xf32>
    %cst_65 = arith.constant 0.000000e+00 : f32
    %29 = vector.broadcast %cst_65 : f32 to vector<1x1x18x8xf32>
    %c0_66 = arith.constant 0 : index
    %c0_67 = arith.constant 0 : index
    %c0_68 = arith.constant 0 : index
    %c0_69 = arith.constant 0 : index
    %30 = vector.load %arg10[%c0_66, %c0_67, %c0_68, %c0_69] : memref<1x18x18x8xf32, #tpu.memory_space<vmem>>, vector<1x1x18x8xf32>
    tpu.vector_store %arg10[%c0_66, %c0_67, %c0_68, %c0_69], %29 {strides = array<i32>} : memref<1x18x18x8xf32, #tpu.memory_space<vmem>>, vector<1x1x18x8xf32>,
    %cst_70 = arith.constant 0.000000e+00 : f32
    %31 = vector.broadcast %cst_70 : f32 to vector<1x1x18x8xf32>
    %c0_71 = arith.constant 0 : index
    %c17_72 = arith.constant 17 : index
    %c0_73 = arith.constant 0 : index
    %c0_74 = arith.constant 0 : index
    %32 = vector.load %arg10[%c0_71, %c17_72, %c0_73, %c0_74] : memref<1x18x18x8xf32, #tpu.memory_space<vmem>>, vector<1x1x18x8xf32>
    tpu.vector_store %arg10[%c0_71, %c17_72, %c0_73, %c0_74], %31 {strides = array<i32>} : memref<1x18x18x8xf32, #tpu.memory_space<vmem>>, vector<1x1x18x8xf32>,
    %cst_75 = arith.constant 0.000000e+00 : f32
    %33 = vector.broadcast %cst_75 : f32 to vector<1x16x1x8xf32>
    %c0_76 = arith.constant 0 : index
    %c1_77 = arith.constant 1 : index
    %c0_78 = arith.constant 0 : index
    %c0_79 = arith.constant 0 : index
    %34 = vector.load %arg10[%c0_76, %c1_77, %c0_78, %c0_79] : memref<1x18x18x8xf32, #tpu.memory_space<vmem>>, vector<1x16x1x8xf32>
    tpu.vector_store %arg10[%c0_76, %c1_77, %c0_78, %c0_79], %33 {strides = array<i32>} : memref<1x18x18x8xf32, #tpu.memory_space<vmem>>, vector<1x16x1x8xf32>,
    %cst_80 = arith.constant 0.000000e+00 : f32
    %35 = vector.broadcast %cst_80 : f32 to vector<1x16x1x8xf32>
    %c0_81 = arith.constant 0 : index
    %c1_82 = arith.constant 1 : index
    %c17_83 = arith.constant 17 : index
    %c0_84 = arith.constant 0 : index
    %36 = vector.load %arg10[%c0_81, %c1_82, %c17_83, %c0_84] : memref<1x18x18x8xf32, #tpu.memory_space<vmem>>, vector<1x16x1x8xf32>
    tpu.vector_store %arg10[%c0_81, %c1_82, %c17_83, %c0_84], %35 {strides = array<i32>} : memref<1x18x18x8xf32, #tpu.memory_space<vmem>>, vector<1x16x1x8xf32>,
    %c0_85 = arith.constant 0 : index
    %c1_86 = arith.constant 1 : index
    %c1_87 = arith.constant 1 : index
    %c0_88 = arith.constant 0 : index
    %37 = vector.load %arg10[%c0_85, %c1_86, %c1_87, %c0_88] : memref<1x18x18x8xf32, #tpu.memory_space<vmem>>, vector<1x16x16x8xf32>
    tpu.vector_store %arg10[%c0_85, %c1_86, %c1_87, %c0_88], %28 {strides = array<i32>} : memref<1x18x18x8xf32, #tpu.memory_space<vmem>>, vector<1x16x16x8xf32>,
    %c0_89 = arith.constant 0 : index
    %c0_90 = arith.constant 0 : index
    %c0_91 = arith.constant 0 : index
    %c0_92 = arith.constant 0 : index
    %38 = vector.load %arg10[%c0_89, %c0_90, %c0_91, %c0_92] : memref<1x18x18x8xf32, #tpu.memory_space<vmem>>, vector<1x16x16x8xf32>
    %c0_93 = arith.constant 0 : index
    %c0_94 = arith.constant 0 : index
    %c1_95 = arith.constant 1 : index
    %c0_96 = arith.constant 0 : index
    %39 = vector.load %arg10[%c0_93, %c0_94, %c1_95, %c0_96] : memref<1x18x18x8xf32, #tpu.memory_space<vmem>>, vector<1x16x16x8xf32>
    %c0_97 = arith.constant 0 : index
    %c0_98 = arith.constant 0 : index
    %c2_99 = arith.constant 2 : index
    %c0_100 = arith.constant 0 : index
    %40 = vector.load %arg10[%c0_97, %c0_98, %c2_99, %c0_100] : memref<1x18x18x8xf32, #tpu.memory_space<vmem>>, vector<1x16x16x8xf32>
    %c0_101 = arith.constant 0 : index
    %c1_102 = arith.constant 1 : index
    %c0_103 = arith.constant 0 : index
    %c0_104 = arith.constant 0 : index
    %41 = vector.load %arg10[%c0_101, %c1_102, %c0_103, %c0_104] : memref<1x18x18x8xf32, #tpu.memory_space<vmem>>, vector<1x16x16x8xf32>
    %c0_105 = arith.constant 0 : index
    %c1_106 = arith.constant 1 : index
    %c1_107 = arith.constant 1 : index
    %c0_108 = arith.constant 0 : index
    %42 = vector.load %arg10[%c0_105, %c1_106, %c1_107, %c0_108] : memref<1x18x18x8xf32, #tpu.memory_space<vmem>>, vector<1x16x16x8xf32>
    %c0_109 = arith.constant 0 : index
    %c1_110 = arith.constant 1 : index
    %c2_111 = arith.constant 2 : index
    %c0_112 = arith.constant 0 : index
    %43 = vector.load %arg10[%c0_109, %c1_110, %c2_111, %c0_112] : memref<1x18x18x8xf32, #tpu.memory_space<vmem>>, vector<1x16x16x8xf32>
    %c0_113 = arith.constant 0 : index
    %c2_114 = arith.constant 2 : index
    %c0_115 = arith.constant 0 : index
    %c0_116 = arith.constant 0 : index
    %44 = vector.load %arg10[%c0_113, %c2_114, %c0_115, %c0_116] : memref<1x18x18x8xf32, #tpu.memory_space<vmem>>, vector<1x16x16x8xf32>
    %c0_117 = arith.constant 0 : index
    %c2_118 = arith.constant 2 : index
    %c1_119 = arith.constant 1 : index
    %c0_120 = arith.constant 0 : index
    %45 = vector.load %arg10[%c0_117, %c2_118, %c1_119, %c0_120] : memref<1x18x18x8xf32, #tpu.memory_space<vmem>>, vector<1x16x16x8xf32>
    %c0_121 = arith.constant 0 : index
    %c2_122 = arith.constant 2 : index
    %c2_123 = arith.constant 2 : index
    %c0_124 = arith.constant 0 : index
    %46 = vector.load %arg10[%c0_121, %c2_122, %c2_123, %c0_124] : memref<1x18x18x8xf32, #tpu.memory_space<vmem>>, vector<1x16x16x8xf32>
    %47 = tpu.concatenate %38, %39, %40, %41, %42, %43, %44, %45, %46 in 3 : vector<1x16x16x8xf32>, vector<1x16x16x8xf32>, vector<1x16x16x8xf32>, vector<1x16x16x8xf32>, vector<1x16x16x8xf32>, vector<1x16x16x8xf32>, vector<1x16x16x8xf32>, vector<1x16x16x8xf32>, vector<1x16x16x8xf32> -> vector<1x16x16x72xf32>
    %48 = vector.shape_cast %47 : vector<1x16x16x72xf32> to vector<256x72xf32>
    %c0_125 = arith.constant 0 : index
    %c0_126 = arith.constant 0 : index
    %49 = vector.load %arg4[%c0_125, %c0_126] : memref<72x8xf32, #tpu.memory_space<vmem>>, vector<72x8xf32>
    %cst_127 = arith.constant dense<0.000000e+00> : vector<256x8xf32>
    %50 = tpu.matmul %48, %49, %cst_127 {dimension_numbers = #tpu.dot_dimension_numbers<[1], [0], [0], [1], [0, 0, 1, 1], [], []>} : vector<256x72xf32>, vector<72x8xf32>, vector<256x8xf32> -> vector<256x8xf32>
    %c0_128 = arith.constant 0 : index
    %c0_129 = arith.constant 0 : index
    %51 = vector.load %arg5[%c0_128, %c0_129] : memref<1x8xf32, #tpu.memory_space<vmem>>, vector<1x8xf32>
    %52 = vector.broadcast %51 : vector<1x8xf32> to vector<256x8xf32>
    %53 = arith.addf %50, %52 : vector<256x8xf32>
    %cst_130 = arith.constant 0.000000e+00 : f32
    %54 = vector.broadcast %cst_130 : f32 to vector<256x8xf32>
    %55 = arith.maximumf %53, %54 : vector<256x8xf32>
    %56 = vector.shape_cast %55 : vector<256x8xf32> to vector<1x256x8xf32>
    %cst_131 = arith.constant dense<0.000000e+00> : vector<1x8xf32>
    %57 = vector.multi_reduction <add>, %56, %cst_131 [1] : vector<1x256x8xf32> to vector<1x8xf32>
    %cst_132 = arith.constant 2.560000e+02 : f32
    %58 = vector.broadcast %cst_132 : f32 to vector<1x8xf32>
    %59 = arith.divf %57, %58 : vector<1x8xf32>
    %c0_133 = arith.constant 0 : index
    %c0_134 = arith.constant 0 : index
    %60 = vector.load %arg6[%c0_133, %c0_134] : memref<8x10xf32, #tpu.memory_space<vmem>>, vector<8x10xf32>
    %cst_135 = arith.constant dense<0.000000e+00> : vector<1x10xf32>
    %61 = tpu.matmul %59, %60, %cst_135 {dimension_numbers = #tpu.dot_dimension_numbers<[1], [0], [0], [1], [0, 0, 1, 1], [], []>} : vector<1x8xf32>, vector<8x10xf32>, vector<1x10xf32> -> vector<1x10xf32>
    %c0_136 = arith.constant 0 : index
    %c0_137 = arith.constant 0 : index
    %62 = vector.load %arg7[%c0_136, %c0_137] : memref<1x10xf32, #tpu.memory_space<vmem>>, vector<1x10xf32>
    %63 = arith.addf %61, %62 : vector<1x10xf32>
    %c0_138 = arith.constant 0 : index
    %c0_139 = arith.constant 0 : index
    %c0_140 = arith.constant 0 : index
    %64 = vector.load %arg8[%c0_138, %c0_139, %c0_140] : memref<1x1x10xf32, #tpu.memory_space<vmem>>, vector<1x1x10xf32>
    %65 = vector.shape_cast %64 : vector<1x1x10xf32> to vector<1x10xf32>
    %66 = vector.shape_cast %63 : vector<1x10xf32> to vector<1x1x10xf32>
    tpu.vector_store %arg8[%c0_138, %c0_139, %c0_140], %66 {strides = array<i32>} : memref<1x1x10xf32, #tpu.memory_space<vmem>>, vector<1x1x10xf32>,
    return
  }
  func.func @transform_0(%arg0: i32) -> (i32, i32, i32, i32) {
    %c0_i32 = arith.constant 0 : i32
    %c0_i32_0 = arith.constant 0 : i32
    %c0_i32_1 = arith.constant 0 : i32
    %c0_i32_2 = arith.constant 0 : i32
    return %arg0, %c0_i32, %c0_i32_0, %c0_i32_1 : i32, i32, i32, i32
  }
  func.func @transform_1(%arg0: i32) -> (i32, i32) {
    %c0_i32 = arith.constant 0 : i32
    %c0_i32_0 = arith.constant 0 : i32
    %c0_i32_1 = arith.constant 0 : i32
    return %c0_i32, %c0_i32_0 : i32, i32
  }
  func.func @transform_2(%arg0: i32) -> (i32, i32) {
    %c0_i32 = arith.constant 0 : i32
    %c0_i32_0 = arith.constant 0 : i32
    %c0_i32_1 = arith.constant 0 : i32
    return %c0_i32, %c0_i32_0 : i32, i32
  }
  func.func @transform_3(%arg0: i32) -> (i32, i32) {
    %c0_i32 = arith.constant 0 : i32
    %c0_i32_0 = arith.constant 0 : i32
    %c0_i32_1 = arith.constant 0 : i32
    return %c0_i32, %c0_i32_0 : i32, i32
  }
  func.func @transform_4(%arg0: i32) -> (i32, i32) {
    %c0_i32 = arith.constant 0 : i32
    %c0_i32_0 = arith.constant 0 : i32
    %c0_i32_1 = arith.constant 0 : i32
    return %c0_i32, %c0_i32_0 : i32, i32
  }
  func.func @transform_5(%arg0: i32) -> (i32, i32) {
    %c0_i32 = arith.constant 0 : i32
    %c0_i32_0 = arith.constant 0 : i32
    %c0_i32_1 = arith.constant 0 : i32
    return %c0_i32, %c0_i32_0 : i32, i32
  }
  func.func @transform_6(%arg0: i32) -> (i32, i32) {
    %c0_i32 = arith.constant 0 : i32
    %c0_i32_0 = arith.constant 0 : i32
    %c0_i32_1 = arith.constant 0 : i32
    return %c0_i32, %c0_i32_0 : i32, i32
  }
  func.func @transform_7(%arg0: i32) -> (i32, i32, i32) {
    %c0_i32 = arith.constant 0 : i32
    %c0_i32_0 = arith.constant 0 : i32
    %c0_i32_1 = arith.constant 0 : i32
    return %arg0, %c0_i32, %c0_i32_0 : i32, i32, i32
  }
}

</mosaic_0001>

<bundles_post_ra>
// kernel: parametrized_model_forward_impl.1
= control target key start
LH: loop header
LB: loop body
LE: loop exit
PB: predicated region body
PF: predicated region fallthrough
CT: control target
= control target key end

     0   :  { %12 = vsyncpa [#allocation5], 0  ;;  %s7573_s0 = inlined_call_operand.vmem [shape: f32[2,16,16,4], index: 0, kind: input, shape index: {}]   ;;  %s7574_s1 = inlined_call_operand.vmem [shape: f32[36,8], index: 1, kind: input, shape index: {}]   ;;  %s7575_s2 = inlined_call_operand.vmem [shape: f32[1,8], index: 2, kind: input, shape index: {}]   ;;  %s7576_s3 = inlined_call_operand.vmem [shape: f32[72,8], index: 3, kind: input, shape index: {}]   ;;  %s7577_s4 = inlined_call_operand.vmem [shape: f32[1,8], index: 4, kind: input, shape index: {}]   ;;  %s7578_s5 = inlined_call_operand.vmem [shape: f32[8,10], index: 5, kind: input, shape index: {}]   ;;  %s7579_s6 = inlined_call_operand.vmem [shape: f32[1,10], index: 6, kind: input, shape index: {}]   ;;  %s7580_s7 = inlined_call_operand.hbm [shape: f32[2,1,10], index: 7, kind: output, shape index: {}]  }
   0x1   :  { %14 = vsyncpa [#allocation5 + $0x1], 0  ;;  %s5040_s24 = smov 0   ;;  %s5042_s25 = smov 0  }
   0x2   :  { %s5044_s26 = smov 0   ;;  %s5046_s27 = smov 0  }
   0x3 LB: > { %s5061_s28 = sadd.s32 4294967295, %s4983_s27   ;;  %s4562_s29 = sadd.s32 4294967294, %s4983_s27   ;;  %s4983_s27 = sphi %s5046_s27, %s7741_s27   ;;  %s4979_s26 = sphi %s5044_s26, %s7740_s26   ;;  %s4975_s25 = sphi %s5042_s25, %s7739_s25   ;;  %s4971_s24 = sphi %s5040_s24, %s7738_s24  }
   0x4   : > { %s5065_s30 = sadd.s32 1, %s4983_s27   ;;  %s179_s8 = sadd.s32 1, %s4979_s26 }
   0x5   : > { %s176_s9 = ssub.s32 %s4983_s27, %s5065_s30  ;;  %p189_p0 = scmp.ne.s32.totalorder %s4979_s26, %s4975_s25 }
   0x6   : > { %p177_p1 = scmp.eq.s32.totalorder %s176_s9, 0  ;;  %p190_p2 = scmp.eq.s32.totalorder %s5061_s28, 1 }
   0x7   : > { %p195_p3 = scmp.ne.s32.totalorder %s4975_s25, %s4971_s24  ;;  %p196_p4 = scmp.eq.s32.totalorder %s4562_s29, 1 }
   0x8   : > { %s5076_s10 = scalar_select %p177_p1, %s4979_s26, %s179_s8  }
   0x9   : > { %p5078_p5 = por %p190_p2, %p189_p0  ;;  %p5082_p6 = por %p196_p4, %p195_p3 }
   0xa   : > { %p4565_p7 = scmp.ge.s32.totalorder %s4983_s27, 1  ;;  %p240_p8 = scmp.lt.s32.totalorder %s4983_s27, 3 }
   0xc   : > { %p241_p9 = pnand %p4565_p7, %p240_p8 }
   0xe   : > { %244 = sbr.rel (%p241_p9) target bundleno = 1642 (0x66a), region = 48 }
  0x13   : > { %vm308_vm0 = vcmask 31744   ;;  %vm311_vm1 = vcmask 25600   ;;  %p271_p10 = scmp.lt.s32.totalorder %s5061_s28, 1  ;;  %vm318_vm2 = vcmask 24576   ;;  %v7581_v0 = vmov 0.0   ;;  %s4986_s18 = smov 4  }
  0x14   : > { %309 = vst.msk [vmem:[#allocation2] sm:$0xff] %vm308_vm0, %v7581_v0  ;;  %310 = vst.msk [vmem:[#allocation2 + $0x8] sm:$0xff] %vm308_vm0, %v7581_v0  ;;  %vm1728_vm3 = vcmask 64512   ;;  %s4987_s19 = smov 8   ;;  %s4988_s20 = smov 12   ;;  %vm2068_vm4 = vcmask 1043456  }
  0x15   : > { %314 = vst.msk [vmem:[#allocation2 + $0x198] sm:$0xff] %vm308_vm0, %v7581_v0  ;;  %315 = vst.msk [vmem:[#allocation2 + $0x1a0] sm:$0xff] %vm308_vm0, %v7581_v0  ;;  %s272_s13 = scalar_select %p271_p10, %s5061_s28, 1  ;;  %vm1761_vm5 = vcmask 97280   ;;  %vm1794_vm6 = vcmask 130048   ;;  %vm1827_vm7 = vcmask 162816  }
  0x16   : > { %312 = vst.msk [vmem:[#allocation2 + $0x10] sm:$0x3] %vm311_vm1, %v7581_v0  ;;  %316 = vst.msk [vmem:[#allocation2 + $0x1a8] sm:$0x3] %vm311_vm1, %v7581_v0  ;;  %s4989_s21 = smov 16   ;;  %s4992_s22 = smov 28  }
  0x17   : > { %335 = vst.msk [vmem:[#allocation2 + $0x29] sm:$0x1] %vm318_vm2, %v7581_v0  ;;  %319 = vst.msk [vmem:[#allocation2 + $0x18] sm:$0x1] %vm318_vm2, %v7581_v0  ;;  %s4639_s14 = sshll.u32 %s272_s13, 8  ;;  %s4993_s23 = smov 32  }
  0x18   : > { %320 = vst.msk [vmem:[#allocation2 + $0x30] sm:$0x1] %vm318_vm2, %v7581_v0  ;;  %321 = vst.msk [vmem:[#allocation2 + $0x48] sm:$0x1] %vm318_vm2, %v7581_v0  ;;  %s5169_s17 = scalar_lea.vmem %s7573_s0, %s4639_s14  ;;  %s4990_s14 = smov 20   ;;  %vm1860_vm8 = vcmask 195584  }
  0x19   : > { %322 = vst.msk [vmem:[#allocation2 + $0x60] sm:$0x1] %vm318_vm2, %v7581_v0  ;;  %323 = vst.msk [vmem:[#allocation2 + $0x78] sm:$0x1] %vm318_vm2, %v7581_v0  ;;  %v276_v1 = vld [vmem:[%s5169_s17] sm:$0xff]  ;;  %v278_v2 = vld [vmem:[%s5169_s17 + $0x10] sm:$0xff] }
  0x1a   : > { %324 = vst.msk [vmem:[#allocation2 + $0x90] sm:$0x1] %vm318_vm2, %v7581_v0  ;;  %325 = vst.msk [vmem:[#allocation2 + $0xa8] sm:$0x1] %vm318_vm2, %v7581_v0  ;;  %v277_v3 = vld [vmem:[%s5169_s17 + $0x8] sm:$0xff]  ;;  %v280_v4 = vld [vmem:[%s5169_s17 + $0x20] sm:$0xff] }
  0x1b   : > { %326 = vst.msk [vmem:[#allocation2 + $0xc0] sm:$0x1] %vm318_vm2, %v7581_v0  ;;  %327 = vst.msk [vmem:[#allocation2 + $0xd8] sm:$0x1] %vm318_vm2, %v7581_v0  ;;  %v279_v5 = vld [vmem:[%s5169_s17 + $0x18] sm:$0xff]  ;;  %v282_v6 = vld [vmem:[%s5169_s17 + $0x30] sm:$0xff] }
  0x1c   : > { %328 = vst.msk [vmem:[#allocation2 + $0xf0] sm:$0x1] %vm318_vm2, %v7581_v0  ;;  %329 = vst.msk [vmem:[#allocation2 + $0x108] sm:$0x1] %vm318_vm2, %v7581_v0  ;;  %v415_v7 = vld [vmem:[#allocation2 + $0x1] sm:$0xff]  ;;  %v283_v11 = vld [vmem:[%s5169_s17 + $0x38] sm:$0xff] }
  0x1d   : > { %330 = vst.msk [vmem:[#allocation2 + $0x120] sm:$0x1] %vm318_vm2, %v7581_v0  ;;  %331 = vst.msk [vmem:[#allocation2 + $0x138] sm:$0x1] %vm318_vm2, %v7581_v0  ;;  %v416_v8 = vld [vmem:[#allocation2 + $0x9] sm:$0xff]  ;;  %704 = vrot.lane.b32.xlu0 %v415_v7, %s4986_s18  ;;  %v284_v10 = vld [vmem:[%s5169_s17 + $0x40] sm:$0xff] }
  0x1e   : > { %332 = vst.msk [vmem:[#allocation2 + $0x150] sm:$0x1] %vm318_vm2, %v7581_v0  ;;  %333 = vst.msk [vmem:[#allocation2 + $0x168] sm:$0x1] %vm318_vm2, %v7581_v0  ;;  %v281_v9 = vld [vmem:[%s5169_s17 + $0x28] sm:$0xff]  ;;  %v286_v12 = vld [vmem:[%s5169_s17 + $0x50] sm:$0xff] }
  0x1f   : > { %334 = vst.msk [vmem:[#allocation2 + $0x180] sm:$0x1] %vm318_vm2, %v7581_v0  ;;  %336 = vst.msk [vmem:[#allocation2 + $0x41] sm:$0x1] %vm318_vm2, %v7581_v0  ;;  %v285_v13 = vld [vmem:[%s5169_s17 + $0x48] sm:$0xff]  ;;  %v288_v14 = vld [vmem:[%s5169_s17 + $0x60] sm:$0xff] }
  0x20   : > { %337 = vst.msk [vmem:[#allocation2 + $0x59] sm:$0x1] %vm318_vm2, %v7581_v0  ;;  %338 = vst.msk [vmem:[#allocation2 + $0x71] sm:$0x1] %vm318_vm2, %v7581_v0  ;;  %v287_v15 = vld [vmem:[%s5169_s17 + $0x58] sm:$0xff]  ;;  %v290_v16 = vld [vmem:[%s5169_s17 + $0x70] sm:$0xff] }
  0x21   : > { %339 = vst.msk [vmem:[#allocation2 + $0x89] sm:$0x1] %vm318_vm2, %v7581_v0  ;;  %340 = vst.msk [vmem:[#allocation2 + $0xa1] sm:$0x1] %vm318_vm2, %v7581_v0  ;;  %v289_v17 = vld [vmem:[%s5169_s17 + $0x68] sm:$0xff]  ;;  %v292_v18 = vld [vmem:[%s5169_s17 + $0x80] sm:$0xff]  ;;  %706 = vrot.lane.b32.xlu0 %v416_v8, %s4986_s18 }
  0x22   : > { %341 = vst.msk [vmem:[#allocation2 + $0xb9] sm:$0x1] %vm318_vm2, %v7581_v0  ;;  %342 = vst.msk [vmem:[#allocation2 + $0xd1] sm:$0x1] %vm318_vm2, %v7581_v0  ;;  %v291_v19 = vld [vmem:[%s5169_s17 + $0x78] sm:$0xff]  ;;  %v294_v20 = vld [vmem:[%s5169_s17 + $0x90] sm:$0xff] }
  0x23   : > { %343 = vst.msk [vmem:[#allocation2 + $0xe9] sm:$0x1] %vm318_vm2, %v7581_v0  ;;  %344 = vst.msk [vmem:[#allocation2 + $0x101] sm:$0x1] %vm318_vm2, %v7581_v0  ;;  %v293_v21 = vld [vmem:[%s5169_s17 + $0x88] sm:$0xff]  ;;  %v296_v22 = vld [vmem:[%s5169_s17 + $0xa0] sm:$0xff] }
  0x24   : > { %345 = vst.msk [vmem:[#allocation2 + $0x119] sm:$0x1] %vm318_vm2, %v7581_v0  ;;  %346 = vst.msk [vmem:[#allocation2 + $0x131] sm:$0x1] %vm318_vm2, %v7581_v0  ;;  %v295_v23 = vld [vmem:[%s5169_s17 + $0x98] sm:$0xff]  ;;  %v298_v24 = vld [vmem:[%s5169_s17 + $0xb0] sm:$0xff] }
  0x25   : > { %347 = vst.msk [vmem:[#allocation2 + $0x149] sm:$0x1] %vm318_vm2, %v7581_v0  ;;  %348 = vst.msk [vmem:[#allocation2 + $0x161] sm:$0x1] %vm318_vm2, %v7581_v0  ;;  %v297_v28 = vld [vmem:[%s5169_s17 + $0xa8] sm:$0xff]  ;;  %v300_v29 = vld [vmem:[%s5169_s17 + $0xc0] sm:$0xff] }
  0x26   : > { %349 = vst.msk [vmem:[#allocation2 + $0x179] sm:$0x1] %vm318_vm2, %v7581_v0  ;;  %350 = vst.msk [vmem:[#allocation2 + $0x191] sm:$0x1] %vm318_vm2, %v7581_v0  ;;  %v299_v33 = vld [vmem:[%s5169_s17 + $0xb8] sm:$0xff]  ;;  %v302_v34 = vld [vmem:[%s5169_s17 + $0xd0] sm:$0xff] }
  0x27   : > { %351 = vst.msk [vmem:[#allocation2 + $0x19] sm:$0xff] %vm308_vm0, %v276_v1  ;;  %353 = vst.msk [vmem:[#allocation2 + $0x31] sm:$0xff] %vm308_vm0, %v278_v2  ;;  %v301_v35 = vld [vmem:[%s5169_s17 + $0xc8] sm:$0xff]  ;;  %v304_v36 = vld [vmem:[%s5169_s17 + $0xe0] sm:$0xff]  ;;  %vm1926_vm9 = vcmask 261120   ;;  %vm1893_vm10 = vcmask 228352  }
  0x28   : > { %352 = vst.msk [vmem:[#allocation2 + $0x21] sm:$0xff] %vm308_vm0, %v277_v3  ;;  %355 = vst.msk [vmem:[#allocation2 + $0x49] sm:$0xff] %vm308_vm0, %v280_v4  ;;  %v303_v37 = vld [vmem:[%s5169_s17 + $0xd8] sm:$0xff]  ;;  %v305_v39 = vld [vmem:[%s5169_s17 + $0xe8] sm:$0xff]  ;;  %vm1971_vm11 = vcmask 293888   ;;  %vm2331_vm12 = vcmask 58368  }
  0x29   : > { %354 = vst.msk [vmem:[#allocation2 + $0x39] sm:$0xff] %vm308_vm0, %v279_v5  ;;  %357 = vst.msk [vmem:[#allocation2 + $0x61] sm:$0xff] %vm308_vm0, %v282_v6  ;;  %v306_v58 = vld [vmem:[%s5169_s17 + $0xf0] sm:$0xff]  ;;  %v307_v62 = vld [vmem:[%s5169_s17 + $0xf8] sm:$0xff]  ;;  %vm2338_vm13 = vcmask 57344   ;;  %s4994_s9 = smov 40  }
  0x2a   : > { %356 = vst.msk [vmem:[#allocation2 + $0x51] sm:$0xff] %vm308_vm0, %v281_v9  ;;  %359 = vst.msk [vmem:[#allocation2 + $0x79] sm:$0xff] %vm308_vm0, %v284_v10  ;;  %v447_v1 = vld [vmem:[#allocation2 + $0x2] sm:$0xff]  ;;  %v448_v4 = vld [vmem:[#allocation2 + $0xa] sm:$0xff]  ;;  %s4996_s29 = smov 56   ;;  %s4997_s16 = smov 64  }
  0x2b   : > { %358 = vst.msk [vmem:[#allocation2 + $0x69] sm:$0xff] %vm308_vm0, %v283_v11  ;;  %361 = vst.msk [vmem:[#allocation2 + $0x91] sm:$0xff] %vm308_vm0, %v286_v12  ;;  %vm3844_vm14 = vcmask 326656   ;;  %vm3877_vm15 = vcmask 392192   ;;  %vm3943_vm1 = vcmask 523264   ;;  %vm3992_vm2 = vcmask 588800  }
  0x2c   : > { %360 = vst.msk [vmem:[#allocation2 + $0x81] sm:$0xff] %vm308_vm0, %v285_v13  ;;  %363 = vst.msk [vmem:[#allocation2 + $0xa9] sm:$0xff] %vm308_vm0, %v288_v14  ;;  %s4636_s8 = sshll.u32 %s5061_s28, 4  ;;  %s4999_s28 = smov [#allocation4]  }
  0x2d   : > { %362 = vst.msk [vmem:[#allocation2 + $0x99] sm:$0xff] %vm308_vm0, %v287_v15  ;;  %365 = vst.msk [vmem:[#allocation2 + $0xc1] sm:$0xff] %vm308_vm0, %v290_v16  ;;  %s7538_s17 = scalar_lea.hbm %s7580_s7, %s4636_s8 }
  0x2e   : > { %364 = vst.msk [vmem:[#allocation2 + $0xb1] sm:$0xff] %vm308_vm0, %v289_v17  ;;  %367 = vst.msk [vmem:[#allocation2 + $0xd9] sm:$0xff] %vm308_vm0, %v292_v18  ;;  %v5214_v25 = vld [vmem:[#allocation2 + $0x19] sm:$0xff]  ;;  %v5216_v26 = vld [vmem:[#allocation2 + $0x31] sm:$0xff] }
  0x2f   : > { %366 = vst.msk [vmem:[#allocation2 + $0xc9] sm:$0xff] %vm308_vm0, %v291_v19  ;;  %369 = vst.msk [vmem:[#allocation2 + $0xf1] sm:$0xff] %vm308_vm0, %v294_v20  ;;  %708 = vrot.lane.b32.xlu1 %v5214_v25, %s4986_s18  ;;  %v5223_v27 = vld [vmem:[#allocation2 + $0x21] sm:$0xff]  ;;  %712 = vrot.lane.b32.xlu0 %v5216_v26, %s4986_s18  ;;  %v5231_v30 = vld [vmem:[#allocation2 + $0x49] sm:$0xff] }
  0x30   : > { %368 = vst.msk [vmem:[#allocation2 + $0xe1] sm:$0xff] %vm308_vm0, %v293_v21  ;;  %371 = vst.msk [vmem:[#allocation2 + $0x109] sm:$0xff] %vm308_vm0, %v296_v22  ;;  %v5235_v31 = vld [vmem:[#allocation2 + $0x39] sm:$0xff]  ;;  %v5239_v32 = vld [vmem:[#allocation2 + $0x61] sm:$0xff] }
  0x31   : > { %370 = vst.msk [vmem:[#allocation2 + $0xf9] sm:$0xff] %vm308_vm0, %v295_v23  ;;  %373 = vst.msk [vmem:[#allocation2 + $0x121] sm:$0xff] %vm308_vm0, %v298_v24  ;;  %v5251_v38 = vld [vmem:[#allocation2 + $0x51] sm:$0xff]  ;;  %v5259_v40 = vld [vmem:[#allocation2 + $0x79] sm:$0xff] }
  0x32   : > { %372 = vst.msk [vmem:[#allocation2 + $0x111] sm:$0xff] %vm308_vm0, %v297_v28  ;;  %375 = vst.msk [vmem:[#allocation2 + $0x139] sm:$0xff] %vm308_vm0, %v300_v29  ;;  %v5263_v41 = vld [vmem:[#allocation2 + $0x69] sm:$0xff]  ;;  %v5267_v42 = vld [vmem:[#allocation2 + $0x91] sm:$0xff] }
  0x33   : > { %710 = vrot.lane.b32.xlu1 %v5223_v27, %s4986_s18  ;;  %716 = vrot.lane.b32.xlu0 %v5231_v30, %s4986_s18  ;;  %374 = vst.msk [vmem:[#allocation2 + $0x129] sm:$0xff] %vm308_vm0, %v299_v33  ;;  %377 = vst.msk [vmem:[#allocation2 + $0x151] sm:$0xff] %vm308_vm0, %v302_v34  ;;  %v5271_v43 = vld [vmem:[#allocation2 + $0x81] sm:$0xff]  ;;  %v429_v44 = vld [vmem:[#allocation2 + $0xa9] sm:$0xff] }
  0x34   : > { %376 = vst.msk [vmem:[#allocation2 + $0x141] sm:$0xff] %vm308_vm0, %v301_v35  ;;  %379 = vst.msk [vmem:[#allocation2 + $0x169] sm:$0xff] %vm308_vm0, %v304_v36  ;;  %v428_v45 = vld [vmem:[#allocation2 + $0x99] sm:$0xff]  ;;  %v431_v46 = vld [vmem:[#allocation2 + $0xc1] sm:$0xff] }
  0x35   : > { %378 = vst.msk [vmem:[#allocation2 + $0x159] sm:$0xff] %vm308_vm0, %v303_v37  ;;  %380 = vst.msk [vmem:[#allocation2 + $0x171] sm:$0xff] %vm308_vm0, %v305_v39  ;;  %v430_v47 = vld [vmem:[#allocation2 + $0xb1] sm:$0xff]  ;;  %v433_v48 = vld [vmem:[#allocation2 + $0xd9] sm:$0xff] }
  0x36   : > { %v432_v49 = vld [vmem:[#allocation2 + $0xc9] sm:$0xff]  ;;  %v435_v50 = vld [vmem:[#allocation2 + $0xf1] sm:$0xff]  ;;  %2329 = vst.msk [vmem:[#allocation3] sm:$0xff] %vm1728_vm3, %v7581_v0  ;;  %2330 = vst.msk [vmem:[#allocation3 + $0x8] sm:$0xff] %vm1728_vm3, %v7581_v0 }
  0x37   : > { %714 = vrot.lane.b32.xlu1 %v5235_v31, %s4986_s18  ;;  %720 = vrot.lane.b32.xlu0 %v5239_v32, %s4986_s18  ;;  %v434_v51 = vld [vmem:[#allocation2 + $0xe1] sm:$0xff]  ;;  %v437_v52 = vld [vmem:[#allocation2 + $0x109] sm:$0xff]  ;;  %2334 = vst.msk [vmem:[#allocation3 + $0x198] sm:$0xff] %vm1728_vm3, %v7581_v0  ;;  %2335 = vst.msk [vmem:[#allocation3 + $0x1a0] sm:$0xff] %vm1728_vm3, %v7581_v0 }
  0x38   : > { %v436_v53 = vld [vmem:[#allocation2 + $0xf9] sm:$0xff]  ;;  %v439_v54 = vld [vmem:[#allocation2 + $0x121] sm:$0xff]  ;;  %381 = vst.msk [vmem:[#allocation2 + $0x181] sm:$0xff] %vm308_vm0, %v306_v58  ;;  %382 = vst.msk [vmem:[#allocation2 + $0x189] sm:$0xff] %vm308_vm0, %v307_v62 }
  0x39   : > { %v438_v55 = vld [vmem:[#allocation2 + $0x111] sm:$0xff]  ;;  %v441_v56 = vld [vmem:[#allocation2 + $0x139] sm:$0xff]  ;;  %v5316_v6 = vld [vmem:[#allocation2 + $0x22] sm:$0xff] }
  0x3a   : > { %v440_v57 = vld [vmem:[#allocation2 + $0x129] sm:$0xff]  ;;  %v443_v59 = vld [vmem:[#allocation2 + $0x151] sm:$0xff]  ;;  %v5308_v3 = vld [vmem:[#allocation2 + $0x1a] sm:$0xff] }
  0x3b   : > { %718 = vrot.lane.b32.xlu1 %v5251_v38, %s4986_s18  ;;  %724 = vrot.lane.b32.xlu0 %v5259_v40, %s4986_s18  ;;  %v442_v60 = vld [vmem:[#allocation2 + $0x141] sm:$0xff]  ;;  %v445_v61 = vld [vmem:[#allocation2 + $0x169] sm:$0xff]  ;;  %v5313_v5 = vld [vmem:[#allocation2 + $0x32] sm:$0xff] }
  0x3c   : > { %v444_v63 = vld [vmem:[#allocation2 + $0x159] sm:$0xff]  ;;  %v446_v2 = vld [vmem:[#allocation2 + $0x171] sm:$0xff]  ;;  %v5328_v9 = vld [vmem:[#allocation2 + $0x62] sm:$0xff] }
  0x3d   : > { %v5320_v7 = vld [vmem:[#allocation2 + $0x4a] sm:$0xff]  ;;  %v5324_v8 = vld [vmem:[#allocation2 + $0x3a] sm:$0xff]  ;;  %v5332_v10 = vld [vmem:[#allocation2 + $0x52] sm:$0xff] }
  0x3e   : > { %v5336_v11 = vld [vmem:[#allocation2 + $0x7a] sm:$0xff]  ;;  %v5340_v12 = vld [vmem:[#allocation2 + $0x6a] sm:$0xff]  ;;  %v5344_v13 = vld [vmem:[#allocation2 + $0x92] sm:$0xff] }
  0x3f   : > { %722 = vrot.lane.b32.xlu1 %v5263_v41, %s4986_s18  ;;  %728 = vrot.lane.b32.xlu0 %v5267_v42, %s4986_s18  ;;  %v5348_v14 = vld [vmem:[#allocation2 + $0x82] sm:$0xff]  ;;  %v5352_v15 = vld [vmem:[#allocation2 + $0xaa] sm:$0xff]  ;;  %v5356_v16 = vld [vmem:[#allocation2 + $0x9a] sm:$0xff] }
  0x40   : > { %v5360_v17 = vld [vmem:[#allocation2 + $0xc2] sm:$0xff]  ;;  %v5364_v18 = vld [vmem:[#allocation2 + $0xb2] sm:$0xff]  ;;  %v465_v19 = vld [vmem:[#allocation2 + $0xda] sm:$0xff] }
  0x41   : > { %v5370_v20 = vld [vmem:[#allocation2 + $0xca] sm:$0xff]  ;;  %v467_v21 = vld [vmem:[#allocation2 + $0xf2] sm:$0xff]  ;;  %v466_v22 = vld [vmem:[#allocation2 + $0xe2] sm:$0xff] }
  0x42   : > { %v469_v23 = vld [vmem:[#allocation2 + $0x10a] sm:$0xff]  ;;  %v468_v24 = vld [vmem:[#allocation2 + $0xfa] sm:$0xff]  ;;  %v471_v28 = vld [vmem:[#allocation2 + $0x122] sm:$0xff] }
  0x43   : > { %726 = vrot.lane.b32.xlu1 %v5271_v43, %s4986_s18  ;;  %732 = vrot.lane.b32.xlu0 %v429_v44, %s4986_s18  ;;  %v470_v29 = vld [vmem:[#allocation2 + $0x112] sm:$0xff]  ;;  %v473_v33 = vld [vmem:[#allocation2 + $0x13a] sm:$0xff]  ;;  %v472_v35 = vld [vmem:[#allocation2 + $0x12a] sm:$0xff] }
  0x44   : > { %v475_v36 = vld [vmem:[#allocation2 + $0x152] sm:$0xff]  ;;  %v474_v39 = vld [vmem:[#allocation2 + $0x142] sm:$0xff] }
  0x45   : > { %v5488_v0 = vld [vmem:[#allocation2 + $0xd8] sm:$0xff] }
  0x47   : > { %730 = vrot.lane.b32.xlu1 %v428_v45, %s4986_s18  ;;  %736 = vrot.lane.b32.xlu0 %v431_v46, %s4986_s18  ;;  %v477_v45 = vld [vmem:[#allocation2 + $0x16a] sm:$0xff] }
  0x4b   : > { %734 = vrot.lane.b32.xlu1 %v430_v47, %s4986_s18  ;;  %740 = vrot.lane.b32.xlu0 %v433_v48, %s4986_s18  ;;  %v476_v47 = vld [vmem:[#allocation2 + $0x15a] sm:$0xff] }
  0x4f   : > { %738 = vrot.lane.b32.xlu1 %v432_v49, %s4986_s18  ;;  %744 = vrot.lane.b32.xlu0 %v435_v50, %s4986_s18  ;;  %v5399_v50 = vld [vmem:[#allocation2 + $0x18] sm:$0xff] }
  0x53   : > { %742 = vrot.lane.b32.xlu1 %v434_v51, %s4986_s18  ;;  %748 = vrot.lane.b32.xlu0 %v437_v52, %s4986_s18  ;;  %v478_v51 = vld [vmem:[#allocation2 + $0x172] sm:$0xff] }
  0x57   : > { %746 = vrot.lane.b32.xlu1 %v436_v53, %s4986_s18  ;;  %752 = vrot.lane.b32.xlu0 %v439_v54, %s4986_s18  ;;  %v5405_v53 = vld [vmem:[#allocation2 + $0x30] sm:$0xff] }
  0x5b   : > { %750 = vrot.lane.b32.xlu1 %v438_v55, %s4986_s18  ;;  %756 = vrot.lane.b32.xlu0 %v441_v56, %s4986_s18  ;;  %v5414_v56 = vld [vmem:[#allocation2 + $0x20] sm:$0xff] }
  0x5f   : > { %754 = vrot.lane.b32.xlu1 %v440_v57, %s4986_s18  ;;  %760 = vrot.lane.b32.xlu0 %v443_v59, %s4986_s18  ;;  %v5416_v57 = vld [vmem:[#allocation2 + $0x48] sm:$0xff] }
  0x63   : > { %758 = vrot.lane.b32.xlu1 %v442_v60, %s4986_s18  ;;  %764 = vrot.lane.b32.xlu0 %v445_v61, %s4986_s18  ;;  %v5426_v60 = vld [vmem:[#allocation2 + $0x38] sm:$0xff]  ;;  %v5428_v61 = vld [vmem:[#allocation2 + $0x60] sm:$0xff] }
  0x67   : > { %762 = vrot.lane.b32.xlu1 %v444_v63, %s4986_s18  ;;  %832 = vrot.lane.b32.xlu0 %v447_v1, %s4987_s19  ;;  %v5438_v1 = vld [vmem:[#allocation2 + $0x50] sm:$0xff] }
  0x6b   : > { %766 = vrot.lane.b32.xlu1 %v446_v2, %s4986_s18  ;;  %836 = vrot.lane.b32.xlu0 %v5308_v3, %s4987_s19  ;;  %v5440_v2 = vld [vmem:[#allocation2 + $0x78] sm:$0xff] }
  0x6f   : > { %834 = vrot.lane.b32.xlu1 %v448_v4, %s4987_s19  ;;  %840 = vrot.lane.b32.xlu0 %v5313_v5, %s4987_s19 }
  0x73   : > { %838 = vrot.lane.b32.xlu1 %v5316_v6, %s4987_s19  ;;  %844 = vrot.lane.b32.xlu0 %v5320_v7, %s4987_s19 }
  0x77   : > { %842 = vrot.lane.b32.xlu1 %v5324_v8, %s4987_s19  ;;  %848 = vrot.lane.b32.xlu0 %v5328_v9, %s4987_s19 }
  0x7b   : > { %846 = vrot.lane.b32.xlu1 %v5332_v10, %s4987_s19  ;;  %852 = vrot.lane.b32.xlu0 %v5336_v11, %s4987_s19 }
  0x7f   : > { %850 = vrot.lane.b32.xlu1 %v5340_v12, %s4987_s19  ;;  %856 = vrot.lane.b32.xlu0 %v5344_v13, %s4987_s19 }
  0x83   : > { %854 = vrot.lane.b32.xlu1 %v5348_v14, %s4987_s19  ;;  %860 = vrot.lane.b32.xlu0 %v5352_v15, %s4987_s19 }
  0x87   : > { %858 = vrot.lane.b32.xlu1 %v5356_v16, %s4987_s19  ;;  %864 = vrot.lane.b32.xlu0 %v5360_v17, %s4987_s19 }
  0x8b   : > { %862 = vrot.lane.b32.xlu1 %v5364_v18, %s4987_s19  ;;  %868 = vrot.lane.b32.xlu0 %v465_v19, %s4987_s19 }
  0x8f   : > { %866 = vrot.lane.b32.xlu1 %v5370_v20, %s4987_s19  ;;  %872 = vrot.lane.b32.xlu0 %v467_v21, %s4987_s19  ;;  %v5380_v34 = vpop.permute.xlu0 %704  ;;  %v5450_v21 = vld [vmem:[#allocation2 + $0x68] sm:$0xff] }
  0x93   : > { %870 = vrot.lane.b32.xlu1 %v466_v22, %s4987_s19  ;;  %876 = vrot.lane.b32.xlu0 %v469_v23, %s4987_s19  ;;  %v5384_v37 = vpop.permute.xlu0 %706  ;;  %v5452_v22 = vld [vmem:[#allocation2 + $0x90] sm:$0xff] }
  0x97   : > { %874 = vrot.lane.b32.xlu1 %v468_v24, %s4987_s19  ;;  %880 = vrot.lane.b32.xlu0 %v471_v28, %s4987_s19  ;;  %v5462_v28 = vld [vmem:[#allocation2 + $0x80] sm:$0xff] }
  0x9b   : > { %878 = vrot.lane.b32.xlu1 %v470_v29, %s4987_s19  ;;  %884 = vrot.lane.b32.xlu0 %v473_v33, %s4987_s19  ;;  %v5464_v29 = vld [vmem:[#allocation2 + $0xa8] sm:$0xff] }
  0x9f   : > { %882 = vrot.lane.b32.xlu1 %v472_v35, %s4987_s19  ;;  %888 = vrot.lane.b32.xlu0 %v475_v36, %s4987_s19  ;;  %v5474_v36 = vld [vmem:[#allocation2 + $0x98] sm:$0xff] }
  0xa1   : > { %v5388_v44 = vpop.permute.xlu1 %708  ;;  %v5390_v46 = vpop.permute.xlu0 %712 }
  0xa3   : > { %886 = vrot.lane.b32.xlu1 %v474_v39, %s4987_s19  ;;  %892 = vrot.lane.b32.xlu0 %v477_v45, %s4987_s19  ;;  %v5476_v39 = vld [vmem:[#allocation2 + $0xc0] sm:$0xff] }
  0xa5   : > { %v5394_v48 = vpop.permute.xlu1 %710  ;;  %v5396_v49 = vpop.permute.xlu0 %716 }
  0xa6   : > { %7587 = vst [vmem:[#allocation7_spill] sm:$0xff] %v5396_v49  ;;  %v413_v49 = vld [vmem:[#allocation2 + $0x168] sm:$0xff] }
  0xa7   : > { %890 = vrot.lane.b32.xlu1 %v476_v47, %s4987_s19  ;;  %960 = vrot.lane.b32.xlu0 %v5399_v50, %s4988_s20 }
  0xa9   : > { %v5403_v52 = vpop.permute.xlu1 %714  ;;  %v5407_v54 = vpop.permute.xlu0 %720 }
  0xaa   : > { %7588 = vst [vmem:[#allocation8_spill] sm:$0xff] %v5403_v52  ;;  %7589 = vst [vmem:[#allocation9_spill] sm:$0xff] %v5407_v54  ;;  %v411_v54 = vld [vmem:[#allocation2 + $0x150] sm:$0xff] }
  0xab   : > { %894 = vrot.lane.b32.xlu1 %v478_v51, %s4987_s19  ;;  %964 = vrot.lane.b32.xlu0 %v5405_v53, %s4988_s20  ;;  %v5486_v51 = vld [vmem:[#allocation2 + $0xb0] sm:$0xff] }
  0xad   : > { %v5412_v55 = vpop.permute.xlu1 %718  ;;  %v5418_v58 = vpop.permute.xlu0 %724 }
  0xae   : > { %7590 = vst [vmem:[#allocation10_spill] sm:$0xff] %v5412_v55  ;;  %7591 = vst [vmem:[#allocation11_spill] sm:$0xff] %v5418_v58  ;;  %v409_v58 = vld [vmem:[#allocation2 + $0x138] sm:$0xff] }
  0xaf   : > { %962 = vrot.lane.b32.xlu1 %v5414_v56, %s4988_s20  ;;  %968 = vrot.lane.b32.xlu0 %v5416_v57, %s4988_s20 }
  0xb1   : > { %v5424_v59 = vpop.permute.xlu1 %722  ;;  %v5430_v62 = vpop.permute.xlu0 %728 }
  0xb2   : > { %7592 = vst [vmem:[#allocation12_spill] sm:$0xff] %v5424_v59  ;;  %7593 = vst [vmem:[#allocation13_spill] sm:$0xff] %v5430_v62  ;;  %v407_v62 = vld [vmem:[#allocation2 + $0x120] sm:$0xff] }
  0xb3   : > { %966 = vrot.lane.b32.xlu1 %v5426_v60, %s4988_s20  ;;  %972 = vrot.lane.b32.xlu0 %v5428_v61, %s4988_s20 }
  0xb5   : > { %v5436_v63 = vpop.permute.xlu1 %726  ;;  %v5442_v4 = vpop.permute.xlu0 %732 }
  0xb6   : > { %7594 = vst [vmem:[#allocation14_spill] sm:$0xff] %v5436_v63  ;;  %7595 = vst [vmem:[#allocation15_spill] sm:$0xff] %v5442_v4  ;;  %v5512_v4 = vld [vmem:[#allocation2 + $0x108] sm:$0xff] }
  0xb7   : > { %970 = vrot.lane.b32.xlu1 %v5438_v1, %s4988_s20  ;;  %976 = vrot.lane.b32.xlu0 %v5440_v2, %s4988_s20  ;;  %7607 = vst [vmem:[#allocation27_spill] sm:$0xff] %v5512_v4 }
  0xb9   : > { %v5448_v19 = vpop.permute.xlu1 %730  ;;  %v5454_v23 = vpop.permute.xlu0 %736 }
  0xba   : > { %7596 = vst [vmem:[#allocation16_spill] sm:$0xff] %v5448_v19  ;;  %7597 = vst [vmem:[#allocation17_spill] sm:$0xff] %v5454_v23  ;;  %v5500_v23 = vld [vmem:[#allocation2 + $0xf0] sm:$0xff] }
  0xbb   : > { %974 = vrot.lane.b32.xlu1 %v5450_v21, %s4988_s20  ;;  %980 = vrot.lane.b32.xlu0 %v5452_v22, %s4988_s20 }
  0xbd   : > { %v5460_v24 = vpop.permute.xlu1 %734  ;;  %v5466_v33 = vpop.permute.xlu0 %740 }
  0xbe   : > { %7598 = vst [vmem:[#allocation18_spill] sm:$0xff] %v5460_v24  ;;  %7599 = vst [vmem:[#allocation19_spill] sm:$0xff] %v5466_v33 }
  0xbf   : > { %978 = vrot.lane.b32.xlu1 %v5462_v28, %s4988_s20  ;;  %984 = vrot.lane.b32.xlu0 %v5464_v29, %s4988_s20 }
  0xc1   : > { %v5472_v35 = vpop.permute.xlu1 %738  ;;  %v5478_v45 = vpop.permute.xlu0 %744 }
  0xc2   : > { %7600 = vst [vmem:[#allocation20_spill] sm:$0xff] %v5472_v35  ;;  %7601 = vst [vmem:[#allocation21_spill] sm:$0xff] %v5478_v45  ;;  %v5498_v35 = vld [vmem:[#allocation2 + $0xc8] sm:$0xff] }
  0xc3   : > { %982 = vrot.lane.b32.xlu1 %v5474_v36, %s4988_s20  ;;  %988 = vrot.lane.b32.xlu0 %v5476_v39, %s4988_s20 }
  0xc5   : > { %v5484_v47 = vpop.permute.xlu1 %742  ;;  %v5490_v33 = vpop.permute.xlu0 %748 }
  0xc6   : > { %7602 = vst [vmem:[#allocation22_spill] sm:$0xff] %v5484_v47  ;;  %7603 = vst [vmem:[#allocation23_spill] sm:$0xff] %v5490_v33  ;;  %v5510_v47 = vld [vmem:[#allocation2 + $0xe0] sm:$0xff] }
  0xc7   : > { %986 = vrot.lane.b32.xlu1 %v5486_v51, %s4988_s20  ;;  %992 = vrot.lane.b32.xlu0 %v5488_v0, %s4988_s20 }
  0xc9   : > { %v5496_v45 = vpop.permute.xlu1 %746  ;;  %v5502_v24 = vpop.permute.xlu0 %752 }
  0xca   : > { %7604 = vst [vmem:[#allocation24_spill] sm:$0xff] %v5496_v45  ;;  %7605 = vst [vmem:[#allocation25_spill] sm:$0xff] %v5502_v24  ;;  %v5522_v45 = vld [vmem:[#allocation2 + $0xf8] sm:$0xff] }
  0xcb   : > { %990 = vrot.lane.b32.xlu1 %v5498_v35, %s4988_s20  ;;  %996 = vrot.lane.b32.xlu0 %v5500_v23, %s4988_s20 }
  0xcd   : > { %v5508_v33 = vpop.permute.xlu1 %750  ;;  %v5514_v19 = vpop.permute.xlu0 %756 }
  0xce   : > { %7606 = vst [vmem:[#allocation26_spill] sm:$0xff] %v5508_v33  ;;  %7608 = vst [vmem:[#allocation28_spill] sm:$0xff] %v5514_v19  ;;  %v5531_v19 = vld [vmem:[#allocation2 + $0x110] sm:$0xff] }
  0xcf   : > { %994 = vrot.lane.b32.xlu1 %v5510_v47, %s4988_s20  ;;  %1000 = vrot.lane.b32.xlu0 %v5512_v4, %s4988_s20  ;;  %7612 = vst [vmem:[#allocation32_spill] sm:$0xff] %v5531_v19 }
  0xd1   : > { %v5520_v24 = vpop.permute.xlu1 %754  ;;  %v5524_v63 = vpop.permute.xlu0 %760 }
  0xd2   : > { %7609 = vst [vmem:[#allocation29_spill] sm:$0xff] %v5520_v24  ;;  %7610 = vst [vmem:[#allocation30_spill] sm:$0xff] %v5524_v63  ;;  %v408_v63 = vld [vmem:[#allocation2 + $0x128] sm:$0xff] }
  0xd3   : > { %998 = vrot.lane.b32.xlu1 %v5522_v45, %s4988_s20  ;;  %1004 = vrot.lane.b32.xlu0 %v407_v62, %s4988_s20 }
  0xd5   : > { %v5529_v33 = vpop.permute.xlu1 %758  ;;  %v5533_v59 = vpop.permute.xlu0 %764 }
  0xd6   : > { %7611 = vst [vmem:[#allocation31_spill] sm:$0xff] %v5529_v33  ;;  %7613 = vst [vmem:[#allocation33_spill] sm:$0xff] %v5533_v59  ;;  %v410_v33 = vld [vmem:[#allocation2 + $0x140] sm:$0xff] }
  0xd7   : > { %1002 = vrot.lane.b32.xlu1 %v5531_v19, %s4988_s20  ;;  %1008 = vrot.lane.b32.xlu0 %v409_v58, %s4988_s20  ;;  %v509_v19 = vld [vmem:[#allocation2 + $0x180] sm:$0xff] }
  0xd9   : > { %v5538_v24 = vpop.permute.xlu1 %762  ;;  %v5540_v55 = vpop.permute.xlu0 %832 }
  0xda   : > { %7614 = vst [vmem:[#allocation34_spill] sm:$0xff] %v5538_v24  ;;  %v412_v24 = vld [vmem:[#allocation2 + $0x158] sm:$0xff] }
  0xdb   : > { %1006 = vrot.lane.b32.xlu1 %v408_v63, %s4988_s20  ;;  %1012 = vrot.lane.b32.xlu0 %v411_v54, %s4988_s20  ;;  %v414_v63 = vld [vmem:[#allocation2 + $0x170] sm:$0xff] }
  0xdd   : > { %v5544_v62 = vpop.permute.xlu1 %766  ;;  %v5546_v59 = vpop.permute.xlu0 %836 }
  0xde   : > { %7615 = vst [vmem:[#allocation35_spill] sm:$0xff] %v5544_v62 }
  0xdf   : > { %1010 = vrot.lane.b32.xlu1 %v410_v33, %s4988_s20  ;;  %1016 = vrot.lane.b32.xlu0 %v413_v49, %s4988_s20  ;;  %v510_v33 = vld [vmem:[#allocation2 + $0x188] sm:$0xff] }
  0xe1   : > { %v5550_v58 = vpop.permute.xlu1 %834  ;;  %v5552_v4 = vpop.permute.xlu0 %840 }
  0xe3   : > { %1014 = vrot.lane.b32.xlu1 %v412_v24, %s4988_s20  ;;  %1020 = vrot.lane.b32.xlu0 %v509_v19, %s4988_s20 }
  0xe5   : > { %v5556_v54 = vpop.permute.xlu1 %838  ;;  %v5558_v62 = vpop.permute.xlu0 %844 }
  0xe7   : > { %1018 = vrot.lane.b32.xlu1 %v414_v63, %s4988_s20  ;;  %1088 = vrot.lane.b32.xlu0 %v5214_v25, %s4989_s21 }
  0xe9   : > { %v5563_v49 = vpop.permute.xlu1 %842  ;;  %v5565_v52 = vpop.permute.xlu0 %848 }
  0xea   : > { %7616 = vst [vmem:[#allocation36_spill] sm:$0xff] %v5565_v52 }
  0xeb   : > { %1022 = vrot.lane.b32.xlu1 %v510_v33, %s4988_s20  ;;  %1092 = vrot.lane.b32.xlu0 %v5216_v26, %s4989_s21  ;;  %s4991_s20 = smov 24  }
  0xed   : > { %v5570_v19 = vpop.permute.xlu1 %846  ;;  %v5572_v24 = vpop.permute.xlu0 %852 }
  0xee   : > { %7617 = vst [vmem:[#allocation37_spill] sm:$0xff] %v5572_v24 }
  0xef   : > { %1090 = vrot.lane.b32.xlu1 %v5223_v27, %s4989_s21  ;;  %1096 = vrot.lane.b32.xlu0 %v5231_v30, %s4989_s21 }
  0xf1   : > { %v5578_v25 = vpop.permute.xlu1 %850  ;;  %v5580_v63 = vpop.permute.xlu0 %856 }
  0xf2   : > { %7618 = vst [vmem:[#allocation38_spill] sm:$0xff] %v5580_v63 }
  0xf3   : > { %1094 = vrot.lane.b32.xlu1 %v5235_v31, %s4989_s21  ;;  %1100 = vrot.lane.b32.xlu0 %v5239_v32, %s4989_s21  ;;  %v1963_v32 = vld [vmem:[%s7574_s1 + $0x20] sm:$0xf] }
  0xf4   : > { %4720 = vmatprep.subr.msk.mxu0 %vm2068_vm4, %v1963_v32 }
  0xf5   : > { %v5586_v33 = vpop.permute.xlu1 %854  ;;  %v5588_v52 = vpop.permute.xlu0 %860  ;;  %4721 = vmatpush3.msk.msra.mxu0 %vm2068_vm4, %v1963_v32  ;;  %v1960_v32 = vld [vmem:[%s7574_s1 + $0x8] sm:$0xff]  ;;  %vm4998_vm4 = vmmov 0  }
  0xf6   : > { %7619 = vst [vmem:[#allocation39_spill] sm:$0xff] %v5586_v33  ;;  %7620 = vst [vmem:[#allocation40_spill] sm:$0xff] %v5588_v52 }
  0xf7   : > { %1098 = vrot.lane.b32.xlu1 %v5251_v38, %s4989_s21  ;;  %1104 = vrot.lane.b32.xlu0 %v5259_v40, %s4989_s21  ;;  %v1962_v40 = vld [vmem:[%s7574_s1 + $0x18] sm:$0xff] }
  0xf8   : > { %4722 = vmatprep.subr.mxu0 %v1962_v40 }
  0xf9   : > { %v5594_v27 = vpop.permute.xlu1 %858  ;;  %v5596_v24 = vpop.permute.xlu0 %864  ;;  %4723 = vmatpush3.msra.mxu0 %v1962_v40 }
  0xfa   : > { %7621 = vst [vmem:[#allocation41_spill] sm:$0xff] %v5594_v27  ;;  %7622 = vst [vmem:[#allocation42_spill] sm:$0xff] %v5596_v24  ;;  %v1961_v27 = vld [vmem:[%s7574_s1 + $0x10] sm:$0xff] }
  0xfb   : > { %1102 = vrot.lane.b32.xlu1 %v5263_v41, %s4989_s21  ;;  %1108 = vrot.lane.b32.xlu0 %v5267_v42, %s4989_s21 }
  0xfc   : > { %4724 = vmatprep.subr.mxu0 %v1961_v27 }
  0xfd   : > { %v5605_v52 = vpop.permute.xlu1 %862  ;;  %v5610_v24 = vpop.permute.xlu0 %868  ;;  %4725 = vmatpush3.msra.mxu0 %v1961_v27 }
  0xfe   : > { %7623 = vst [vmem:[#allocation43_spill] sm:$0xff] %v5605_v52  ;;  %7624 = vst [vmem:[#allocation44_spill] sm:$0xff] %v5610_v24  ;;  %4726 = vmatprep.subr.mxu0 %v1960_v32 }
  0xff   : > { %1106 = vrot.lane.b32.xlu1 %v5271_v43, %s4989_s21  ;;  %1218 = vrot.lane.b32.xlu0 %v5316_v6, %s4990_s14  ;;  %v1959_v43 = vld [vmem:[%s7574_s1] sm:$0xff] }
 0x100   : > { %4727 = vmatpush3.msra.mxu0 %v1960_v32 }
 0x101   : > { %v5619_v42 = vpop.permute.xlu1 %866  ;;  %v5624_v24 = vpop.permute.xlu0 %872  ;;  %4728 = vmatprep.subr.mxu0 %v1959_v43 }
 0x102   : > { %7625 = vst [vmem:[#allocation45_spill] sm:$0xff] %v5619_v42  ;;  %7626 = vst [vmem:[#allocation46_spill] sm:$0xff] %v5624_v24  ;;  %4729 = vmatpush3.msra.mxu0 %v1959_v43  ;;  %v615_v24 = vld [vmem:[#allocation2 + $0x81] sm:$0xff] }
 0x103   : > { %1216 = vrot.lane.b32.xlu1 %v5308_v3, %s4990_s14  ;;  %1346 = vrot.lane.b32.xlu0 %v5426_v60, %s4991_s20  ;;  %v7629_v3 = vmov 0.0  }
 0x104   : > { %4844 = vmatprep.subr.mxu0 %v7629_v3  ;;  %2332 = vst.msk [vmem:[#allocation3 + $0x10] sm:$0x3] %vm2331_vm12, %v7629_v3  ;;  %2336 = vst.msk [vmem:[#allocation3 + $0x1a8] sm:$0x3] %vm2331_vm12, %v7629_v3 }
 0x105   : > { %v5633_v6 = vpop.permute.xlu1 %870  ;;  %v5635_v27 = vpop.permute.xlu0 %876  ;;  %2339 = vst.msk [vmem:[#allocation3 + $0x18] sm:$0x1] %vm2338_vm13, %v7629_v3  ;;  %2340 = vst.msk [vmem:[#allocation3 + $0x30] sm:$0x1] %vm2338_vm13, %v7629_v3 }
 0x106   : > { %7627 = vst [vmem:[#allocation47_spill] sm:$0xff] %v5633_v6  ;;  %7628 = vst [vmem:[#allocation48_spill] sm:$0xff] %v5635_v27 }
 0x107   : > { %1344 = vrot.lane.b32.xlu1 %v5405_v53, %s4991_s20  ;;  %1474 = vrot.lane.b32.xlu0 %v5235_v31, %s4992_s22  ;;  %2341 = vst.msk [vmem:[#allocation3 + $0x48] sm:$0x1] %vm2338_vm13, %v7629_v3  ;;  %2342 = vst.msk [vmem:[#allocation3 + $0x60] sm:$0x1] %vm2338_vm13, %v7629_v3 }
 0x108   : > { %2343 = vst.msk [vmem:[#allocation3 + $0x78] sm:$0x1] %vm2338_vm13, %v7629_v3  ;;  %2344 = vst.msk [vmem:[#allocation3 + $0x90] sm:$0x1] %vm2338_vm13, %v7629_v3 }
 0x109   : > { %v5642_v40 = vpop.permute.xlu1 %874  ;;  %v5644_v32 = vpop.permute.xlu0 %880  ;;  %2345 = vst.msk [vmem:[#allocation3 + $0xa8] sm:$0x1] %vm2338_vm13, %v7629_v3  ;;  %2346 = vst.msk [vmem:[#allocation3 + $0xc0] sm:$0x1] %vm2338_vm13, %v7629_v3 }
 0x10a   : > { %7630 = vst [vmem:[#allocation49_spill] sm:$0xff] %v5642_v40  ;;  %7631 = vst [vmem:[#allocation50_spill] sm:$0xff] %v5644_v32 }
 0x10b   : > { %1472 = vrot.lane.b32.xlu1 %v5216_v26, %s4992_s22  ;;  %1220 = vrot.lane.b32.xlu0 %v5313_v5, %s4990_s14  ;;  %2347 = vst.msk [vmem:[#allocation3 + $0xd8] sm:$0x1] %vm2338_vm13, %v7629_v3  ;;  %2348 = vst.msk [vmem:[#allocation3 + $0xf0] sm:$0x1] %vm2338_vm13, %v7629_v3 }
 0x10c   : > { %2349 = vst.msk [vmem:[#allocation3 + $0x108] sm:$0x1] %vm2338_vm13, %v7629_v3  ;;  %2350 = vst.msk [vmem:[#allocation3 + $0x120] sm:$0x1] %vm2338_vm13, %v7629_v3 }
 0x10d   : > { %v5650_v43 = vpop.permute.xlu1 %878  ;;  %v5652_v27 = vpop.permute.xlu0 %884  ;;  %2351 = vst.msk [vmem:[#allocation3 + $0x138] sm:$0x1] %vm2338_vm13, %v7629_v3  ;;  %2352 = vst.msk [vmem:[#allocation3 + $0x150] sm:$0x1] %vm2338_vm13, %v7629_v3 }
 0x10e   : > { %7632 = vst [vmem:[#allocation51_spill] sm:$0xff] %v5650_v43  ;;  %7633 = vst [vmem:[#allocation52_spill] sm:$0xff] %v5652_v27 }
 0x10f   : > { %1600 = vrot.lane.b32.xlu1 %v5313_v5, %s4993_s23  ;;  %1222 = vrot.lane.b32.xlu0 %v5324_v8, %s4990_s14  ;;  %2353 = vst.msk [vmem:[#allocation3 + $0x168] sm:$0x1] %vm2338_vm13, %v7629_v3  ;;  %2354 = vst.msk [vmem:[#allocation3 + $0x180] sm:$0x1] %vm2338_vm13, %v7629_v3 }
 0x110   : > { %2355 = vst.msk [vmem:[#allocation3 + $0x29] sm:$0x1] %vm2338_vm13, %v7629_v3  ;;  %2356 = vst.msk [vmem:[#allocation3 + $0x41] sm:$0x1] %vm2338_vm13, %v7629_v3 }
 0x111   : > { %v5658_v31 = vpop.permute.xlu1 %882  ;;  %v5660_v32 = vpop.permute.xlu0 %888  ;;  %2357 = vst.msk [vmem:[#allocation3 + $0x59] sm:$0x1] %vm2338_vm13, %v7629_v3  ;;  %2358 = vst.msk [vmem:[#allocation3 + $0x71] sm:$0x1] %vm2338_vm13, %v7629_v3 }
 0x112   : > { %7634 = vst [vmem:[#allocation53_spill] sm:$0xff] %v5658_v31  ;;  %7635 = vst [vmem:[#allocation54_spill] sm:$0xff] %v5660_v32 }
 0x113   : > { %1602 = vrot.lane.b32.xlu1 %v5324_v8, %s4993_s23  ;;  %1350 = vrot.lane.b32.xlu0 %v5438_v1, %s4991_s20  ;;  %2359 = vst.msk [vmem:[#allocation3 + $0x89] sm:$0x1] %vm2338_vm13, %v7629_v3  ;;  %2360 = vst.msk [vmem:[#allocation3 + $0xa1] sm:$0x1] %vm2338_vm13, %v7629_v3 }
 0x114   : > { %2361 = vst.msk [vmem:[#allocation3 + $0xb9] sm:$0x1] %vm2338_vm13, %v7629_v3  ;;  %2362 = vst.msk [vmem:[#allocation3 + $0xd1] sm:$0x1] %vm2338_vm13, %v7629_v3 }
 0x115   : > { %v5666_v26 = vpop.permute.xlu1 %886  ;;  %v5668_v27 = vpop.permute.xlu0 %892  ;;  %2363 = vst.msk [vmem:[#allocation3 + $0xe9] sm:$0x1] %vm2338_vm13, %v7629_v3  ;;  %2364 = vst.msk [vmem:[#allocation3 + $0x101] sm:$0x1] %vm2338_vm13, %v7629_v3 }
 0x116   : > { %7636 = vst [vmem:[#allocation55_spill] sm:$0xff] %v5666_v26  ;;  %7637 = vst [vmem:[#allocation56_spill] sm:$0xff] %v5668_v27 }
 0x117   : > { %1348 = vrot.lane.b32.xlu1 %v5416_v57, %s4991_s20  ;;  %1478 = vrot.lane.b32.xlu0 %v5251_v38, %s4992_s22  ;;  %2365 = vst.msk [vmem:[#allocation3 + $0x119] sm:$0x1] %vm2338_vm13, %v7629_v3  ;;  %2366 = vst.msk [vmem:[#allocation3 + $0x131] sm:$0x1] %vm2338_vm13, %v7629_v3 }
 0x118   : > { %2367 = vst.msk [vmem:[#allocation3 + $0x149] sm:$0x1] %vm2338_vm13, %v7629_v3  ;;  %2368 = vst.msk [vmem:[#allocation3 + $0x161] sm:$0x1] %vm2338_vm13, %v7629_v3 }
 0x119   : > { %v5674_v5 = vpop.permute.xlu1 %890  ;;  %v5676_v31 = vpop.permute.xlu0 %960  ;;  %2369 = vst.msk [vmem:[#allocation3 + $0x179] sm:$0x1] %vm2338_vm13, %v7629_v3  ;;  %2370 = vst.msk [vmem:[#allocation3 + $0x191] sm:$0x1] %vm2338_vm13, %v7629_v3 }
 0x11a   : > { %7638 = vst [vmem:[#allocation57_spill] sm:$0xff] %v5674_v5 }
 0x11b   : > { %1476 = vrot.lane.b32.xlu1 %v5231_v30, %s4992_s22  ;;  %1224 = vrot.lane.b32.xlu0 %v5320_v7, %s4990_s14 }
 0x11d   : > { %v5682_v8 = vpop.permute.xlu1 %894  ;;  %v5684_v32 = vpop.permute.xlu0 %964 }
 0x11e   : > { %7639 = vst [vmem:[#allocation58_spill] sm:$0xff] %v5682_v8 }
 0x11f   : > { %1604 = vrot.lane.b32.xlu1 %v5320_v7, %s4993_s23  ;;  %1226 = vrot.lane.b32.xlu0 %v5332_v10, %s4990_s14  ;;  %v612_v7 = vld [vmem:[#allocation2 + $0x61] sm:$0xff] }
 0x121   : > { %v5690_v38 = vpop.permute.xlu1 %962  ;;  %v5692_v27 = vpop.permute.xlu0 %968 }
 0x123   : > { %1606 = vrot.lane.b32.xlu1 %v5332_v10, %s4993_s23  ;;  %1354 = vrot.lane.b32.xlu0 %v5450_v21, %s4991_s20 }
 0x125   : > { %v5698_v30 = vpop.permute.xlu1 %966  ;;  %v5700_v8 = vpop.permute.xlu0 %972 }
 0x127   : > { %1352 = vrot.lane.b32.xlu1 %v5428_v61, %s4991_s20  ;;  %1482 = vrot.lane.b32.xlu0 %v5263_v41, %s4992_s22 }
 0x129   : > { %v5706_v5 = vpop.permute.xlu1 %970  ;;  %v5708_v26 = vpop.permute.xlu0 %976 }
 0x12b   : > { %1480 = vrot.lane.b32.xlu1 %v612_v7, %s4992_s22  ;;  %1228 = vrot.lane.b32.xlu0 %v5328_v9, %s4990_s14 }
 0x12d   : > { %v5713_v10 = vpop.permute.xlu1 %974  ;;  %v5715_v43 = vpop.permute.xlu0 %980 }
 0x12e   : > { %7640 = vst [vmem:[#allocation59_spill] sm:$0xff] %v5715_v43 }
 0x12f   : > { %1608 = vrot.lane.b32.xlu1 %v5328_v9, %s4993_s23  ;;  %1230 = vrot.lane.b32.xlu0 %v5340_v12, %s4990_s14  ;;  %v614_v9 = vld [vmem:[#allocation2 + $0x79] sm:$0xff] }
 0x131   : > { %v5721_v41 = vpop.permute.xlu1 %978  ;;  %v5723_v40 = vpop.permute.xlu0 %984 }
 0x132   : > { %7641 = vst [vmem:[#allocation60_spill] sm:$0xff] %v5723_v40 }
 0x133   : > { %1610 = vrot.lane.b32.xlu1 %v5340_v12, %s4993_s23  ;;  %1358 = vrot.lane.b32.xlu0 %v5462_v28, %s4991_s20 }
 0x135   : > { %v5729_v7 = vpop.permute.xlu1 %982  ;;  %v5731_v6 = vpop.permute.xlu0 %988 }
 0x136   : > { %7642 = vst [vmem:[#allocation61_spill] sm:$0xff] %v5729_v7  ;;  %7643 = vst [vmem:[#allocation62_spill] sm:$0xff] %v5731_v6 }
 0x137   : > { %1356 = vrot.lane.b32.xlu1 %v5440_v2, %s4991_s20  ;;  %1486 = vrot.lane.b32.xlu0 %v615_v24, %s4992_s22 }
 0x139   : > { %v5736_v42 = vpop.permute.xlu1 %986  ;;  %v5738_v52 = vpop.permute.xlu0 %992 }
 0x13a   : > { %7644 = vst [vmem:[#allocation63_spill] sm:$0xff] %v5736_v42  ;;  %7645 = vst [vmem:[#allocation64_spill] sm:$0xff] %v5738_v52  ;;  %v617_v52 = vld [vmem:[#allocation2 + $0x99] sm:$0xff]  ;;  %v557_v42 = vld [vmem:[#allocation2 + $0xc2] sm:$0xff] }
 0x13b   : > { %1484 = vrot.lane.b32.xlu1 %v614_v9, %s4992_s22  ;;  %1232 = vrot.lane.b32.xlu0 %v5336_v11, %s4990_s14 }
 0x13d   : > { %v5743_v12 = vpop.permute.xlu1 %990  ;;  %v5745_v40 = vpop.permute.xlu0 %996 }
 0x13e   : > { %7646 = vst [vmem:[#allocation65_spill] sm:$0xff] %v5743_v12  ;;  %7647 = vst [vmem:[#allocation66_spill] sm:$0xff] %v5745_v40  ;;  %v383_v12 = vld [vmem:[#allocation2] sm:$0xff] }
 0x13f   : > { %1612 = vrot.lane.b32.xlu1 %v5336_v11, %s4993_s23  ;;  %1234 = vrot.lane.b32.xlu0 %v5348_v14, %s4990_s14  ;;  %v616_v11 = vld [vmem:[#allocation2 + $0x91] sm:$0xff]  ;;  %v1696_v63 = vsel %vm308_vm0, %v383_v12, %v5380_v34  ;;  %v622_v34 = vld [vmem:[#allocation2 + $0xd9] sm:$0xff] }
 0x141   : > { %v5751_v24 = vpop.permute.xlu1 %994  ;;  %v5753_v6 = vpop.permute.xlu0 %1000 }
 0x142   : > { %7648 = vst [vmem:[#allocation67_spill] sm:$0xff] %v5751_v24  ;;  %7649 = vst [vmem:[#allocation68_spill] sm:$0xff] %v5753_v6 }
 0x143   : > { %1614 = vrot.lane.b32.xlu1 %v5348_v14, %s4993_s23  ;;  %1362 = vrot.lane.b32.xlu0 %v5474_v36, %s4991_s20 }
 0x145   : > { %v5759_v9 = vpop.permute.xlu1 %998  ;;  %v5761_v40 = vpop.permute.xlu0 %1004 }
 0x146   : > { %7650 = vst [vmem:[#allocation69_spill] sm:$0xff] %v5759_v9  ;;  %7651 = vst [vmem:[#allocation70_spill] sm:$0xff] %v5761_v40 }
 0x147   : > { %1360 = vrot.lane.b32.xlu1 %v5452_v22, %s4991_s20  ;;  %1490 = vrot.lane.b32.xlu0 %v617_v52, %s4992_s22 }
 0x149   : > { %v5766_v24 = vpop.permute.xlu1 %1002  ;;  %v5768_v6 = vpop.permute.xlu0 %1008 }
 0x14a   : > { %7652 = vst [vmem:[#allocation71_spill] sm:$0xff] %v5766_v24  ;;  %7653 = vst [vmem:[#allocation72_spill] sm:$0xff] %v5768_v6 }
 0x14b   : > { %1488 = vrot.lane.b32.xlu1 %v616_v11, %s4992_s22  ;;  %1110 = vrot.lane.b32.xlu0 %v617_v52, %s4989_s21  ;;  %v618_v11 = vld [vmem:[#allocation2 + $0xa9] sm:$0xff] }
 0x14d   : > { %v5772_v14 = vpop.permute.xlu1 %1006  ;;  %v5774_v36 = vpop.permute.xlu0 %1012 }
 0x14e   : > { %7654 = vst [vmem:[#allocation73_spill] sm:$0xff] %v5772_v14  ;;  %7655 = vst [vmem:[#allocation74_spill] sm:$0xff] %v5774_v36  ;;  %v621_v14 = vld [vmem:[#allocation2 + $0xc9] sm:$0xff] }
 0x14f   : > { %1616 = vrot.lane.b32.xlu1 %v5344_v13, %s4993_s23  ;;  %1618 = vrot.lane.b32.xlu0 %v5356_v16, %s4993_s23 }
 0x151   : > { %v5780_v22 = vpop.permute.xlu1 %1010  ;;  %v5782_v40 = vpop.permute.xlu0 %1016 }
 0x152   : > { %7656 = vst [vmem:[#allocation75_spill] sm:$0xff] %v5780_v22  ;;  %7657 = vst [vmem:[#allocation76_spill] sm:$0xff] %v5782_v40  ;;  %v619_v22 = vld [vmem:[#allocation2 + $0xb1] sm:$0xff] }
 0x153   : > { %1236 = vrot.lane.b32.xlu1 %v5344_v13, %s4990_s14  ;;  %1364 = vrot.lane.b32.xlu0 %v5464_v29, %s4991_s20 }
 0x155   : > { %v5788_v52 = vpop.permute.xlu1 %1014  ;;  %v5790_v36 = vpop.permute.xlu0 %1020 }
 0x156   : > { %7658 = vst [vmem:[#allocation77_spill] sm:$0xff] %v5788_v52  ;;  %7659 = vst [vmem:[#allocation78_spill] sm:$0xff] %v5790_v36 }
 0x157   : > { %1238 = vrot.lane.b32.xlu1 %v5356_v16, %s4990_s14  ;;  %1492 = vrot.lane.b32.xlu0 %v618_v11, %s4992_s22 }
 0x159   : > { %v5795_v6 = vpop.permute.xlu1 %1018  ;;  %v1089_v40 = vpop.permute.xlu0 %1088 }
 0x15a   : > { %7660 = vst [vmem:[#allocation79_spill] sm:$0xff] %v5795_v6 }
 0x15b   : > { %1366 = vrot.lane.b32.xlu1 %v5486_v51, %s4991_s20  ;;  %1494 = vrot.lane.b32.xlu0 %v619_v22, %s4992_s22 }
 0x15d   : > { %v5800_v13 = vpop.permute.xlu1 %1022  ;;  %v5802_v29 = vpop.permute.xlu0 %1092 }
 0x15e   : > { %7661 = vst [vmem:[#allocation80_spill] sm:$0xff] %v5800_v13 }
 0x15f   : > { %1112 = vrot.lane.b32.xlu1 %v618_v11, %s4989_s21  ;;  %1114 = vrot.lane.b32.xlu0 %v619_v22, %s4989_s21  ;;  %v620_v11 = vld [vmem:[#allocation2 + $0xc1] sm:$0xff] }
 0x161   : > { %v1091_v16 = vpop.permute.xlu1 %1090  ;;  %v5806_v36 = vpop.permute.xlu0 %1096 }
 0x163   : > { %1620 = vrot.lane.b32.xlu1 %v5352_v15, %s4993_s23  ;;  %1622 = vrot.lane.b32.xlu0 %v5364_v18, %s4993_s23 }
 0x165   : > { %v5812_v51 = vpop.permute.xlu1 %1094  ;;  %v5814_v6 = vpop.permute.xlu0 %1100 }
 0x167   : > { %1240 = vrot.lane.b32.xlu1 %v5352_v15, %s4990_s14  ;;  %1368 = vrot.lane.b32.xlu0 %v5476_v39, %s4991_s20 }
 0x169   : > { %v5820_v22 = vpop.permute.xlu1 %1098  ;;  %v5822_v13 = vpop.permute.xlu0 %1104 }
 0x16b   : > { %1242 = vrot.lane.b32.xlu1 %v5364_v18, %s4990_s14  ;;  %1496 = vrot.lane.b32.xlu0 %v620_v11, %s4992_s22 }
 0x16d   : > { %v5827_v52 = vpop.permute.xlu1 %1102  ;;  %v5829_v24 = vpop.permute.xlu0 %1108 }
 0x16e   : > { %7662 = vst [vmem:[#allocation81_spill] sm:$0xff] %v5829_v24  ;;  %v558_v24 = vld [vmem:[#allocation2 + $0xca] sm:$0xff] }
 0x16f   : > { %1370 = vrot.lane.b32.xlu1 %v5498_v35, %s4991_s20  ;;  %1498 = vrot.lane.b32.xlu0 %v621_v14, %s4992_s22 }
 0x171   : > { %v5834_v15 = vpop.permute.xlu1 %1106  ;;  %v1219_v39 = vpop.permute.xlu0 %1218 }
 0x173   : > { %1116 = vrot.lane.b32.xlu1 %v620_v11, %s4989_s21  ;;  %1118 = vrot.lane.b32.xlu0 %v621_v14, %s4989_s21  ;;  %v384_v14 = vld [vmem:[#allocation2 + $0x8] sm:$0xff]  ;;  %v1729_v11 = vsel %vm1728_vm3, %v1696_v63, %v5540_v55 }
 0x174   : > { %v1697_v12 = vsel %vm308_vm0, %v384_v14, %v5384_v37 }
 0x175   : > { %v1217_v18 = vpop.permute.xlu1 %1216  ;;  %v1347_v9 = vpop.permute.xlu0 %1346  ;;  %v1730_v55 = vsel %vm1728_vm3, %v1697_v12, %v5550_v58 }
 0x176   : > { %v1763_v63 = vsel %vm1761_vm5, %v1730_v55, %v5690_v38  ;;  %v1699_v55 = vsel %vm308_vm0, %v5414_v56, %v5394_v48 }
 0x177   : > { %1624 = vrot.lane.b32.xlu1 %v5360_v17, %s4993_s23  ;;  %1626 = vrot.lane.b32.xlu0 %v5370_v20, %s4993_s23  ;;  %v1762_v17 = vsel %vm1761_vm5, %v1729_v11, %v5676_v31 }
 0x178   : > { %v1795_v33 = vsel %vm1794_vm6, %v1762_v17, %v1089_v40  ;;  %v655_v17 = vld [vmem:[#allocation2 + $0xe2] sm:$0xff] }
 0x179   : > { %v1345_v35 = vpop.permute.xlu1 %1344  ;;  %v1475_v7 = vpop.permute.xlu0 %1474 }
 0x17b   : > { %1244 = vrot.lane.b32.xlu1 %v557_v42, %s4990_s14  ;;  %1372 = vrot.lane.b32.xlu0 %v5488_v0, %s4991_s20  ;;  %v1828_v42 = vsel %vm1827_vm7, %v1795_v33, %v1217_v18  ;;  %v1796_v33 = vsel %vm1794_vm6, %v1763_v63, %v1091_v16 }
 0x17c   : > { %v1861_v0 = vsel %vm1860_vm8, %v1828_v42, %v1345_v35  ;;  %v1829_v18 = vsel %vm1827_vm7, %v1796_v33, %v1219_v39  ;;  %v654_v39 = vld [vmem:[#allocation2 + $0xda] sm:$0xff] }
 0x17d   : > { %v1473_v20 = vpop.permute.xlu1 %1472  ;;  %v1221_v43 = vpop.permute.xlu0 %1220  ;;  %v1862_v38 = vsel %vm1860_vm8, %v1829_v18, %v1347_v9  ;;  %v1698_v9 = vsel %vm308_vm0, %v5399_v50, %v5388_v44  ;;  %v1700_v18 = vsel %vm308_vm0, %v5405_v53, %v5390_v46 }
 0x17e   : > { %v1894_v40 = vsel %vm1893_vm10, %v1861_v0, %v1473_v20  ;;  %v1895_v35 = vsel %vm1893_vm10, %v1862_v38, %v1475_v7  ;;  %v1731_v20 = vsel %vm1728_vm3, %v1698_v9, %v5546_v59  ;;  %v1732_v59 = vsel %vm1728_vm3, %v1699_v55, %v5556_v54 }
 0x17f   : > { %1246 = vrot.lane.b32.xlu1 %v558_v24, %s4990_s14  ;;  %1500 = vrot.lane.b32.xlu0 %v622_v34, %s4992_s22  ;;  %v623_v24 = vld [vmem:[#allocation2 + $0xe1] sm:$0xff]  ;;  %v1765_v0 = vsel %vm1761_vm5, %v1732_v59, %v5698_v30  ;;  %v1733_v38 = vsel %vm1728_vm3, %v1700_v18, %v5552_v4  ;;  %v627_v59 = vld [vmem:[#allocation2 + $0x111] sm:$0xff] }
 0x180   : > { %v1798_v48 = vsel %vm1794_vm6, %v1765_v0, %v5812_v51  ;;  %v625_v51 = vld [vmem:[#allocation2 + $0xf9] sm:$0xff] }
 0x181   : > { %v1601_v37 = vpop.permute.xlu1 %1600  ;;  %v1223_v58 = vpop.permute.xlu0 %1222 }
 0x182   : > { %v1927_v31 = vsel %vm1926_vm9, %v1894_v40, %v1601_v37  ;;  %v1831_v40 = vsel %vm1827_vm7, %v1798_v48, %v1223_v58 }
 0x183   : > { %1374 = vrot.lane.b32.xlu1 %v5510_v47, %s4991_s20  ;;  %4730 = vmatprep.mubr.msk.f32.mxu0 %vm1971_vm11, %v1927_v31 }
 0x184   : > { %1502 = vrot.lane.b32.xlu0 %v623_v24, %s4992_s22 }
 0x185   : > { %v1603_v14 = vpop.permute.xlu1 %1602  ;;  %v1351_v11 = vpop.permute.xlu0 %1350 }
 0x186   : > { %v1928_v16 = vsel %vm1926_vm9, %v1895_v35, %v1603_v14  ;;  %v1864_v30 = vsel %vm1860_vm8, %v1831_v40, %v1351_v11  ;;  %v656_v35 = vld [vmem:[#allocation2 + $0xf2] sm:$0xff]  ;;  %v1766_v14 = vsel %vm1761_vm5, %v1733_v38, %v5692_v27  ;;  %v657_v11 = vld [vmem:[#allocation2 + $0xfa] sm:$0xff] }
 0x187   : > { %1120 = vrot.lane.b32.xlu1 %v622_v34, %s4989_s21  ;;  %4731 = vmatmul.mubr.msk.f32.vlgmr.msra.gmra.mxu0 %vm1971_vm11, %v1928_v16  ;;  %v1764_v34 = vsel %vm1761_vm5, %v1731_v20, %v5684_v32  ;;  %v1799_v16 = vsel %vm1794_vm6, %v1766_v14, %v5806_v36 }
 0x188   : > { %1122 = vrot.lane.b32.xlu0 %v623_v24, %s4989_s21  ;;  %v1797_v42 = vsel %vm1794_vm6, %v1764_v34, %v5802_v29 }
 0x189   : > { %v1349_v47 = vpop.permute.xlu1 %1348  ;;  %v1479_v7 = vpop.permute.xlu0 %1478  ;;  %v1830_v44 = vsel %vm1827_vm7, %v1797_v42, %v1221_v43  ;;  %v624_v43 = vld [vmem:[#allocation2 + $0xf1] sm:$0xff] }
 0x18a   : > { %v1863_v32 = vsel %vm1860_vm8, %v1830_v44, %v1349_v47  ;;  %v1897_v37 = vsel %vm1893_vm10, %v1864_v30, %v1479_v7 }
 0x18b   : > { %1628 = vrot.lane.b32.xlu1 %v654_v39, %s4993_s23 }
 0x18c   : > { %1630 = vrot.lane.b32.xlu0 %v655_v17, %s4993_s23 }
 0x18d   : > { %v1477_v12 = vpop.permute.xlu1 %1476  ;;  %v1225_v50 = vpop.permute.xlu0 %1224 }
 0x18e   : > { %v1896_v63 = vsel %vm1893_vm10, %v1863_v32, %v1477_v12  ;;  %v1832_v53 = vsel %vm1827_vm7, %v1799_v16, %v1225_v50  ;;  %v7664_v12 = vld [vmem:[#allocation27_spill] sm:$0xff] }
 0x18f   : > { %1248 = vrot.lane.b32.xlu1 %v654_v39, %s4990_s14  ;;  %v7663_v39 = vld [vmem:[#allocation8_spill] sm:$0xff]  ;;  %v7665_v32 = vld [vmem:[#allocation7_spill] sm:$0xff] }
 0x190   : > { %1376 = vrot.lane.b32.xlu0 %v5500_v23, %s4991_s20  ;;  %v1701_v46 = vsel %vm308_vm0, %v5426_v60, %v7663_v39  ;;  %v1702_v0 = vsel %vm308_vm0, %v5416_v57, %v7665_v32  ;;  %v628_v16 = vld [vmem:[#allocation2 + $0x121] sm:$0xff] }
 0x191   : > { %v1605_v29 = vpop.permute.xlu1 %1604  ;;  %v1227_v54 = vpop.permute.xlu0 %1226  ;;  %v1734_v4 = vsel %vm1728_vm3, %v1701_v46, %v5563_v49  ;;  %v1735_v48 = vsel %vm1728_vm3, %v1702_v0, %v5558_v62  ;;  %v598_v0 = vld [vmem:[#allocation2 + $0x138] sm:$0xff] }
 0x192   : > { %v1929_v56 = vsel %vm1926_vm9, %v1896_v63, %v1605_v29  ;;  %v7666_v29 = vld [vmem:[#allocation32_spill] sm:$0xff] }
 0x193   : > { %1250 = vrot.lane.b32.xlu1 %v655_v17, %s4990_s14  ;;  %4733 = vmatprep.mubr.msk.f32.mxu0 %vm1971_vm11, %v1929_v56  ;;  %v1767_v17 = vsel %vm1761_vm5, %v1734_v4, %v5706_v5  ;;  %v1768_v56 = vsel %vm1761_vm5, %v1735_v48, %v5700_v8  ;;  %v597_v4 = vld [vmem:[#allocation2 + $0x128] sm:$0xff] }
 0x194   : > { %1504 = vrot.lane.b32.xlu0 %v624_v43, %s4992_s22  ;;  %v1800_v60 = vsel %vm1794_vm6, %v1767_v17, %v5820_v22  ;;  %v626_v22 = vld [vmem:[#allocation2 + $0x109] sm:$0xff]  ;;  %v1801_v40 = vsel %vm1794_vm6, %v1768_v56, %v5814_v6 }
 0x195   : > { %v1607_v23 = vpop.permute.xlu1 %1606  ;;  %v1355_v31 = vpop.permute.xlu0 %1354  ;;  %v1833_v20 = vsel %vm1827_vm7, %v1800_v60, %v1227_v54  ;;  %v7667_v54 = vld [vmem:[#allocation10_spill] sm:$0xff] }
 0x196   : > { %v1930_v33 = vsel %vm1926_vm9, %v1897_v37, %v1607_v23  ;;  %v1866_v49 = vsel %vm1860_vm8, %v1833_v20, %v1355_v31  ;;  %v1703_v57 = vsel %vm308_vm0, %v5438_v1, %v7667_v54  ;;  %v658_v23 = vld [vmem:[#allocation2 + $0x10a] sm:$0xff]  ;;  %v630_v54 = vld [vmem:[#allocation2 + $0x139] sm:$0xff] }
 0x197   : > { %1378 = vrot.lane.b32.xlu1 %v5522_v45, %s4991_s20  ;;  %4734 = vmatmul.mubr.msk.f32.gmra.mxu0 %vm1971_vm11, %v1930_v33  ;;  %v1736_v62 = vsel %vm1728_vm3, %v1703_v57, %v5570_v19  ;;  %v7673_v57 = vld [vmem:[#allocation14_spill] sm:$0xff] }
 0x198   : > { %1506 = vrot.lane.b32.xlu0 %v625_v51, %s4992_s22  ;;  %v1769_v33 = vsel %vm1761_vm5, %v1736_v62, %v5713_v10 }
 0x199   : > { %v1353_v24 = vpop.permute.xlu1 %1352  ;;  %v1483_v58 = vpop.permute.xlu0 %1482  ;;  %v1802_v1 = vsel %vm1794_vm6, %v1769_v33, %v5827_v52  ;;  %v596_v52 = vld [vmem:[#allocation2 + $0x120] sm:$0xff]  ;;  %v7676_v33 = vld [vmem:[#allocation81_spill] sm:$0xff] }
 0x19a   : > { %v1865_v27 = vsel %vm1860_vm8, %v1832_v53, %v1353_v24  ;;  %v1899_v5 = vsel %vm1893_vm10, %v1866_v49, %v1483_v58  ;;  %v659_v24 = vld [vmem:[#allocation2 + $0x112] sm:$0xff]  ;;  %v7669_v53 = vld [vmem:[#allocation36_spill] sm:$0xff] }
 0x19b   : > { %1124 = vrot.lane.b32.xlu1 %v624_v43, %s4989_s21 }
 0x19c   : > { %1126 = vrot.lane.b32.xlu0 %v625_v51, %s4989_s21 }
 0x19d   : > { %v1481_v45 = vpop.permute.xlu1 %1480  ;;  %v1229_v47 = vpop.permute.xlu0 %1228 }
 0x19e   : > { %v1898_v36 = vsel %vm1893_vm10, %v1865_v27, %v1481_v45  ;;  %v1834_v30 = vsel %vm1827_vm7, %v1801_v40, %v1229_v47  ;;  %v7670_v27 = vld [vmem:[#allocation12_spill] sm:$0xff] }
 0x19f   : > { %1632 = vrot.lane.b32.xlu1 %v656_v35, %s4993_s23  ;;  %v1705_v17 = vsel %vm308_vm0, %v5450_v21, %v7670_v27 }
 0x1a0   : > { %1634 = vrot.lane.b32.xlu0 %v657_v11, %s4993_s23 }
 0x1a1   : > { %v1609_v9 = vpop.permute.xlu1 %1608  ;;  %v1231_v34 = vpop.permute.xlu0 %1230 }
 0x1a2   : > { %v1931_v7 = vsel %vm1926_vm9, %v1898_v36, %v1609_v9  ;;  %v1835_v18 = vsel %vm1827_vm7, %v1802_v1, %v1231_v34  ;;  %v7677_v1 = vld [vmem:[#allocation61_spill] sm:$0xff] }
 0x1a3   : > { %1252 = vrot.lane.b32.xlu1 %v656_v35, %s4990_s14  ;;  %4736 = vmatprep.mubr.msk.f32.mxu0 %vm1971_vm11, %v1931_v7  ;;  %v629_v7 = vld [vmem:[#allocation2 + $0x129] sm:$0xff] }
 0x1a4   : > { %1380 = vrot.lane.b32.xlu0 %v7664_v12, %s4991_s20 }
 0x1a5   : > { %v1611_v42 = vpop.permute.xlu1 %1610  ;;  %v1359_v44 = vpop.permute.xlu0 %1358 }
 0x1a6   : > { %v1932_v55 = vsel %vm1926_vm9, %v1899_v5, %v1611_v42  ;;  %v1868_v10 = vsel %vm1860_vm8, %v1835_v18, %v1359_v44 }
 0x1a7   : > { %1254 = vrot.lane.b32.xlu1 %v657_v11, %s4990_s14  ;;  %4737 = vmatmul.mubr.msk.f32.gmra.mxu0 %vm1971_vm11, %v1932_v55  ;;  %v7668_v11 = vld [vmem:[#allocation9_spill] sm:$0xff] }
 0x1a8   : > { %1508 = vrot.lane.b32.xlu0 %v626_v22, %s4992_s22  ;;  %v1704_v39 = vsel %vm308_vm0, %v5428_v61, %v7668_v11  ;;  %v1738_v61 = vsel %vm1728_vm3, %v1705_v17, %v5578_v25  ;;  %v600_v17 = vld [vmem:[#allocation2 + $0x150] sm:$0xff] }
 0x1a9   : > { %v1357_v50 = vpop.permute.xlu1 %1356  ;;  %v1487_v63 = vpop.permute.xlu0 %1486  ;;  %v1737_v47 = vsel %vm1728_vm3, %v1704_v39, %v7669_v53  ;;  %v1771_v20 = vsel %vm1761_vm5, %v1738_v61, %v5721_v41  ;;  %v7678_v61 = vld [vmem:[#allocation13_spill] sm:$0xff] }
 0x1aa   : > { %v1867_v8 = vsel %vm1860_vm8, %v1834_v30, %v1357_v50  ;;  %v1901_v58 = vsel %vm1893_vm10, %v1868_v10, %v1487_v63  ;;  %v1770_v36 = vsel %vm1761_vm5, %v1737_v47, %v5708_v26  ;;  %v1804_v21 = vsel %vm1794_vm6, %v1771_v20, %v5834_v15  ;;  %v661_v50 = vld [vmem:[#allocation2 + $0x12a] sm:$0xff]  ;;  %v663_v47 = vld [vmem:[#allocation2 + $0x142] sm:$0xff]  ;;  %v7679_v20 = vld [vmem:[#allocation38_spill] sm:$0xff] }
 0x1ab   : > { %1382 = vrot.lane.b32.xlu1 %v7666_v29, %s4991_s20  ;;  %v1803_v60 = vsel %vm1794_vm6, %v1770_v36, %v5822_v13  ;;  %v7671_v29 = vld [vmem:[#allocation11_spill] sm:$0xff]  ;;  %v1707_v30 = vsel %vm308_vm0, %v5462_v28, %v7673_v57 }
 0x1ac   : > { %1510 = vrot.lane.b32.xlu0 %v627_v59, %s4992_s22  ;;  %v1706_v48 = vsel %vm308_vm0, %v5440_v2, %v7671_v29 }
 0x1ad   : > { %v1485_v43 = vpop.permute.xlu1 %1484  ;;  %v1233_v37 = vpop.permute.xlu0 %1232 }
 0x1ae   : > { %v1900_v6 = vsel %vm1893_vm10, %v1867_v8, %v1485_v43  ;;  %v1836_v34 = vsel %vm1827_vm7, %v1803_v60, %v1233_v37  ;;  %v7672_v43 = vld [vmem:[#allocation37_spill] sm:$0xff]  ;;  %v7674_v37 = vld [vmem:[#allocation59_spill] sm:$0xff] }
 0x1af   : > { %1128 = vrot.lane.b32.xlu1 %v626_v22, %s4989_s21  ;;  %v660_v22 = vld [vmem:[#allocation2 + $0x122] sm:$0xff]  ;;  %v1739_v40 = vsel %vm1728_vm3, %v1706_v48, %v7672_v43 }
 0x1b0   : > { %1130 = vrot.lane.b32.xlu0 %v627_v59, %s4989_s21  ;;  %v1772_v62 = vsel %vm1761_vm5, %v1739_v40, %v7674_v37 }
 0x1b1   : > { %v1613_v51 = vpop.permute.xlu1 %1612  ;;  %v1235_v19 = vpop.permute.xlu0 %1234 }
 0x1b2   : > { %v1933_v31 = vsel %vm1926_vm9, %v1900_v6, %v1613_v51  ;;  %v1837_v25 = vsel %vm1827_vm7, %v1804_v21, %v1235_v19  ;;  %v1805_v6 = vsel %vm1794_vm6, %v1772_v62, %v7676_v33  ;;  %v599_v51 = vld [vmem:[#allocation2 + $0x140] sm:$0xff]  ;;  %v4903_v21 = vld [vmem:[#allocation2 + $0x98] sm:$0xff] }
 0x1b3   : > { %1636 = vrot.lane.b32.xlu1 %v658_v23, %s4993_s23  ;;  %4739 = vmatprep.mubr.msk.f32.mxu0 %vm1971_vm11, %v1933_v31  ;;  %v631_v19 = vld [vmem:[#allocation2 + $0x141] sm:$0xff]  ;;  %v664_v62 = vld [vmem:[#allocation2 + $0x152] sm:$0xff] }
 0x1b4   : > { %1638 = vrot.lane.b32.xlu0 %v659_v24, %s4993_s23 }
 0x1b5   : > { %v1615_v38 = vpop.permute.xlu1 %1614  ;;  %v1363_v14 = vpop.permute.xlu0 %1362 }
 0x1b6   : > { %v1934_v35 = vsel %vm1926_vm9, %v1901_v58, %v1615_v38  ;;  %v1870_v41 = vsel %vm1860_vm8, %v1837_v25, %v1363_v14 }
 0x1b7   : > { %1256 = vrot.lane.b32.xlu1 %v658_v23, %s4990_s14  ;;  %4740 = vmatmul.mubr.msk.f32.gmra.mxu0 %vm1971_vm11, %v1934_v35  ;;  %v7675_v23 = vld [vmem:[#allocation39_spill] sm:$0xff] }
 0x1b8   : > { %1384 = vrot.lane.b32.xlu0 %v596_v52, %s4991_s20  ;;  %v1740_v2 = vsel %vm1728_vm3, %v1707_v30, %v7675_v23  ;;  %v665_v23 = vld [vmem:[#allocation2 + $0x15a] sm:$0xff] }
 0x1b9   : > { %v1361_v45 = vpop.permute.xlu1 %1360  ;;  %v1491_v46 = vpop.permute.xlu0 %1490  ;;  %v1773_v31 = vsel %vm1761_vm5, %v1740_v2, %v7677_v1  ;;  %v4904_v1 = vld [vmem:[#allocation2 + $0xa8] sm:$0xff] }
 0x1ba   : > { %v1869_v26 = vsel %vm1860_vm8, %v1836_v34, %v1361_v45  ;;  %v1903_v42 = vsel %vm1893_vm10, %v1870_v41, %v1491_v46  ;;  %v662_v46 = vld [vmem:[#allocation2 + $0x13a] sm:$0xff] }
 0x1bb   : > { %1258 = vrot.lane.b32.xlu1 %v659_v24, %s4990_s14 }
 0x1bc   : > { %1512 = vrot.lane.b32.xlu0 %v628_v16, %s4992_s22 }
 0x1bd   : > { %v1489_v9 = vpop.permute.xlu1 %1488  ;;  %v6007_v49 = vpop.permute.xlu0 %1110 }
 0x1be   : > { %v1902_v5 = vsel %vm1893_vm10, %v1869_v26, %v1489_v9  ;;  %v1806_v18 = vsel %vm1794_vm6, %v1773_v31, %v6007_v49  ;;  %v4902_v9 = vld [vmem:[#allocation2 + $0x90] sm:$0xff]  ;;  %v7684_v31 = vld [vmem:[#allocation15_spill] sm:$0xff] }
 0x1bf   : > { %1386 = vrot.lane.b32.xlu1 %v597_v4, %s4991_s20  ;;  %v1708_v60 = vsel %vm308_vm0, %v4902_v9, %v7678_v61  ;;  %v632_v49 = vld [vmem:[#allocation2 + $0x151] sm:$0xff] }
 0x1c0   : > { %1514 = vrot.lane.b32.xlu0 %v629_v7, %s4992_s22  ;;  %v1741_v34 = vsel %vm1728_vm3, %v1708_v60, %v7679_v20  ;;  %v7680_v26 = vld [vmem:[#allocation16_spill] sm:$0xff] }
 0x1c1   : > { %v1617_v13 = vpop.permute.xlu1 %1616  ;;  %v1619_v55 = vpop.permute.xlu0 %1618  ;;  %v1709_v25 = vsel %vm308_vm0, %v4903_v21, %v7680_v26 }
 0x1c2   : > { %v1935_v12 = vsel %vm1926_vm9, %v1902_v5, %v1617_v13  ;;  %v1936_v15 = vsel %vm1926_vm9, %v1903_v42, %v1619_v55  ;;  %v7681_v5 = vld [vmem:[#allocation60_spill] sm:$0xff] }
 0x1c3   : > { %1132 = vrot.lane.b32.xlu1 %v628_v16, %s4989_s21  ;;  %4742 = vmatprep.mubr.msk.f32.mxu0 %vm1971_vm11, %v1935_v12  ;;  %v1774_v13 = vsel %vm1761_vm5, %v1741_v34, %v7681_v5  ;;  %v7682_v12 = vld [vmem:[#allocation41_spill] sm:$0xff]  ;;  %v666_v5 = vld [vmem:[#allocation2 + $0x16a] sm:$0xff] }
 0x1c4   : > { %1134 = vrot.lane.b32.xlu0 %v629_v7, %s4989_s21  ;;  %4743 = vmatmul.mubr.msk.f32.gmra.mxu0 %vm1971_vm11, %v1936_v15  ;;  %v1742_v42 = vsel %vm1728_vm3, %v1709_v25, %v7682_v12  ;;  %v601_v15 = vld [vmem:[#allocation2 + $0x158] sm:$0xff] }
 0x1c5   : > { %v1237_v44 = vpop.permute.xlu1 %1236  ;;  %v1365_v59 = vpop.permute.xlu0 %1364 }
 0x1c6   : > { %v1838_v24 = vsel %vm1827_vm7, %v1805_v6, %v1237_v44  ;;  %v602_v6 = vld [vmem:[#allocation2 + $0x168] sm:$0xff] }
 0x1c7   : > { %1640 = vrot.lane.b32.xlu1 %v660_v22, %s4993_s23  ;;  %v1871_v38 = vsel %vm1860_vm8, %v1838_v24, %v1365_v59  ;;  %v1710_v24 = vsel %vm308_vm0, %v4904_v1, %v7684_v31 }
 0x1c8   : > { %1642 = vrot.lane.b32.xlu0 %v661_v50, %s4993_s23 }
 0x1c9   : > { %v1239_v32 = vpop.permute.xlu1 %1238  ;;  %v1493_v63 = vpop.permute.xlu0 %1492 }
 0x1ca   : > { %v1839_v10 = vsel %vm1827_vm7, %v1806_v18, %v1239_v32  ;;  %v1904_v52 = vsel %vm1893_vm10, %v1871_v38, %v1493_v63  ;;  %v7685_v18 = vld [vmem:[#allocation40_spill] sm:$0xff]  ;;  %v7686_v38 = vld [vmem:[#allocation18_spill] sm:$0xff] }
 0x1cb   : > { %1260 = vrot.lane.b32.xlu1 %v660_v22, %s4990_s14  ;;  %v7683_v22 = vld [vmem:[#allocation63_spill] sm:$0xff] }
 0x1cc   : > { %1388 = vrot.lane.b32.xlu0 %v598_v0, %s4991_s20  ;;  %v1775_v44 = vsel %vm1761_vm5, %v1742_v42, %v7683_v22  ;;  %v633_v0 = vld [vmem:[#allocation2 + $0x159] sm:$0xff] }
 0x1cd   : > { %v1367_v56 = vpop.permute.xlu1 %1366  ;;  %v1495_v8 = vpop.permute.xlu0 %1494  ;;  %v4906_v22 = vld [vmem:[#allocation2 + $0xc0] sm:$0xff] }
 0x1ce   : > { %v1872_v35 = vsel %vm1860_vm8, %v1839_v10, %v1367_v56  ;;  %v634_v10 = vld [vmem:[#allocation2 + $0x169] sm:$0xff] }
 0x1cf   : > { %1262 = vrot.lane.b32.xlu1 %v661_v50, %s4990_s14  ;;  %v1905_v16 = vsel %vm1893_vm10, %v1872_v35, %v1495_v8 }
 0x1d0   : > { %1516 = vrot.lane.b32.xlu0 %v630_v54, %s4992_s22 }
 0x1d1   : > { %v1113_v28 = vpop.permute.xlu1 %1112  ;;  %v1115_v58 = vpop.permute.xlu0 %1114 }
 0x1d2   : > { %v1807_v55 = vsel %vm1794_vm6, %v1774_v13, %v1113_v28  ;;  %v1808_v32 = vsel %vm1794_vm6, %v1775_v44, %v1115_v58  ;;  %v4905_v58 = vld [vmem:[#allocation2 + $0xb0] sm:$0xff] }
 0x1d3   : > { %1390 = vrot.lane.b32.xlu1 %v599_v51, %s4991_s20  ;;  %v1711_v35 = vsel %vm308_vm0, %v4905_v58, %v7686_v38  ;;  %v7690_v44 = vld [vmem:[#allocation17_spill] sm:$0xff] }
 0x1d4   : > { %1518 = vrot.lane.b32.xlu0 %v631_v19, %s4992_s22 }
 0x1d5   : > { %v1621_v14 = vpop.permute.xlu1 %1620  ;;  %v1623_v11 = vpop.permute.xlu0 %1622 }
 0x1d6   : > { %v1937_v45 = vsel %vm1926_vm9, %v1904_v52, %v1621_v14  ;;  %v1938_v39 = vsel %vm1926_vm9, %v1905_v16, %v1623_v11  ;;  %v7687_v52 = vld [vmem:[#allocation62_spill] sm:$0xff]  ;;  %v7688_v16 = vld [vmem:[#allocation43_spill] sm:$0xff] }
 0x1d7   : > { %1136 = vrot.lane.b32.xlu1 %v630_v54, %s4989_s21  ;;  %4745 = vmatprep.mubr.msk.f32.mxu0 %vm1971_vm11, %v1937_v45  ;;  %v1744_v11 = vsel %vm1728_vm3, %v1711_v35, %v7688_v16 }
 0x1d8   : > { %1138 = vrot.lane.b32.xlu0 %v631_v19, %s4989_s21  ;;  %4746 = vmatmul.mubr.msk.f32.gmra.mxu0 %vm1971_vm11, %v1938_v39  ;;  %v1743_v19 = vsel %vm1728_vm3, %v1710_v24, %v7685_v18 }
 0x1d9   : > { %v1241_v53 = vpop.permute.xlu1 %1240  ;;  %v1369_v4 = vpop.permute.xlu0 %1368  ;;  %v1776_v14 = vsel %vm1761_vm5, %v1743_v19, %v7687_v52  ;;  %v668_v52 = vld [vmem:[#allocation2 + $0x182] sm:$0xff] }
 0x1da   : > { %v1840_v50 = vsel %vm1827_vm7, %v1807_v55, %v1241_v53  ;;  %v7689_v53 = vld [vmem:[#allocation65_spill] sm:$0xff]  ;;  %v604_v55 = vld [vmem:[#allocation2 + $0x180] sm:$0xff] }
 0x1db   : > { %1644 = vrot.lane.b32.xlu1 %v662_v46, %s4993_s23  ;;  %v1873_v48 = vsel %vm1860_vm8, %v1840_v50, %v1369_v4  ;;  %v1712_v50 = vsel %vm308_vm0, %v4906_v22, %v7690_v44 }
 0x1dc   : > { %1646 = vrot.lane.b32.xlu0 %v663_v47, %s4993_s23 }
 0x1dd   : > { %v1243_v27 = vpop.permute.xlu1 %1242  ;;  %v1497_v36 = vpop.permute.xlu0 %1496 }
 0x1de   : > { %v1841_v63 = vsel %vm1827_vm7, %v1808_v32, %v1243_v27  ;;  %v1906_v43 = vsel %vm1893_vm10, %v1873_v48, %v1497_v36  ;;  %v635_v36 = vld [vmem:[#allocation2 + $0x171] sm:$0xff]  ;;  %v7691_v32 = vld [vmem:[#allocation42_spill] sm:$0xff] }
 0x1df   : > { %1264 = vrot.lane.b32.xlu1 %v662_v46, %s4990_s14  ;;  %v603_v46 = vld [vmem:[#allocation2 + $0x170] sm:$0xff] }
 0x1e0   : > { %1392 = vrot.lane.b32.xlu0 %v600_v17, %s4991_s20  ;;  %v7692_v48 = vld [vmem:[#allocation20_spill] sm:$0xff] }
 0x1e1   : > { %v1371_v7 = vpop.permute.xlu1 %1370  ;;  %v1499_v41 = vpop.permute.xlu0 %1498 }
 0x1e2   : > { %v1874_v56 = vsel %vm1860_vm8, %v1841_v63, %v1371_v7  ;;  %v636_v63 = vld [vmem:[#allocation2 + $0x181] sm:$0xff] }
 0x1e3   : > { %1266 = vrot.lane.b32.xlu1 %v663_v47, %s4990_s14  ;;  %v1907_v57 = vsel %vm1893_vm10, %v1874_v56, %v1499_v41  ;;  %v1777_v47 = vsel %vm1761_vm5, %v1744_v11, %v7689_v53  ;;  %v667_v41 = vld [vmem:[#allocation2 + $0x172] sm:$0xff] }
 0x1e4   : > { %1520 = vrot.lane.b32.xlu0 %v632_v49, %s4992_s22  ;;  %v4908_v53 = vld [vmem:[#allocation2 + $0xd8] sm:$0xff] }
 0x1e5   : > { %v1117_v59 = vpop.permute.xlu1 %1116  ;;  %v1119_v29 = vpop.permute.xlu0 %1118 }
 0x1e6   : > { %v1809_v39 = vsel %vm1794_vm6, %v1776_v14, %v1117_v59  ;;  %v1810_v17 = vsel %vm1794_vm6, %v1777_v47, %v1119_v29  ;;  %v4907_v29 = vld [vmem:[#allocation2 + $0xc8] sm:$0xff] }
 0x1e7   : > { %1394 = vrot.lane.b32.xlu1 %v601_v15, %s4991_s20  ;;  %v1713_v56 = vsel %vm308_vm0, %v4907_v29, %v7692_v48  ;;  %v7696_v47 = vld [vmem:[#allocation19_spill] sm:$0xff]  ;;  %v2435_v48 = vld [vmem:[#allocation3 + $0x1] sm:$0xff] }
 0x1e8   : > { %1522 = vrot.lane.b32.xlu0 %v633_v0, %s4992_s22 }
 0x1e9   : > { %v1625_v40 = vpop.permute.xlu1 %1624  ;;  %v1627_v30 = vpop.permute.xlu0 %1626 }
 0x1ea   : > { %v1939_v54 = vsel %vm1926_vm9, %v1906_v43, %v1625_v40  ;;  %v1940_v37 = vsel %vm1926_vm9, %v1907_v57, %v1627_v30  ;;  %v7693_v43 = vld [vmem:[#allocation64_spill] sm:$0xff]  ;;  %v7694_v57 = vld [vmem:[#allocation45_spill] sm:$0xff] }
 0x1eb   : > { %1140 = vrot.lane.b32.xlu1 %v632_v49, %s4989_s21  ;;  %4748 = vmatprep.mubr.msk.f32.mxu0 %vm1971_vm11, %v1939_v54  ;;  %v1746_v30 = vsel %vm1728_vm3, %v1713_v56, %v7694_v57 }
 0x1ec   : > { %1142 = vrot.lane.b32.xlu0 %v633_v0, %s4989_s21  ;;  %4749 = vmatmul.mubr.msk.f32.gmra.mxu0 %vm1971_vm11, %v1940_v37  ;;  %v1745_v0 = vsel %vm1728_vm3, %v1712_v50, %v7691_v32  ;;  %v639_v32 = vld [vmem:[#allocation2 + $0x1a1] sm:$0xff] }
 0x1ed   : > { %v1245_v8 = vpop.permute.xlu1 %1244  ;;  %v1373_v2 = vpop.permute.xlu0 %1372  ;;  %v1778_v40 = vsel %vm1761_vm5, %v1745_v0, %v7693_v43 }
 0x1ee   : > { %v1842_v4 = vsel %vm1827_vm7, %v1809_v39, %v1245_v8  ;;  %v7695_v8 = vld [vmem:[#allocation67_spill] sm:$0xff]  ;;  %v606_v39 = vld [vmem:[#allocation2 + $0x198] sm:$0xff] }
 0x1ef   : > { %1648 = vrot.lane.b32.xlu1 %v664_v62, %s4993_s23  ;;  %v1875_v60 = vsel %vm1860_vm8, %v1842_v4, %v1373_v2  ;;  %v1714_v4 = vsel %vm308_vm0, %v4908_v53, %v7696_v47 }
 0x1f0   : > { %1650 = vrot.lane.b32.xlu0 %v665_v23, %s4993_s23 }
 0x1f1   : > { %v1247_v33 = vpop.permute.xlu1 %1246  ;;  %v1501_v51 = vpop.permute.xlu0 %1500 }
 0x1f2   : > { %v1843_v9 = vsel %vm1827_vm7, %v1810_v17, %v1247_v33  ;;  %v1908_v20 = vsel %vm1893_vm10, %v1875_v60, %v1501_v51  ;;  %v637_v51 = vld [vmem:[#allocation2 + $0x189] sm:$0xff]  ;;  %v7698_v60 = vld [vmem:[#allocation22_spill] sm:$0xff] }
 0x1f3   : > { %1268 = vrot.lane.b32.xlu1 %v664_v62, %s4990_s14  ;;  %v605_v62 = vld [vmem:[#allocation2 + $0x188] sm:$0xff] }
 0x1f4   : > { %1396 = vrot.lane.b32.xlu0 %v602_v6, %s4991_s20  ;;  %v7697_v17 = vld [vmem:[#allocation44_spill] sm:$0xff] }
 0x1f5   : > { %v1375_v28 = vpop.permute.xlu1 %1374 }
 0x1f6   : > { %v1503_v45 = vpop.permute.xlu0 %1502  ;;  %v1876_v7 = vsel %vm1860_vm8, %v1843_v9, %v1375_v28  ;;  %v638_v9 = vld [vmem:[#allocation2 + $0x199] sm:$0xff] }
 0x1f7   : > { %1270 = vrot.lane.b32.xlu1 %v665_v23, %s4990_s14  ;;  %v1909_v21 = vsel %vm1893_vm10, %v1876_v7, %v1503_v45  ;;  %v1779_v23 = vsel %vm1761_vm5, %v1746_v30, %v7695_v8  ;;  %v669_v45 = vld [vmem:[#allocation2 + $0x18a] sm:$0xff]  ;;  %v2467_v30 = vld [vmem:[#allocation3 + $0x2] sm:$0xff] }
 0x1f8   : > { %1524 = vrot.lane.b32.xlu0 %v634_v10, %s4992_s22 }
 0x1f9   : > { %v1121_v27 = vpop.permute.xlu1 %1120 }
 0x1fa   : > { %v1123_v61 = vpop.permute.xlu0 %1122  ;;  %v1811_v37 = vsel %vm1794_vm6, %v1778_v40, %v1121_v27 }
 0x1fb   : > { %1398 = vrot.lane.b32.xlu1 %v603_v46, %s4991_s20  ;;  %v1812_v6 = vsel %vm1794_vm6, %v1779_v23, %v1123_v61  ;;  %v4909_v61 = vld [vmem:[#allocation2 + $0xe0] sm:$0xff] }
 0x1fc   : > { %1526 = vrot.lane.b32.xlu0 %v635_v36, %s4992_s22  ;;  %v1715_v7 = vsel %vm308_vm0, %v4909_v61, %v7698_v60 }
 0x1fd   : > { %v1629_v34 = vpop.permute.xlu1 %1628 }
 0x1fe   : > { %v1941_v49 = vsel %vm1926_vm9, %v1908_v20, %v1629_v34  ;;  %v1631_v26 = vpop.permute.xlu0 %1630  ;;  %v7699_v20 = vld [vmem:[#allocation66_spill] sm:$0xff] }
 0x1ff   : > { %1144 = vrot.lane.b32.xlu1 %v634_v10, %s4989_s21  ;;  %4751 = vmatprep.mubr.msk.f32.mxu0 %vm1971_vm11, %v1941_v49  ;;  %v1942_v25 = vsel %vm1926_vm9, %v1909_v21, %v1631_v26  ;;  %v7700_v21 = vld [vmem:[#allocation47_spill] sm:$0xff] }
 0x200   : > { %1146 = vrot.lane.b32.xlu0 %v635_v36, %s4989_s21  ;;  %4752 = vmatmul.mubr.msk.f32.gmra.mxu0 %vm1971_vm11, %v1942_v25  ;;  %v1747_v36 = vsel %vm1728_vm3, %v1714_v4, %v7697_v17  ;;  %v1748_v26 = vsel %vm1728_vm3, %v1715_v7, %v7700_v21 }
 0x201   : > { %v1249_v13 = vpop.permute.xlu1 %1248  ;;  %v1780_v34 = vsel %vm1761_vm5, %v1747_v36, %v7699_v20 }
 0x202   : > { %v1377_v12 = vpop.permute.xlu0 %1376  ;;  %v1844_v2 = vsel %vm1827_vm7, %v1811_v37, %v1249_v13  ;;  %v7701_v13 = vld [vmem:[#allocation69_spill] sm:$0xff] }
 0x203   : > { %1652 = vrot.lane.b32.xlu1 %v666_v5, %s4993_s23  ;;  %v1877_v24 = vsel %vm1860_vm8, %v1844_v2, %v1377_v12  ;;  %v2468_v2 = vld [vmem:[#allocation3 + $0xa] sm:$0xff] }
 0x204   : > { %1654 = vrot.lane.b32.xlu0 %v667_v41, %s4993_s23 }
 0x205   : > { %v1251_v42 = vpop.permute.xlu1 %1250 }
 0x206   : > { %v1505_v15 = vpop.permute.xlu0 %1504  ;;  %v1845_v1 = vsel %vm1827_vm7, %v1812_v6, %v1251_v42  ;;  %v7702_v6 = vld [vmem:[#allocation21_spill] sm:$0xff] }
 0x207   : > { %1272 = vrot.lane.b32.xlu1 %v666_v5, %s4990_s14  ;;  %v1910_v18 = vsel %vm1893_vm10, %v1877_v24, %v1505_v15  ;;  %v607_v5 = vld [vmem:[#allocation2 + $0x1a0] sm:$0xff] }
 0x208   : > { %1400 = vrot.lane.b32.xlu0 %v604_v55, %s4991_s20  ;;  %v670_v15 = vld [vmem:[#allocation2 + $0x19a] sm:$0xff] }
 0x209   : > { %v1379_v59 = vpop.permute.xlu1 %1378 }
 0x20a   : > { %v1507_v54 = vpop.permute.xlu0 %1506  ;;  %v1878_v28 = vsel %vm1860_vm8, %v1845_v1, %v1379_v59 }
 0x20b   : > { %1274 = vrot.lane.b32.xlu1 %v667_v41, %s4990_s14  ;;  %v1911_v58 = vsel %vm1893_vm10, %v1878_v28, %v1507_v54  ;;  %v1781_v41 = vsel %vm1761_vm5, %v1748_v26, %v7701_v13  ;;  %v671_v54 = vld [vmem:[#allocation2 + $0x1a2] sm:$0xff]  ;;  %v4911_v28 = vld [vmem:[#allocation2 + $0xf8] sm:$0xff] }
 0x20c   : > { %1528 = vrot.lane.b32.xlu0 %v636_v63, %s4992_s22  ;;  %v4912_v26 = vld [vmem:[#allocation2 + $0x108] sm:$0xff] }
 0x20d   : > { %v1125_v33 = vpop.permute.xlu1 %1124 }
 0x20e   : > { %v1127_v31 = vpop.permute.xlu0 %1126  ;;  %v1813_v25 = vsel %vm1794_vm6, %v1780_v34, %v1125_v33  ;;  %v4910_v33 = vld [vmem:[#allocation2 + $0xf0] sm:$0xff] }
 0x20f   : > { %1402 = vrot.lane.b32.xlu1 %v605_v62, %s4991_s20  ;;  %v1814_v55 = vsel %vm1794_vm6, %v1781_v41, %v1127_v31  ;;  %v2436_v62 = vld [vmem:[#allocation3 + $0x9] sm:$0xff] }
 0x210   : > { %1530 = vrot.lane.b32.xlu0 %v637_v51, %s4992_s22  ;;  %v7703_v31 = vld [vmem:[#allocation46_spill] sm:$0xff] }
 0x211   : > { %v1633_v19 = vpop.permute.xlu1 %1632  ;;  %v6297_v41 = vld [vmem:[%s7575_s2] ss:$0 sm:$0xff] }
 0x212   : > { %v1943_v10 = vsel %vm1926_vm9, %v1910_v18, %v1633_v19  ;;  %v1635_v38 = vpop.permute.xlu0 %1634  ;;  %v7704_v18 = vld [vmem:[#allocation24_spill] sm:$0xff] }
 0x213   : > { %1148 = vrot.lane.b32.xlu1 %v636_v63, %s4989_s21  ;;  %4754 = vmatprep.mubr.msk.f32.mxu0 %vm1971_vm11, %v1943_v10  ;;  %v1944_v35 = vsel %vm1926_vm9, %v1911_v58, %v1635_v38  ;;  %v1717_v19 = vsel %vm308_vm0, %v4911_v28, %v7704_v18  ;;  %v7705_v10 = vld [vmem:[#allocation68_spill] sm:$0xff] }
 0x214   : > { %1150 = vrot.lane.b32.xlu0 %v637_v51, %s4989_s21  ;;  %4755 = vmatmul.mubr.msk.f32.gmra.mxu0 %vm1971_vm11, %v1944_v35  ;;  %v1716_v51 = vsel %vm308_vm0, %v4910_v33, %v7702_v6  ;;  %v7706_v35 = vld [vmem:[#allocation49_spill] sm:$0xff] }
 0x215   : > { %v1253_v14 = vpop.permute.xlu1 %1252  ;;  %v1749_v24 = vsel %vm1728_vm3, %v1716_v51, %v7703_v31 }
 0x216   : > { %v1381_v16 = vpop.permute.xlu0 %1380  ;;  %v1846_v12 = vsel %vm1827_vm7, %v1813_v25, %v1253_v14  ;;  %v1782_v58 = vsel %vm1761_vm5, %v1749_v24, %v7705_v10  ;;  %v7708_v25 = vld [vmem:[#allocation23_spill] sm:$0xff] }
 0x217   : > { %1656 = vrot.lane.b32.xlu1 %v668_v52, %s4993_s23  ;;  %v1879_v50 = vsel %vm1860_vm8, %v1846_v12, %v1381_v16  ;;  %v7709_v12 = vld [vmem:[#allocation48_spill] sm:$0xff] }
 0x218   : > { %1658 = vrot.lane.b32.xlu0 %v669_v45, %s4993_s23 }
 0x219   : > { %v1255_v11 = vpop.permute.xlu1 %1254 }
 0x21a   : > { %v1509_v46 = vpop.permute.xlu0 %1508  ;;  %v1847_v22 = vsel %vm1827_vm7, %v1814_v55, %v1255_v11  ;;  %v4913_v55 = vld [vmem:[#allocation2 + $0x110] sm:$0xff] }
 0x21b   : > { %1276 = vrot.lane.b32.xlu1 %v668_v52, %s4990_s14  ;;  %v1912_v0 = vsel %vm1893_vm10, %v1879_v50, %v1509_v46  ;;  %v1750_v52 = vsel %vm1728_vm3, %v1717_v19, %v7706_v35 }
 0x21c   : > { %1404 = vrot.lane.b32.xlu0 %v606_v39, %s4991_s20 }
 0x21d   : > { %v1383_v27 = vpop.permute.xlu1 %1382 }
 0x21e   : > { %v1511_v49 = vpop.permute.xlu0 %1510  ;;  %v1880_v59 = vsel %vm1860_vm8, %v1847_v22, %v1383_v27 }
 0x21f   : > { %1278 = vrot.lane.b32.xlu1 %v669_v45, %s4990_s14  ;;  %v1913_v56 = vsel %vm1893_vm10, %v1880_v59, %v1511_v49  ;;  %v7707_v45 = vld [vmem:[#allocation71_spill] sm:$0xff] }
 0x220   : > { %1532 = vrot.lane.b32.xlu0 %v638_v9, %s4992_s22  ;;  %v1783_v16 = vsel %vm1761_vm5, %v1750_v52, %v7707_v45 }
 0x221   : > { %v1129_v42 = vpop.permute.xlu1 %1128 }
 0x222   : > { %v1131_v44 = vpop.permute.xlu0 %1130  ;;  %v1815_v14 = vsel %vm1794_vm6, %v1782_v58, %v1129_v42 }
 0x223   : > { %1406 = vrot.lane.b32.xlu1 %v607_v5, %s4991_s20  ;;  %v1816_v46 = vsel %vm1794_vm6, %v1783_v16, %v1131_v44  ;;  %v1718_v5 = vsel %vm308_vm0, %v4912_v26, %v7708_v25  ;;  %v7711_v44 = vld [vmem:[#allocation70_spill] sm:$0xff] }
 0x224   : > { %1660 = vrot.lane.b32.xlu0 %v670_v15, %s4993_s23  ;;  %v1751_v42 = vsel %vm1728_vm3, %v1718_v5, %v7709_v12  ;;  %v7710_v15 = vld [vmem:[#allocation26_spill] sm:$0xff]  ;;  %v7719_v5 = vld [vmem:[#allocation75_spill] sm:$0xff] }
 0x225   : > { %v1637_v63 = vpop.permute.xlu1 %1636  ;;  %v1719_v22 = vsel %vm308_vm0, %v4913_v55, %v7710_v15  ;;  %v1784_v50 = vsel %vm1761_vm5, %v1751_v42, %v7711_v44  ;;  %v4914_v16 = vld [vmem:[#allocation2 + $0x120] sm:$0xff] }
 0x226   : > { %v1945_v29 = vsel %vm1926_vm9, %v1912_v0, %v1637_v63  ;;  %v1639_v43 = vpop.permute.xlu0 %1638  ;;  %v7712_v0 = vld [vmem:[#allocation51_spill] sm:$0xff] }
 0x227   : > { %1534 = vrot.lane.b32.xlu1 %v639_v32, %s4992_s22  ;;  %4757 = vmatprep.mubr.msk.f32.mxu0 %vm1971_vm11, %v1945_v29  ;;  %v1946_v40 = vsel %vm1926_vm9, %v1913_v56, %v1639_v43  ;;  %v1752_v63 = vsel %vm1728_vm3, %v1719_v22, %v7712_v0  ;;  %v7713_v56 = vld [vmem:[#allocation73_spill] sm:$0xff]  ;;  %v3984_v44 = vld [vmem:[%s7576_s3 + $0x40] sm:$0xff]  ;;  %s4995_s22 = smov 48  }
 0x228   : > { %4758 = vmatmul.mubr.msk.f32.gmra.mxu0 %vm1971_vm11, %v1946_v40  ;;  %2724 = vrot.lane.b32.xlu0 %v2435_v48, %s4987_s19  ;;  %v1785_v43 = vsel %vm1761_vm5, %v1752_v63, %v7713_v56 }
 0x229   : > { %v1257_v57 = vpop.permute.xlu1 %1256  ;;  %4778 = vmatprep.subr.mxu1 %v3984_v44 }
 0x22a   : > { %v1385_v37 = vpop.permute.xlu0 %1384  ;;  %v1848_v11 = vsel %vm1827_vm7, %v1815_v14, %v1257_v57  ;;  %4779 = vmatpush3.msra.mxu1 %v3984_v44 }
 0x22b   : > { %1662 = vrot.lane.b32.xlu1 %v671_v54, %s4993_s23  ;;  %v1881_v4 = vsel %vm1860_vm8, %v1848_v11, %v1385_v37  ;;  %v7714_v11 = vld [vmem:[#allocation25_spill] sm:$0xff] }
 0x22c   : > { %2852 = vrot.lane.b32.xlu0 %v2467_v30, %s4989_s21 }
 0x22d   : > { %v1259_v8 = vpop.permute.xlu1 %1258 }
 0x22e   : > { %v1513_v23 = vpop.permute.xlu0 %1512  ;;  %v1849_v53 = vsel %vm1827_vm7, %v1816_v46, %v1259_v8 }
 0x22f   : > { %2726 = vrot.lane.b32.xlu1 %v2436_v62, %s4987_s19  ;;  %v1914_v17 = vsel %vm1893_vm10, %v1881_v4, %v1513_v23  ;;  %v7715_v4 = vld [vmem:[#allocation50_spill] sm:$0xff] }
 0x231   : > { %v1387_v1 = vpop.permute.xlu1 %1386 }
 0x232   : > { %v1515_v38 = vpop.permute.xlu0 %1514  ;;  %v1882_v27 = vsel %vm1860_vm8, %v1849_v53, %v1387_v1 }
 0x233   : > { %2854 = vrot.lane.b32.xlu1 %v2468_v2, %s4989_s21  ;;  %v1915_v61 = vsel %vm1893_vm10, %v1882_v27, %v1515_v38 }
 0x235   : > { %v1133_v39 = vpop.permute.xlu1 %1132 }
 0x236   : > { %v1135_v47 = vpop.permute.xlu0 %1134  ;;  %v1817_v29 = vsel %vm1794_vm6, %v1784_v50, %v1133_v39  ;;  %v1720_v39 = vsel %vm308_vm0, %v4914_v16, %v7714_v11  ;;  %v3978_v11 = vld [vmem:[%s7576_s3 + $0x10] sm:$0xff] }
 0x237   : > { %v1818_v30 = vsel %vm1794_vm6, %v1785_v43, %v1135_v47  ;;  %v1753_v27 = vsel %vm1728_vm3, %v1720_v39, %v7715_v4  ;;  %v3982_v43 = vld [vmem:[%s7576_s3 + $0x30] sm:$0xff] }
 0x238   : > { %v7721_v39 = vld [vmem:[#allocation52_spill] sm:$0xff] }
 0x239   : > { %v1641_v36 = vpop.permute.xlu1 %1640 }
 0x23a   : > { %v1947_v9 = vsel %vm1926_vm9, %v1914_v17, %v1641_v36  ;;  %v1643_v60 = vpop.permute.xlu0 %1642 }
 0x23b   : > { %4760 = vmatprep.mubr.msk.f32.mxu0 %vm1971_vm11, %v1947_v9  ;;  %v1948_v7 = vsel %vm1926_vm9, %v1915_v61, %v1643_v60  ;;  %v4915_v9 = vld [vmem:[#allocation2 + $0x128] sm:$0xff]  ;;  %v7716_v61 = vld [vmem:[#allocation29_spill] sm:$0xff] }
 0x23c   : > { %4761 = vmatmul.mubr.msk.f32.gmra.mxu0 %vm1971_vm11, %v1948_v7  ;;  %v1721_v60 = vsel %vm308_vm0, %v4915_v9, %v7716_v61  ;;  %v7717_v7 = vld [vmem:[#allocation72_spill] sm:$0xff]  ;;  %v7724_v9 = vld [vmem:[#allocation55_spill] sm:$0xff] }
 0x23d   : > { %v1261_v20 = vpop.permute.xlu1 %1260 }
 0x23e   : > { %v1389_v34 = vpop.permute.xlu0 %1388  ;;  %v1850_v40 = vsel %vm1827_vm7, %v1817_v29, %v1261_v20  ;;  %v1786_v20 = vsel %vm1761_vm5, %v1753_v27, %v7717_v7  ;;  %v7723_v27 = vld [vmem:[#allocation74_spill] sm:$0xff]  ;;  %v3977_v7 = vld [vmem:[%s7576_s3 + $0x8] sm:$0xff] }
 0x23f   : > { %v1883_v2 = vsel %vm1860_vm8, %v1850_v40, %v1389_v34 }
 0x241   : > { %v1263_v49 = vpop.permute.xlu1 %1262 }
 0x242   : > { %v1517_v21 = vpop.permute.xlu0 %1516  ;;  %v1851_v8 = vsel %vm1827_vm7, %v1818_v30, %v1263_v49  ;;  %v7718_v49 = vld [vmem:[#allocation53_spill] sm:$0xff] }
 0x243   : > { %v1916_v51 = vsel %vm1893_vm10, %v1883_v2, %v1517_v21  ;;  %v1754_v21 = vsel %vm1728_vm3, %v1721_v60, %v7718_v49 }
 0x245   : > { %v1391_v13 = vpop.permute.xlu1 %1390 }
 0x246   : > { %v1519_v59 = vpop.permute.xlu0 %1518  ;;  %v1884_v33 = vsel %vm1860_vm8, %v1851_v8, %v1391_v13  ;;  %v1787_v13 = vsel %vm1761_vm5, %v1754_v21, %v7719_v5  ;;  %v3981_v8 = vld [vmem:[%s7576_s3 + $0x28] sm:$0xff] }
 0x247   : > { %v4732_v32 = vpop.f32.mrf.mxu0  ;;  %v1917_v24 = vsel %vm1893_vm10, %v1884_v33, %v1519_v59 }
 0x248   : > { %v2144_v48 = vadd.f32 %v4732_v32, %v6297_v41 }
 0x249   : > { %v2138_v54 = vpop.f32.mrf.mxu0  ;;  %v1137_v57 = vpop.permute.xlu1 %1136 }
 0x24a   : > { %v2298_v37 = vmax.f32 %v2144_v48, 0.0  ;;  %v2139_v62 = vadd.f32 %v6297_v41, %v2138_v54  ;;  %v1139_v23 = vpop.permute.xlu0 %1138  ;;  %v1819_v26 = vsel %vm1794_vm6, %v1786_v20, %v1137_v57  ;;  %v3983_v48 = vld [vmem:[%s7576_s3 + $0x38] sm:$0xff] }
 0x24b   : > { %v1820_v22 = vsel %vm1794_vm6, %v1787_v13, %v1139_v23  ;;  %4780 = vmatprep.subr.mxu1 %v3983_v48  ;;  %v7725_v20 = vld [vmem:[#allocation77_spill] sm:$0xff] }
 0x24c   : > { %2372 = vst.msk [vmem:[#allocation3 + $0x21] sm:$0xff] %vm1728_vm3, %v2298_v37  ;;  %v2297_v6 = vmax.f32 %v2139_v62, 0.0  ;;  %4781 = vmatpush3.msra.mxu1 %v3983_v48 }
 0x24d   : > { %v1645_v1 = vpop.permute.xlu1 %1644  ;;  %4782 = vmatprep.subr.mxu1 %v3982_v43 }
 0x24e   : > { %2371 = vst.msk [vmem:[#allocation3 + $0x19] sm:$0xff] %vm1728_vm3, %v2297_v6  ;;  %v1949_v31 = vsel %vm1926_vm9, %v1916_v51, %v1645_v1  ;;  %v1647_v28 = vpop.permute.xlu0 %1646  ;;  %4783 = vmatpush3.msra.mxu1 %v3982_v43  ;;  %v3980_v6 = vld [vmem:[%s7576_s3 + $0x20] sm:$0xff] }
 0x24f   : > { %4763 = vmatprep.mubr.msk.f32.mxu0 %vm1971_vm11, %v1949_v31  ;;  %v1950_v18 = vsel %vm1926_vm9, %v1917_v24, %v1647_v28  ;;  %4784 = vmatprep.subr.mxu1 %v3981_v8  ;;  %v3979_v28 = vld [vmem:[%s7576_s3 + $0x18] sm:$0xff] }
 0x250   : > { %4764 = vmatmul.mubr.msk.f32.gmra.mxu0 %vm1971_vm11, %v1950_v18  ;;  %4785 = vmatpush3.msra.mxu1 %v3981_v8 }
 0x251   : > { %v1265_v19 = vpop.permute.xlu1 %1264  ;;  %4786 = vmatprep.subr.mxu1 %v3980_v6 }
 0x252   : > { %v1393_v10 = vpop.permute.xlu0 %1392  ;;  %v1852_v12 = vsel %vm1827_vm7, %v1819_v26, %v1265_v19  ;;  %4787 = vmatpush3.msra.mxu1 %v3980_v6 }
 0x253   : > { %v2532_v55 = vld [vmem:[#allocation3 + $0x21] sm:$0xff]  ;;  %v1885_v32 = vsel %vm1860_vm8, %v1852_v12, %v1393_v10  ;;  %4788 = vmatprep.subr.mxu1 %v3979_v28 }
 0x254   : > { %v2564_v37 = vld [vmem:[#allocation3 + $0x22] sm:$0xff]  ;;  %4789 = vmatpush3.msra.mxu1 %v3979_v28 }
 0x255   : > { %v1267_v58 = vpop.permute.xlu1 %1266  ;;  %v6325_v38 = vld [vmem:[#allocation3 + $0x18] sm:$0xff]  ;;  %v6327_v35 = vld [vmem:[#allocation3 + $0x20] sm:$0xff]  ;;  %v4916_v10 = vld [vmem:[#allocation2 + $0x138] sm:$0xff]  ;;  %4790 = vmatprep.subr.mxu1 %v3978_v11 }
 0x256   : > { %2980 = vrot.lane.b32.xlu0 %v6325_v38, %s4991_s20  ;;  %2982 = vrot.lane.b32.xlu1 %v6327_v35, %s4991_s20  ;;  %v1521_v52 = vpop.permute.xlu0 %1520  ;;  %v2531_v47 = vld [vmem:[#allocation3 + $0x19] sm:$0xff]  ;;  %v1853_v50 = vsel %vm1827_vm7, %v1820_v22, %v1267_v58 }
 0x257   : > { %v4735_v14 = vpop.f32.mrf.mxu0  ;;  %v2563_v15 = vld [vmem:[#allocation3 + $0x1a] sm:$0xff]  ;;  %v1918_v63 = vsel %vm1893_vm10, %v1885_v32, %v1521_v52  ;;  %4791 = vmatpush3.msra.mxu1 %v3978_v11 }
 0x258   : > { %v2154_v45 = vadd.f32 %v4735_v14, %v6297_v41  ;;  %v7720_v58 = vld [vmem:[#allocation28_spill] sm:$0xff]  ;;  %4792 = vmatprep.subr.mxu1 %v3977_v7 }
 0x259   : > { %v1395_v46 = vpop.permute.xlu1 %1394  ;;  %v2148_v53 = vpop.f32.mrf.mxu0  ;;  %v1722_v52 = vsel %vm308_vm0, %v4916_v10, %v7720_v58  ;;  %4793 = vmatpush3.msra.mxu1 %v3977_v7  ;;  %v7730_v58 = vld [vmem:[#allocation57_spill] sm:$0xff] }
 0x25a   : > { %v2300_v17 = vmax.f32 %v2154_v45, 0.0  ;;  %v2149_v36 = vadd.f32 %v6297_v41, %v2148_v53  ;;  %3108 = vrot.lane.b32.xlu0 %v2531_v47, %s4993_s23  ;;  %2728 = vrot.lane.b32.xlu1 %v2531_v47, %s4987_s19  ;;  %v1523_v34 = vpop.permute.xlu0 %1522  ;;  %v1886_v0 = vsel %vm1860_vm8, %v1853_v50, %v1395_v46  ;;  %v1755_v46 = vsel %vm1728_vm3, %v1722_v52, %v7721_v39  ;;  %v4917_v53 = vld [vmem:[#allocation2 + $0x140] sm:$0xff] }
 0x25b   : > { %v1919_v40 = vsel %vm1893_vm10, %v1886_v0, %v1523_v34  ;;  %v7722_v47 = vld [vmem:[#allocation31_spill] sm:$0xff] }
 0x25c   : > { %2374 = vst.msk [vmem:[#allocation3 + $0x39] sm:$0xff] %vm1728_vm3, %v2300_v17  ;;  %v2299_v25 = vmax.f32 %v2149_v36, 0.0  ;;  %v1723_v4 = vsel %vm308_vm0, %v4917_v53, %v7722_v47  ;;  %v1788_v17 = vsel %vm1761_vm5, %v1755_v46, %v7723_v27 }
 0x25d   : > { %v6352_v42 = vpop.permute.xlu1 %1140  ;;  %v1756_v61 = vsel %vm1728_vm3, %v1723_v4, %v7724_v9 }
 0x25e   : > { %2373 = vst.msk [vmem:[#allocation3 + $0x31] sm:$0xff] %vm1728_vm3, %v2299_v25  ;;  %3110 = vrot.lane.b32.xlu0 %v2532_v55, %s4993_s23  ;;  %3236 = vrot.lane.b32.xlu1 %v2563_v15, %s4994_s9  ;;  %v6362_v59 = vpop.permute.xlu0 %1142  ;;  %v1821_v60 = vsel %vm1794_vm6, %v1788_v17, %v6352_v42  ;;  %v1789_v34 = vsel %vm1761_vm5, %v1756_v61, %v7725_v20  ;;  %v3976_v25 = vld [vmem:[%s7576_s3] sm:$0xff] }
 0x25f   : > { %v1822_v26 = vsel %vm1794_vm6, %v1789_v34, %v6362_v59  ;;  %4794 = vmatprep.subr.mxu1 %v3976_v25 }
 0x260   : > { %4795 = vmatpush3.msra.mxu1 %v3976_v25 }
 0x261   : > { %v1649_v29 = vpop.permute.xlu1 %1648 }
 0x262   : > { %v1951_v56 = vsel %vm1926_vm9, %v1918_v63, %v1649_v29  ;;  %2730 = vrot.lane.b32.xlu0 %v2532_v55, %s4987_s19  ;;  %2856 = vrot.lane.b32.xlu1 %v2563_v15, %s4989_s21  ;;  %v1651_v54 = vpop.permute.xlu0 %1650 }
 0x263   : > { %4766 = vmatprep.mubr.msk.f32.mxu0 %vm1971_vm11, %v1951_v56  ;;  %v1952_v57 = vsel %vm1926_vm9, %v1919_v40, %v1651_v54  ;;  %v2629_v22 = vld [vmem:[#allocation3 + $0x39] sm:$0xff] }
 0x264   : > { %4767 = vmatmul.mubr.msk.f32.gmra.mxu0 %vm1971_vm11, %v1952_v57 }
 0x265   : > { %v1269_v30 = vpop.permute.xlu1 %1268  ;;  %v6380_v62 = vld [vmem:[#allocation3 + $0x30] sm:$0xff]  ;;  %v6402_v45 = vld [vmem:[#allocation3 + $0x38] sm:$0xff] }
 0x266   : > { %3238 = vrot.lane.b32.xlu0 %v2564_v37, %s4994_s9  ;;  %3364 = vrot.lane.b32.xlu1 %v6380_v62, %s4995_s22  ;;  %v1397_v23 = vpop.permute.xlu0 %1396  ;;  %v2628_v16 = vld [vmem:[#allocation3 + $0x31] sm:$0xff]  ;;  %v1854_v49 = vsel %vm1827_vm7, %v1821_v60, %v1269_v30 }
 0x267   : > { %v4738_v2 = vpop.f32.mrf.mxu0  ;;  %v1887_v12 = vsel %vm1860_vm8, %v1854_v49, %v1397_v23  ;;  %v2660_v44 = vld [vmem:[#allocation3 + $0x32] sm:$0xff]  ;;  %v4918_v23 = vld [vmem:[#allocation2 + $0x150] sm:$0xff] }
 0x268   : > { %v2164_v33 = vadd.f32 %v4738_v2, %v6297_v41  ;;  %v7726_v2 = vld [vmem:[#allocation30_spill] sm:$0xff] }
 0x269   : > { %v1271_v51 = vpop.permute.xlu1 %1270  ;;  %v2158_v1 = vpop.f32.mrf.mxu0 }
 0x26a   : > { %v2302_v31 = vmax.f32 %v2164_v33, 0.0  ;;  %v2159_v24 = vadd.f32 %v6297_v41, %v2158_v1  ;;  %2858 = vrot.lane.b32.xlu0 %v2564_v37, %s4989_s21  ;;  %2984 = vrot.lane.b32.xlu1 %v6380_v62, %s4991_s20  ;;  %v1525_v18 = vpop.permute.xlu0 %1524  ;;  %v1855_v5 = vsel %vm1827_vm7, %v1822_v26, %v1271_v51  ;;  %v2661_v37 = vld [vmem:[#allocation3 + $0x3a] sm:$0xff]  ;;  %v1724_v33 = vsel %vm308_vm0, %v4918_v23, %v7726_v2  ;;  %v7727_v51 = vld [vmem:[#allocation54_spill] sm:$0xff] }
 0x26b   : > { %v1920_v55 = vsel %vm1893_vm10, %v1887_v12, %v1525_v18  ;;  %v1757_v1 = vsel %vm1728_vm3, %v1724_v33, %v7727_v51  ;;  %v7729_v18 = vld [vmem:[#allocation76_spill] sm:$0xff] }
 0x26c   : > { %2376 = vst.msk [vmem:[#allocation3 + $0x51] sm:$0xff] %vm1728_vm3, %v2302_v31  ;;  %v2301_v19 = vmax.f32 %v2159_v24, 0.0  ;;  %v4919_v31 = vld [vmem:[#allocation2 + $0x158] sm:$0xff] }
 0x26d   : > { %v1399_v14 = vpop.permute.xlu1 %1398  ;;  %v7728_v24 = vld [vmem:[#allocation34_spill] sm:$0xff] }
 0x26e   : > { %2375 = vst.msk [vmem:[#allocation3 + $0x49] sm:$0xff] %vm1728_vm3, %v2301_v19  ;;  %3366 = vrot.lane.b32.xlu0 %v6402_v45, %s4995_s22  ;;  %3492 = vrot.lane.b32.xlu1 %v2628_v16, %s4996_s29  ;;  %v1527_v36 = vpop.permute.xlu0 %1526  ;;  %v1888_v42 = vsel %vm1860_vm8, %v1855_v5, %v1399_v14  ;;  %v1725_v28 = vsel %vm308_vm0, %v4919_v31, %v7728_v24  ;;  %v7737_v31 = vld [vmem:[#allocation80_spill] sm:$0xff] }
 0x26f   : > { %v1921_v59 = vsel %vm1893_vm10, %v1888_v42, %v1527_v36  ;;  %v1790_v19 = vsel %vm1761_vm5, %v1757_v1, %v7729_v18  ;;  %v1758_v52 = vsel %vm1728_vm3, %v1725_v28, %v7730_v58 }
 0x271   : > { %v1145_v21 = vpop.permute.xlu1 %1144 }
 0x272   : > { %2986 = vrot.lane.b32.xlu0 %v6402_v45, %s4991_s20  ;;  %3112 = vrot.lane.b32.xlu1 %v2628_v16, %s4993_s23  ;;  %v1147_v13 = vpop.permute.xlu0 %1146  ;;  %v1823_v14 = vsel %vm1794_vm6, %v1790_v19, %v1145_v21 }
 0x275   : > { %v1653_v15 = vpop.permute.xlu1 %1652  ;;  %v6470_v47 = vld [vmem:[#allocation3 + $0x48] sm:$0xff] }
 0x276   : > { %v1953_v50 = vsel %vm1926_vm9, %v1920_v55, %v1653_v15  ;;  %3494 = vrot.lane.b32.xlu0 %v2629_v22, %s4996_s29  ;;  %3620 = vrot.lane.b32.xlu1 %v2660_v44, %s4997_s16  ;;  %v1655_v32 = vpop.permute.xlu0 %1654  ;;  %v2630_v42 = vld [vmem:[#allocation3 + $0x49] sm:$0xff]  ;;  %v4920_v15 = vld [vmem:[#allocation2 + $0x168] sm:$0xff] }
 0x277   : > { %v4741_v0 = vpop.f32.mrf.mxu0  ;;  %4769 = vmatprep.mubr.msk.f32.mxu0 %vm1971_vm11, %v1953_v50  ;;  %v1954_v63 = vsel %vm1926_vm9, %v1921_v59, %v1655_v32  ;;  %v6492_v55 = vld [vmem:[#allocation3 + $0x50] sm:$0xff]  ;;  %v7733_v59 = vld [vmem:[#allocation56_spill] sm:$0xff] }
 0x278   : > { %v2174_v29 = vadd.f32 %v4741_v0, %v6297_v41  ;;  %4770 = vmatmul.mubr.msk.f32.gmra.mxu0 %vm1971_vm11, %v1954_v63  ;;  %v7734_v0 = vld [vmem:[#allocation78_spill] sm:$0xff] }
 0x279   : > { %v1273_v48 = vpop.permute.xlu1 %1272  ;;  %v2168_v56 = vpop.f32.mrf.mxu0 }
 0x27a   : > { %v2304_v43 = vmax.f32 %v2174_v29, 0.0  ;;  %v2169_v40 = vadd.f32 %v6297_v41, %v2168_v56  ;;  %3114 = vrot.lane.b32.xlu1 %v2629_v22, %s4993_s23  ;;  %2732 = vrot.lane.b32.xlu0 %v2628_v16, %s4987_s19  ;;  %v1401_v54 = vpop.permute.xlu0 %1400  ;;  %v7731_v16 = vld [vmem:[#allocation79_spill] sm:$0xff]  ;;  %v1856_v39 = vsel %vm1827_vm7, %v1823_v14, %v1273_v48 }
 0x27b   : > { %v1791_v11 = vsel %vm1761_vm5, %v1758_v52, %v7731_v16  ;;  %v1889_v61 = vsel %vm1860_vm8, %v1856_v39, %v1401_v54  ;;  %v2662_v54 = vld [vmem:[#allocation3 + $0x4a] sm:$0xff] }
 0x27c   : > { %2378 = vst.msk [vmem:[#allocation3 + $0x69] sm:$0xff] %vm1728_vm3, %v2304_v43  ;;  %v2303_v57 = vmax.f32 %v2169_v40, 0.0  ;;  %v1824_v4 = vsel %vm1794_vm6, %v1791_v11, %v1147_v13 }
 0x27d   : > { %v1275_v30 = vpop.permute.xlu1 %1274 }
 0x27e   : > { %2377 = vst.msk [vmem:[#allocation3 + $0x61] sm:$0xff] %vm1728_vm3, %v2303_v57  ;;  %3622 = vrot.lane.b32.xlu1 %v2661_v37, %s4997_s16  ;;  %3240 = vrot.lane.b32.xlu0 %v2660_v44, %s4994_s9  ;;  %v1529_v8 = vpop.permute.xlu0 %1528  ;;  %v1857_v17 = vsel %vm1827_vm7, %v1824_v4, %v1275_v30  ;;  %v2631_v57 = vld [vmem:[#allocation3 + $0x51] sm:$0xff] }
 0x27f   : > { %v1922_v34 = vsel %vm1893_vm10, %v1889_v61, %v1529_v8  ;;  %v7735_v8 = vld [vmem:[#allocation35_spill] sm:$0xff] }
 0x281   : > { %v1403_v6 = vpop.permute.xlu1 %1402 }
 0x282   : > { %2860 = vrot.lane.b32.xlu1 %v2660_v44, %s4989_s21  ;;  %2734 = vrot.lane.b32.xlu0 %v2629_v22, %s4987_s19  ;;  %v1531_v10 = vpop.permute.xlu0 %1530  ;;  %v1890_v60 = vsel %vm1860_vm8, %v1857_v17, %v1403_v6  ;;  %v7732_v22 = vld [vmem:[#allocation33_spill] sm:$0xff]  ;;  %v7736_v6 = vld [vmem:[#allocation58_spill] sm:$0xff] }
 0x283   : > { %v1923_v25 = vsel %vm1893_vm10, %v1890_v60, %v1531_v10  ;;  %v1726_v44 = vsel %vm308_vm0, %v4920_v15, %v7732_v22 }
 0x284   : > { %v4744_v53 = vpop.f32.mrf.mxu0  ;;  %v1759_v32 = vsel %vm1728_vm3, %v1726_v44, %v7733_v59 }
 0x285   : > { %v1149_v46 = vpop.permute.xlu1 %1148  ;;  %v2184_v27 = vadd.f32 %v4744_v53, %v6297_v41  ;;  %v1792_v63 = vsel %vm1761_vm5, %v1759_v32, %v7734_v0  ;;  %v2663_v53 = vld [vmem:[#allocation3 + $0x52] sm:$0xff]  ;;  %v6536_v17 = vld [vmem:[#allocation3 + $0x60] sm:$0xff]  ;;  %v6544_v61 = vld [vmem:[#allocation3 + $0x68] sm:$0xff] }
 0x286   : > { %3368 = vrot.lane.b32.xlu1 %v6470_v47, %s4995_s22  ;;  %3242 = vrot.lane.b32.xlu0 %v2661_v37, %s4994_s9  ;;  %v1151_v36 = vpop.permute.xlu0 %1150  ;;  %v2178_v9 = vpop.f32.mrf.mxu0  ;;  %v1825_v48 = vsel %vm1794_vm6, %v1792_v63, %v1149_v46 }
 0x287   : > { %v2306_v7 = vmax.f32 %v2184_v27, 0.0  ;;  %v2179_v20 = vadd.f32 %v6297_v41, %v2178_v9  ;;  %v2632_v9 = vld [vmem:[#allocation3 + $0x61] sm:$0xff] }
 0x289   : > { %v1657_v49 = vpop.permute.xlu1 %1656  ;;  %2380 = vst.msk [vmem:[#allocation3 + $0x81] sm:$0xff] %vm1728_vm3, %v2306_v7  ;;  %v2305_v21 = vmax.f32 %v2179_v20, 0.0 }
 0x28a   : > { %v1955_v26 = vsel %vm1926_vm9, %v1922_v34, %v1657_v49  ;;  %2988 = vrot.lane.b32.xlu1 %v6470_v47, %s4991_s20  ;;  %2862 = vrot.lane.b32.xlu0 %v2661_v37, %s4989_s21  ;;  %v1659_v5 = vpop.permute.xlu0 %1658  ;;  %v4921_v37 = vld [vmem:[#allocation2 + $0x170] sm:$0xff] }
 0x28b   : > { %4772 = vmatprep.mubr.msk.f32.mxu0 %vm1971_vm11, %v1955_v26  ;;  %2379 = vst.msk [vmem:[#allocation3 + $0x79] sm:$0xff] %vm1728_vm3, %v2305_v21  ;;  %v1956_v13 = vsel %vm1926_vm9, %v1923_v25, %v1659_v5  ;;  %v1727_v23 = vsel %vm308_vm0, %v4921_v37, %v7735_v8  ;;  %v2664_v21 = vld [vmem:[#allocation3 + $0x62] sm:$0xff]  ;;  %v2665_v25 = vld [vmem:[#allocation3 + $0x6a] sm:$0xff]  ;;  %vm3910_vm0 = vcmask 457728  }
 0x28c   : > { %4773 = vmatmul.mubr.msk.f32.gmra.mxu0 %vm1971_vm11, %v1956_v13  ;;  %v1760_v51 = vsel %vm1728_vm3, %v1727_v23, %v7736_v6  ;;  %v2633_v26 = vld [vmem:[#allocation3 + $0x69] sm:$0xff] }
 0x28d   : > { %v1277_v12 = vpop.permute.xlu1 %1276  ;;  %v1793_v24 = vsel %vm1761_vm5, %v1760_v51, %v7737_v31  ;;  %vm4492_vm5 = vcmask 73728  }
 0x28e   : > { %3496 = vrot.lane.b32.xlu1 %v2630_v42, %s4996_s29  ;;  %3370 = vrot.lane.b32.xlu0 %v6492_v55, %s4995_s22  ;;  %v1405_v50 = vpop.permute.xlu0 %1404  ;;  %v1858_v56 = vsel %vm1827_vm7, %v1825_v48, %v1277_v12  ;;  %v1826_v19 = vsel %vm1794_vm6, %v1793_v24, %v1151_v36 }
 0x28f   : > { %v1891_v30 = vsel %vm1860_vm8, %v1858_v56, %v1405_v50 }
 0x291   : > { %v1279_v29 = vpop.permute.xlu1 %1278 }
 0x292   : > { %3116 = vrot.lane.b32.xlu1 %v2630_v42, %s4993_s23  ;;  %2990 = vrot.lane.b32.xlu0 %v6492_v55, %s4991_s20  ;;  %v1533_v43 = vpop.permute.xlu0 %1532  ;;  %v1859_v58 = vsel %vm1827_vm7, %v1826_v19, %v1279_v29  ;;  %v6570_v32 = vld [vmem:[#allocation3 + $0x78] sm:$0xff] }
 0x293   : > { %v1924_v2 = vsel %vm1893_vm10, %v1891_v30, %v1533_v43  ;;  %v2634_v43 = vld [vmem:[#allocation3 + $0x79] sm:$0xff] }
 0x294   : > { %v2666_v23 = vld [vmem:[#allocation3 + $0x7a] sm:$0xff] }
 0x295   : > { %v1407_v40 = vpop.permute.xlu1 %1406 }
 0x296   : > { %3624 = vrot.lane.b32.xlu1 %v2662_v54, %s4997_s16  ;;  %3498 = vrot.lane.b32.xlu0 %v2631_v57, %s4996_s29  ;;  %v1661_v33 = vpop.permute.xlu0 %1660  ;;  %v1892_v14 = vsel %vm1860_vm8, %v1859_v58, %v1407_v40  ;;  %v6584_v40 = vld [vmem:[#allocation3 + $0x80] sm:$0xff] }
 0x297   : > { %v1957_v1 = vsel %vm1926_vm9, %v1924_v2, %v1661_v33  ;;  %v2635_v2 = vld [vmem:[#allocation3 + $0x81] sm:$0xff] }
 0x298   : > { %v4747_v18 = vpop.f32.mrf.mxu0  ;;  %4775 = vmatprep.mubr.msk.f32.mxu0 %vm1971_vm11, %v1957_v1  ;;  %v2667_v58 = vld [vmem:[#allocation3 + $0x82] sm:$0xff] }
 0x299   : > { %v1535_v28 = vpop.permute.xlu1 %1534  ;;  %v2194_v10 = vadd.f32 %v4747_v18, %v6297_v41 }
 0x29a   : > { %3118 = vrot.lane.b32.xlu1 %v2631_v57, %s4993_s23  ;;  %2736 = vrot.lane.b32.xlu0 %v2630_v42, %s4987_s19  ;;  %v2188_v52 = vpop.f32.mrf.mxu0  ;;  %v1925_v39 = vsel %vm1893_vm10, %v1892_v14, %v1535_v28  ;;  %v2725_v5 = vpop.permute.xlu0 %2724 }
 0x29b   : > { %v2308_v16 = vmax.f32 %v2194_v10, 0.0  ;;  %v2189_v11 = vadd.f32 %v6297_v41, %v2188_v52  ;;  %v2403_v10 = vld [vmem:[#allocation3] sm:$0xff] }
 0x29c   : > { %v3716_v52 = vsel %vm1728_vm3, %v2403_v10, %v2725_v5 }
 0x29d   : > { %v1663_v46 = vpop.permute.xlu1 %1662  ;;  %2382 = vst.msk [vmem:[#allocation3 + $0x99] sm:$0xff] %vm1728_vm3, %v2308_v16  ;;  %v2307_v4 = vmax.f32 %v2189_v11, 0.0 }
 0x29e   : > { %v1958_v27 = vsel %vm1926_vm9, %v1925_v39, %v1663_v46  ;;  %3626 = vrot.lane.b32.xlu1 %v2663_v53, %s4997_s16  ;;  %3244 = vrot.lane.b32.xlu0 %v2662_v54, %s4994_s9  ;;  %v2853_v22 = vpop.permute.xlu0 %2852 }
 0x29f   : > { %4776 = vmatmul.mubr.msk.f32.gmra.mxu0 %vm1971_vm11, %v1958_v27  ;;  %2381 = vst.msk [vmem:[#allocation3 + $0x91] sm:$0xff] %vm1728_vm3, %v2307_v4  ;;  %v3748_v11 = vsel %vm1794_vm6, %v3716_v52, %v2853_v22  ;;  %v2404_v4 = vld [vmem:[#allocation3 + $0x8] sm:$0xff] }
 0x2a0   : > { %4846 = vmatprep.mubr.msk.f32.mxu0 %vm4998_vm4, %v7629_v3 }
 0x2a1   : > { %v6560_v13 = vpop.permute.xlu1 %2726 }
 0x2a2   : > { %2864 = vrot.lane.b32.xlu1 %v2662_v54, %s4989_s21  ;;  %2738 = vrot.lane.b32.xlu0 %v2631_v57, %s4987_s19 }
 0x2a4   : > { %v2669_v10 = vld [vmem:[#allocation3 + $0x9a] sm:$0xff] }
 0x2a5   : > { %v6567_v50 = vpop.permute.xlu1 %2854 }
 0x2a6   : > { %3372 = vrot.lane.b32.xlu1 %v6536_v17, %s4995_s22  ;;  %3246 = vrot.lane.b32.xlu0 %v2663_v53, %s4994_s9 }
 0x2aa   : > { %2992 = vrot.lane.b32.xlu1 %v6536_v17, %s4991_s20  ;;  %2866 = vrot.lane.b32.xlu0 %v2663_v53, %s4989_s21 }
 0x2ac   : > { %v4750_v36 = vpop.f32.mrf.mxu0 }
 0x2ad   : > { %v2204_v60 = vadd.f32 %v4750_v36, %v6297_v41  ;;  %v6622_v36 = vld [vmem:[#allocation3 + $0x90] sm:$0xff] }
 0x2ae   : > { %3500 = vrot.lane.b32.xlu1 %v2632_v9, %s4996_s29  ;;  %3374 = vrot.lane.b32.xlu0 %v6544_v61, %s4995_s22  ;;  %v2198_v7 = vpop.f32.mrf.mxu0 }
 0x2af   : > { %v2310_v20 = vmax.f32 %v2204_v60, 0.0  ;;  %v2199_v34 = vadd.f32 %v6297_v41, %v2198_v7  ;;  %v3717_v7 = vsel %vm1728_vm3, %v2404_v4, %v6560_v13 }
 0x2b0   : > { %v3749_v5 = vsel %vm1794_vm6, %v3717_v7, %v6567_v50 }
 0x2b1   : > { %2384 = vst.msk [vmem:[#allocation3 + $0xb1] sm:$0xff] %vm1728_vm3, %v2310_v20  ;;  %v2309_v49 = vmax.f32 %v2199_v34, 0.0 }
 0x2b2   : > { %3120 = vrot.lane.b32.xlu1 %v2632_v9, %s4993_s23  ;;  %2994 = vrot.lane.b32.xlu0 %v6544_v61, %s4991_s20 }
 0x2b3   : > { %2383 = vst.msk [vmem:[#allocation3 + $0xa9] sm:$0xff] %vm1728_vm3, %v2309_v49 }
 0x2b6   : > { %3628 = vrot.lane.b32.xlu1 %v2664_v21, %s4997_s16  ;;  %3502 = vrot.lane.b32.xlu0 %v2633_v26, %s4996_s29 }
 0x2ba   : > { %3122 = vrot.lane.b32.xlu1 %v2633_v26, %s4993_s23  ;;  %2740 = vrot.lane.b32.xlu0 %v2632_v9, %s4987_s19 }
 0x2be   : > { %3630 = vrot.lane.b32.xlu1 %v2665_v25, %s4997_s16  ;;  %3248 = vrot.lane.b32.xlu0 %v2664_v21, %s4994_s9 }
 0x2c0   : > { %v4753_v12 = vpop.f32.mrf.mxu0 }
 0x2c1   : > { %v2214_v42 = vadd.f32 %v4753_v12, %v6297_v41 }
 0x2c2   : > { %2868 = vrot.lane.b32.xlu1 %v2664_v21, %s4989_s21  ;;  %2742 = vrot.lane.b32.xlu0 %v2633_v26, %s4987_s19  ;;  %v2208_v15 = vpop.f32.mrf.mxu0 }
 0x2c3   : > { %v2312_v44 = vmax.f32 %v2214_v42, 0.0  ;;  %v2209_v59 = vadd.f32 %v6297_v41, %v2208_v15 }
 0x2c5   : > { %2386 = vst.msk [vmem:[#allocation3 + $0xc9] sm:$0xff] %vm1728_vm3, %v2312_v44  ;;  %v2311_v0 = vmax.f32 %v2209_v59, 0.0 }
 0x2c6   : > { %3376 = vrot.lane.b32.xlu1 %v6570_v32, %s4995_s22  ;;  %3250 = vrot.lane.b32.xlu0 %v2665_v25, %s4994_s9 }
 0x2c7   : > { %2385 = vst.msk [vmem:[#allocation3 + $0xc1] sm:$0xff] %vm1728_vm3, %v2311_v0  ;;  %v2636_v0 = vld [vmem:[#allocation3 + $0x91] sm:$0xff] }
 0x2c8   : > { %v2981_v63 = vpop.permute.xlu0 %2980  ;;  %v6577_v29 = vpop.permute.xlu1 %2982 }
 0x2c9   : > { %v3780_v39 = vsel %vm1860_vm8, %v3748_v11, %v2981_v63  ;;  %v3781_v12 = vsel %vm1860_vm8, %v3749_v5, %v6577_v29 }
 0x2ca   : > { %2996 = vrot.lane.b32.xlu1 %v6570_v32, %s4991_s20  ;;  %2870 = vrot.lane.b32.xlu0 %v2665_v25, %s4989_s21 }
 0x2cc   : > { %v3109_v48 = vpop.permute.xlu0 %3108  ;;  %v6582_v56 = vpop.permute.xlu1 %2728 }
 0x2cd   : > { %v3812_v27 = vsel %vm1926_vm9, %v3780_v39, %v3109_v48  ;;  %v6652_v48 = vld [vmem:[#allocation3 + $0x98] sm:$0xff]  ;;  %v3718_v4 = vsel %vm1728_vm3, %v6325_v38, %v6582_v56  ;;  %v6697_v56 = vld [vmem:[#allocation3 + $0xa8] sm:$0xff] }
 0x2ce   : > { %3504 = vrot.lane.b32.xlu1 %v2634_v43, %s4996_s29  ;;  %3378 = vrot.lane.b32.xlu0 %v6584_v40, %s4995_s22 }
 0x2d0   : > { %v6589_v54 = vpop.permute.xlu0 %3110  ;;  %v3237_v57 = vpop.permute.xlu1 %3236 }
 0x2d1   : > { %v3845_v9 = vsel %vm3844_vm14, %v3812_v27, %v3237_v57  ;;  %v3813_v59 = vsel %vm1926_vm9, %v3781_v12, %v6589_v54 }
 0x2d2   : > { %3124 = vrot.lane.b32.xlu1 %v2634_v43, %s4993_s23  ;;  %2998 = vrot.lane.b32.xlu0 %v6584_v40, %s4991_s20 }
 0x2d4   : > { %v6594_v30 = vpop.permute.xlu0 %2730  ;;  %v6596_v37 = vpop.permute.xlu1 %2856 }
 0x2d5   : > { %v4756_v8 = vpop.f32.mrf.mxu0 }
 0x2d6   : > { %v2224_v33 = vadd.f32 %v4756_v8, %v6297_v41  ;;  %3632 = vrot.lane.b32.xlu1 %v2666_v23, %s4997_s16  ;;  %3506 = vrot.lane.b32.xlu0 %v2635_v2, %s4996_s29 }
 0x2d7   : > { %v2218_v6 = vpop.f32.mrf.mxu0 }
 0x2d8   : > { %v2314_v51 = vmax.f32 %v2224_v33, 0.0  ;;  %v2219_v1 = vadd.f32 %v6297_v41, %v2218_v6  ;;  %v3239_v31 = vpop.permute.xlu0 %3238  ;;  %v3365_v24 = vpop.permute.xlu1 %3364  ;;  %v2668_v33 = vld [vmem:[#allocation3 + $0x92] sm:$0xff] }
 0x2d9   : > { %v3878_v60 = vsel %vm3877_vm15, %v3845_v9, %v3365_v24  ;;  %v3846_v63 = vsel %vm3844_vm14, %v3813_v59, %v3239_v31  ;;  %v2637_v6 = vld [vmem:[#allocation3 + $0x99] sm:$0xff]  ;;  %v3750_v9 = vsel %vm1794_vm6, %v3718_v4, %v6596_v37 }
 0x2da   : > { %2388 = vst.msk [vmem:[#allocation3 + $0xe1] sm:$0xff] %vm1728_vm3, %v2314_v51  ;;  %v2313_v28 = vmax.f32 %v2219_v1, 0.0  ;;  %3126 = vrot.lane.b32.xlu1 %v2635_v2, %s4993_s23  ;;  %2744 = vrot.lane.b32.xlu0 %v2634_v43, %s4987_s19 }
 0x2dc   : > { %2387 = vst.msk [vmem:[#allocation3 + $0xd9] sm:$0xff] %vm1728_vm3, %v2313_v28  ;;  %v6606_v18 = vpop.permute.xlu0 %2858  ;;  %v6608_v19 = vpop.permute.xlu1 %2984 }
 0x2de   : > { %3634 = vrot.lane.b32.xlu1 %v2667_v58, %s4997_s16  ;;  %3252 = vrot.lane.b32.xlu0 %v2666_v23, %s4994_s9 }
 0x2e0   : > { %v3367_v14 = vpop.permute.xlu0 %3366  ;;  %v3493_v16 = vpop.permute.xlu1 %3492 }
 0x2e1   : > { %v3911_v20 = vsel %vm3910_vm0, %v3878_v60, %v3493_v16  ;;  %v3879_v29 = vsel %vm3877_vm15, %v3846_v63, %v3367_v14  ;;  %v3782_v60 = vsel %vm1860_vm8, %v3750_v9, %v6608_v19 }
 0x2e2   : > { %2872 = vrot.lane.b32.xlu1 %v2666_v23, %s4989_s21  ;;  %2746 = vrot.lane.b32.xlu0 %v2635_v2, %s4987_s19 }
 0x2e4   : > { %v6617_v46 = vpop.permute.xlu0 %2986  ;;  %v6619_v53 = vpop.permute.xlu1 %3112 }
 0x2e5   : > { %v3814_v38 = vsel %vm1926_vm9, %v3782_v60, %v6619_v53  ;;  %v3719_v53 = vsel %vm1728_vm3, %v6327_v35, %v6594_v30  ;;  %v2638_v30 = vld [vmem:[#allocation3 + $0xa9] sm:$0xff] }
 0x2e6   : > { %3380 = vrot.lane.b32.xlu1 %v6622_v36, %s4995_s22  ;;  %3254 = vrot.lane.b32.xlu0 %v2667_v58, %s4994_s9 }
 0x2e8   : > { %v3495_v34 = vpop.permute.xlu0 %3494  ;;  %v3621_v49 = vpop.permute.xlu1 %3620 }
 0x2e9   : > { %v4759_v21 = vpop.f32.mrf.mxu0  ;;  %v3944_v26 = vsel %vm3943_vm1, %v3911_v20, %v3621_v49  ;;  %v3912_v43 = vsel %vm3910_vm0, %v3879_v29, %v3495_v34 }
 0x2ea   : > { %v2234_v25 = vadd.f32 %v4759_v21, %v6297_v41  ;;  %4796 = vmatprep.mubr.msk.f32.mxu1 %vm3992_vm2, %v3944_v26  ;;  %3000 = vrot.lane.b32.xlu1 %v6622_v36, %s4991_s20 }
 0x2eb   : > { %2874 = vrot.lane.b32.xlu0 %v2667_v58, %s4989_s21  ;;  %v2228_v13 = vpop.f32.mrf.mxu0 }
 0x2ec   : > { %v2316_v42 = vmax.f32 %v2234_v25, 0.0  ;;  %v2229_v15 = vadd.f32 %v6297_v41, %v2228_v13  ;;  %v6643_v22 = vpop.permute.xlu1 %3114  ;;  %v6645_v44 = vpop.permute.xlu0 %2732  ;;  %v3751_v25 = vsel %vm1794_vm6, %v3719_v53, %v6606_v18 }
 0x2ed   : > { %v3783_v5 = vsel %vm1860_vm8, %v3751_v25, %v6617_v46 }
 0x2ee   : > { %2390 = vst.msk [vmem:[#allocation3 + $0xf9] sm:$0xff] %vm1728_vm3, %v2316_v42  ;;  %v2315_v50 = vmax.f32 %v2229_v15, 0.0  ;;  %3508 = vrot.lane.b32.xlu1 %v2636_v0, %s4996_s29  ;;  %v3815_v35 = vsel %vm1926_vm9, %v3783_v5, %v6643_v22  ;;  %v6725_v15 = vld [vmem:[#allocation3 + $0xb0] sm:$0xff] }
 0x2ef   : > { %3382 = vrot.lane.b32.xlu0 %v6652_v48, %s4995_s22 }
 0x2f0   : > { %2389 = vst.msk [vmem:[#allocation3 + $0xf1] sm:$0xff] %vm1728_vm3, %v2315_v50  ;;  %v3623_v54 = vpop.permute.xlu1 %3622  ;;  %v3241_v57 = vpop.permute.xlu0 %3240 }
 0x2f1   : > { %v3945_v8 = vsel %vm3943_vm1, %v3912_v43, %v3623_v54  ;;  %v3847_v34 = vsel %vm3844_vm14, %v3814_v38, %v3241_v57 }
 0x2f2   : > { %4797 = vmatmul.mubr.msk.f32.vlgmr.msra.gmra.mxu1 %vm3992_vm2, %v3945_v8  ;;  %3128 = vrot.lane.b32.xlu1 %v2636_v0, %s4993_s23 }
 0x2f3   : > { %3002 = vrot.lane.b32.xlu0 %v6652_v48, %s4991_s20 }
 0x2f4   : > { %v6664_v23 = vpop.permute.xlu1 %2860  ;;  %v6666_v2 = vpop.permute.xlu0 %2734 }
 0x2f5   : > { %v3721_v53 = vsel %vm1728_vm3, %v6402_v45, %v6666_v2 }
 0x2f6   : > { %3636 = vrot.lane.b32.xlu1 %v2668_v33, %s4997_s16 }
 0x2f7   : > { %3510 = vrot.lane.b32.xlu0 %v2637_v6, %s4996_s29 }
 0x2f8   : > { %v3369_v51 = vpop.permute.xlu1 %3368  ;;  %v3243_v1 = vpop.permute.xlu0 %3242 }
 0x2f9   : > { %v3880_v37 = vsel %vm3877_vm15, %v3847_v34, %v3369_v51  ;;  %v3848_v42 = vsel %vm3844_vm14, %v3815_v35, %v3243_v1  ;;  %v2639_v51 = vld [vmem:[#allocation3 + $0xb1] sm:$0xff]  ;;  %v6769_v34 = vld [vmem:[#allocation3 + $0xc0] sm:$0xff] }
 0x2fa   : > { %3130 = vrot.lane.b32.xlu1 %v2637_v6, %s4993_s23 }
 0x2fb   : > { %2748 = vrot.lane.b32.xlu0 %v2636_v0, %s4987_s19 }
 0x2fc   : > { %v6672_v31 = vpop.permute.xlu1 %2988  ;;  %v6674_v24 = vpop.permute.xlu0 %2862 }
 0x2fd   : > { %v4762_v28 = vpop.f32.mrf.mxu0  ;;  %v3753_v5 = vsel %vm1794_vm6, %v3721_v53, %v6674_v24  ;;  %v6806_v24 = vld [vmem:[#allocation3 + $0xc8] sm:$0xff] }
 0x2fe   : > { %v2244_v58 = vadd.f32 %v4762_v28, %v6297_v41  ;;  %3638 = vrot.lane.b32.xlu1 %v2669_v10, %s4997_s16 }
 0x2ff   : > { %3256 = vrot.lane.b32.xlu0 %v2668_v33, %s4994_s9  ;;  %v2238_v52 = vpop.f32.mrf.mxu0 }
 0x300   : > { %v2318_v14 = vmax.f32 %v2244_v58, 0.0  ;;  %v2239_v16 = vadd.f32 %v6297_v41, %v2238_v52  ;;  %v3497_v11 = vpop.permute.xlu1 %3496  ;;  %v3371_v39 = vpop.permute.xlu0 %3370  ;;  %v2671_v52 = vld [vmem:[#allocation3 + $0xb2] sm:$0xff] }
 0x301   : > { %v3913_v19 = vsel %vm3910_vm0, %v3880_v37, %v3497_v11  ;;  %v3881_v18 = vsel %vm3877_vm15, %v3848_v42, %v3371_v39  ;;  %v3720_v11 = vsel %vm1728_vm3, %v6380_v62, %v6645_v44  ;;  %v2640_v42 = vld [vmem:[#allocation3 + $0xc1] sm:$0xff] }
 0x302   : > { %2392 = vst.msk [vmem:[#allocation3 + $0x111] sm:$0xff] %vm1728_vm3, %v2318_v14  ;;  %v2317_v27 = vmax.f32 %v2239_v16, 0.0  ;;  %2876 = vrot.lane.b32.xlu1 %v2668_v33, %s4989_s21  ;;  %v2670_v33 = vld [vmem:[#allocation3 + $0xaa] sm:$0xff]  ;;  %v3752_v39 = vsel %vm1794_vm6, %v3720_v11, %v6664_v23 }
 0x303   : > { %2750 = vrot.lane.b32.xlu0 %v2637_v6, %s4987_s19  ;;  %v3784_v4 = vsel %vm1860_vm8, %v3752_v39, %v6672_v31 }
 0x304   : > { %2391 = vst.msk [vmem:[#allocation3 + $0x109] sm:$0xff] %vm1728_vm3, %v2317_v27  ;;  %v6691_v7 = vpop.permute.xlu1 %3116  ;;  %v6693_v20 = vpop.permute.xlu0 %2990 }
 0x305   : > { %v3816_v60 = vsel %vm1926_vm9, %v3784_v4, %v6691_v7  ;;  %v6781_v7 = vld [vmem:[%s7575_s2] ss:$0 sm:$0xff]  ;;  %v3785_v35 = vsel %vm1860_vm8, %v3753_v5, %v6693_v20 }
 0x306   : > { %3384 = vrot.lane.b32.xlu1 %v6697_v56, %s4995_s22 }
 0x307   : > { %3258 = vrot.lane.b32.xlu0 %v2669_v10, %s4994_s9 }
 0x308   : > { %v3625_v49 = vpop.permute.xlu1 %3624  ;;  %v3499_v21 = vpop.permute.xlu0 %3498 }
 0x309   : > { %v3946_v26 = vsel %vm3943_vm1, %v3913_v19, %v3625_v49  ;;  %v3914_v46 = vsel %vm3910_vm0, %v3881_v18, %v3499_v21 }
 0x30a   : > { %3004 = vrot.lane.b32.xlu1 %v6697_v56, %s4991_s20  ;;  %4799 = vmatprep.mubr.msk.f32.mxu1 %vm3992_vm2, %v3946_v26 }
 0x30b   : > { %2878 = vrot.lane.b32.xlu0 %v2669_v10, %s4989_s21 }
 0x30c   : > { %v6717_v13 = vpop.permute.xlu1 %3118  ;;  %v6719_v12 = vpop.permute.xlu0 %2736 }
 0x30d   : > { %v3817_v2 = vsel %vm1926_vm9, %v3785_v35, %v6717_v13 }
 0x30e   : > { %3512 = vrot.lane.b32.xlu1 %v2638_v30, %s4996_s29 }
 0x30f   : > { %3386 = vrot.lane.b32.xlu0 %v6725_v15, %s4995_s22 }
 0x310   : > { %v3627_v59 = vpop.permute.xlu1 %3626  ;;  %v3245_v0 = vpop.permute.xlu0 %3244 }
 0x311   : > { %v3947_v63 = vsel %vm3943_vm1, %v3914_v46, %v3627_v59  ;;  %v4765_v50 = vpop.f32.mrf.mxu0  ;;  %v3849_v62 = vsel %vm3844_vm14, %v3816_v60, %v3245_v0  ;;  %v3722_v60 = vsel %vm1728_vm3, %v6470_v47, %v6719_v12 }
 0x312   : > { %v2254_v22 = vadd.f32 %v4765_v50, %v6297_v41  ;;  %3132 = vrot.lane.b32.xlu1 %v2638_v30, %s4993_s23  ;;  %4800 = vmatmul.mubr.msk.f32.gmra.mxu1 %vm3992_vm2, %v3947_v63 }
 0x313   : > { %3006 = vrot.lane.b32.xlu0 %v6725_v15, %s4991_s20  ;;  %v2248_v29 = vpop.f32.mrf.mxu0 }
 0x314   : > { %v2320_v43 = vmax.f32 %v2254_v22, 0.0  ;;  %v2249_v54 = vadd.f32 %v6297_v41, %v2248_v29  ;;  %v6738_v57 = vpop.permute.xlu1 %2864  ;;  %v6740_v8 = vpop.permute.xlu0 %2738  ;;  %v2672_v22 = vld [vmem:[#allocation3 + $0xc2] sm:$0xff] }
 0x315   : > { %v2641_v29 = vld [vmem:[#allocation3 + $0xc9] sm:$0xff] }
 0x316   : > { %2394 = vst.msk [vmem:[#allocation3 + $0x129] sm:$0xff] %vm1728_vm3, %v2320_v43  ;;  %v2319_v6 = vmax.f32 %v2249_v54, 0.0  ;;  %3640 = vrot.lane.b32.xlu1 %v2670_v33, %s4997_s16 }
 0x317   : > { %3514 = vrot.lane.b32.xlu0 %v2639_v51, %s4996_s29 }
 0x318   : > { %2393 = vst.msk [vmem:[#allocation3 + $0x121] sm:$0xff] %vm1728_vm3, %v2319_v6  ;;  %v3373_v1 = vpop.permute.xlu1 %3372  ;;  %v3247_v28 = vpop.permute.xlu0 %3246 }
 0x319   : > { %v3882_v23 = vsel %vm3877_vm15, %v3849_v62, %v3373_v1  ;;  %v3850_v18 = vsel %vm3844_vm14, %v3817_v2, %v3247_v28 }
 0x31a   : > { %3134 = vrot.lane.b32.xlu1 %v2639_v51, %s4993_s23 }
 0x31b   : > { %2752 = vrot.lane.b32.xlu0 %v2638_v30, %s4987_s19 }
 0x31c   : > { %v6748_v10 = vpop.permute.xlu1 %2992  ;;  %v6750_v58 = vpop.permute.xlu0 %2866 }
 0x31e   : > { %3642 = vrot.lane.b32.xlu1 %v2671_v52, %s4997_s16 }
 0x31f   : > { %3260 = vrot.lane.b32.xlu0 %v2670_v33, %s4994_s9 }
 0x320   : > { %v3501_v14 = vpop.permute.xlu1 %3500  ;;  %v3375_v16 = vpop.permute.xlu0 %3374 }
 0x321   : > { %v3915_v37 = vsel %vm3910_vm0, %v3882_v23, %v3501_v14  ;;  %v3883_v46 = vsel %vm3877_vm15, %v3850_v18, %v3375_v16  ;;  %v2673_v16 = vld [vmem:[#allocation3 + $0xca] sm:$0xff] }
 0x322   : > { %2880 = vrot.lane.b32.xlu1 %v2670_v33, %s4989_s21 }
 0x323   : > { %2754 = vrot.lane.b32.xlu0 %v2639_v51, %s4987_s19 }
 0x324   : > { %v6763_v27 = vpop.permute.xlu1 %3120  ;;  %v6765_v9 = vpop.permute.xlu0 %2994 }
 0x325   : > { %v4768_v38 = vpop.f32.mrf.mxu0 }
 0x326   : > { %v2264_v44 = vadd.f32 %v4768_v38, %v6297_v41  ;;  %3388 = vrot.lane.b32.xlu1 %v6769_v34, %s4995_s22  ;;  %v3754_v38 = vsel %vm1794_vm6, %v3722_v60, %v6738_v57 }
 0x327   : > { %3262 = vrot.lane.b32.xlu0 %v2671_v52, %s4994_s9  ;;  %v2258_v31 = vpop.f32.mrf.mxu0  ;;  %v3786_v62 = vsel %vm1860_vm8, %v3754_v38, %v6748_v10 }
 0x328   : > { %v2322_v19 = vmax.f32 %v2264_v44, 0.0  ;;  %v2259_v49 = vadd.f32 %v6781_v7, %v2258_v31  ;;  %v3629_v21 = vpop.permute.xlu1 %3628  ;;  %v3503_v41 = vpop.permute.xlu0 %3502  ;;  %v3818_v31 = vsel %vm1926_vm9, %v3786_v62, %v6763_v27  ;;  %v3723_v27 = vsel %vm1728_vm3, %v6492_v55, %v6740_v8 }
 0x329   : > { %v3948_v26 = vsel %vm3943_vm1, %v3915_v37, %v3629_v21  ;;  %v3916_v20 = vsel %vm3910_vm0, %v3883_v46, %v3503_v41  ;;  %v6850_v37 = vld [vmem:[#allocation3 + $0xd8] sm:$0xff]  ;;  %v3755_v21 = vsel %vm1794_vm6, %v3723_v27, %v6750_v58  ;;  %v6879_v58 = vld [vmem:[#allocation3 + $0xe0] sm:$0xff] }
 0x32a   : > { %2396 = vst.msk [vmem:[#allocation3 + $0x141] sm:$0xff] %vm1728_vm3, %v2322_v19  ;;  %v2321_v25 = vmax.f32 %v2259_v49, 0.0  ;;  %3008 = vrot.lane.b32.xlu1 %v6769_v34, %s4991_s20  ;;  %4802 = vmatprep.mubr.msk.f32.mxu1 %vm3992_vm2, %v3948_v26  ;;  %v3787_v41 = vsel %vm1860_vm8, %v3755_v21, %v6765_v9 }
 0x32b   : > { %2882 = vrot.lane.b32.xlu0 %v2671_v52, %s4989_s21 }
 0x32c   : > { %2395 = vst.msk [vmem:[#allocation3 + $0x139] sm:$0xff] %vm1728_vm3, %v2321_v25  ;;  %v6798_v30 = vpop.permute.xlu1 %3122  ;;  %v6800_v45 = vpop.permute.xlu0 %2740  ;;  %v2642_v25 = vld [vmem:[#allocation3 + $0xd9] sm:$0xff] }
 0x32d   : > { %v3819_v55 = vsel %vm1926_vm9, %v3787_v41, %v6798_v30  ;;  %v3724_v60 = vsel %vm1728_vm3, %v6536_v17, %v6800_v45 }
 0x32e   : > { %3516 = vrot.lane.b32.xlu1 %v2640_v42, %s4996_s29 }
 0x32f   : > { %3390 = vrot.lane.b32.xlu0 %v6806_v24, %s4995_s22 }
 0x330   : > { %v3631_v59 = vpop.permute.xlu1 %3630  ;;  %v3249_v0 = vpop.permute.xlu0 %3248 }
 0x331   : > { %v3949_v63 = vsel %vm3943_vm1, %v3916_v20, %v3631_v59  ;;  %v3851_v47 = vsel %vm3844_vm14, %v3818_v31, %v3249_v0 }
 0x332   : > { %3136 = vrot.lane.b32.xlu1 %v2640_v42, %s4993_s23  ;;  %4803 = vmatmul.mubr.msk.f32.gmra.mxu1 %vm3992_vm2, %v3949_v63 }
 0x333   : > { %3010 = vrot.lane.b32.xlu0 %v6806_v24, %s4991_s20 }
 0x334   : > { %v6817_v13 = vpop.permute.xlu1 %2868  ;;  %v6819_v50 = vpop.permute.xlu0 %2742 }
 0x335   : > { %v3756_v31 = vsel %vm1794_vm6, %v3724_v60, %v6817_v13  ;;  %v3725_v27 = vsel %vm1728_vm3, %v6544_v61, %v6819_v50  ;;  %v2644_v61 = vld [vmem:[#allocation3 + $0xf1] sm:$0xff] }
 0x336   : > { %3644 = vrot.lane.b32.xlu1 %v2672_v22, %s4997_s16 }
 0x337   : > { %3518 = vrot.lane.b32.xlu0 %v2641_v29, %s4996_s29 }
 0x338   : > { %v3377_v43 = vpop.permute.xlu1 %3376  ;;  %v3251_v54 = vpop.permute.xlu0 %3250 }
 0x339   : > { %v4771_v33 = vpop.f32.mrf.mxu0  ;;  %v3884_v12 = vsel %vm3877_vm15, %v3851_v47, %v3377_v43  ;;  %v3852_v5 = vsel %vm3844_vm14, %v3819_v55, %v3251_v54  ;;  %v2643_v43 = vld [vmem:[#allocation3 + $0xe1] sm:$0xff] }
 0x33a   : > { %v2274_v6 = vadd.f32 %v6781_v7, %v4771_v33  ;;  %3138 = vrot.lane.b32.xlu1 %v2641_v29, %s4993_s23 }
 0x33b   : > { %2756 = vrot.lane.b32.xlu0 %v2640_v42, %s4987_s19  ;;  %v2268_v51 = vpop.f32.mrf.mxu0 }
 0x33c   : > { %v2324_v1 = vmax.f32 %v2274_v6, 0.0  ;;  %v2269_v28 = vadd.f32 %v6781_v7, %v2268_v51  ;;  %v6827_v52 = vpop.permute.xlu1 %2996  ;;  %v6829_v14 = vpop.permute.xlu0 %2870 }
 0x33d   : > { %v3788_v47 = vsel %vm1860_vm8, %v3756_v31, %v6827_v52  ;;  %v3757_v21 = vsel %vm1794_vm6, %v3725_v27, %v6829_v14  ;;  %v2678_v27 = vld [vmem:[#allocation3 + $0x10a] sm:$0xff] }
 0x33e   : > { %2398 = vst.msk [vmem:[#allocation3 + $0x159] sm:$0xff] %vm1728_vm3, %v2324_v1  ;;  %v2323_v11 = vmax.f32 %v2269_v28, 0.0  ;;  %3646 = vrot.lane.b32.xlu1 %v2673_v16, %s4997_s16  ;;  %v2675_v1 = vld [vmem:[#allocation3 + $0xe2] sm:$0xff] }
 0x33f   : > { %3264 = vrot.lane.b32.xlu0 %v2672_v22, %s4994_s9 }
 0x340   : > { %2397 = vst.msk [vmem:[#allocation3 + $0x151] sm:$0xff] %vm1728_vm3, %v2323_v11  ;;  %v3505_v39 = vpop.permute.xlu1 %3504  ;;  %v3379_v4 = vpop.permute.xlu0 %3378 }
 0x341   : > { %v3917_v57 = vsel %vm3910_vm0, %v3884_v12, %v3505_v39  ;;  %v3885_v2 = vsel %vm3877_vm15, %v3852_v5, %v3379_v4  ;;  %v6950_v5 = vld [vmem:[#allocation3 + $0xf8] sm:$0xff] }
 0x342   : > { %2884 = vrot.lane.b32.xlu1 %v2672_v22, %s4989_s21 }
 0x343   : > { %2758 = vrot.lane.b32.xlu0 %v2641_v29, %s4987_s19  ;;  %v2674_v29 = vld [vmem:[#allocation3 + $0xda] sm:$0xff] }
 0x344   : > { %v6844_v44 = vpop.permute.xlu1 %3124  ;;  %v6846_v23 = vpop.permute.xlu0 %2998 }
 0x345   : > { %v3820_v17 = vsel %vm1926_vm9, %v3788_v47, %v6844_v44  ;;  %v3789_v41 = vsel %vm1860_vm8, %v3757_v21, %v6846_v23  ;;  %v2647_v21 = vld [vmem:[#allocation3 + $0x111] sm:$0xff] }
 0x346   : > { %3392 = vrot.lane.b32.xlu1 %v6850_v37, %s4995_s22 }
 0x347   : > { %3266 = vrot.lane.b32.xlu0 %v2673_v16, %s4994_s9 }
 0x348   : > { %v3633_v10 = vpop.permute.xlu1 %3632  ;;  %v3507_v19 = vpop.permute.xlu0 %3506 }
 0x349   : > { %v3950_v49 = vsel %vm3943_vm1, %v3917_v57, %v3633_v10  ;;  %v3918_v42 = vsel %vm3910_vm0, %v3885_v2, %v3507_v19 }
 0x34a   : > { %3012 = vrot.lane.b32.xlu1 %v6850_v37, %s4991_s20  ;;  %4805 = vmatprep.mubr.msk.f32.mxu1 %vm3992_vm2, %v3950_v49 }
 0x34b   : > { %2886 = vrot.lane.b32.xlu0 %v2673_v16, %s4989_s21 }
 0x34c   : > { %v6870_v26 = vpop.permute.xlu1 %3126  ;;  %v6872_v53 = vpop.permute.xlu0 %2744 }
 0x34d   : > { %v4774_v8 = vpop.f32.mrf.mxu0 }
 0x34e   : > { %v2284_v35 = vadd.f32 %v6781_v7, %v4774_v8  ;;  %3520 = vrot.lane.b32.xlu1 %v2642_v25, %s4996_s29  ;;  %v3821_v8 = vsel %vm1926_vm9, %v3789_v41, %v6870_v26 }
 0x34f   : > { %3394 = vrot.lane.b32.xlu0 %v6879_v58, %s4995_s22  ;;  %v2278_v9 = vpop.f32.mrf.mxu0 }
 0x350   : > { %v2326_v18 = vmax.f32 %v2284_v35, 0.0  ;;  %v2279_v30 = vadd.f32 %v6781_v7, %v2278_v9  ;;  %v3635_v46 = vpop.permute.xlu1 %3634  ;;  %v3253_v20 = vpop.permute.xlu0 %3252 }
 0x351   : > { %v3951_v59 = vsel %vm3943_vm1, %v3918_v42, %v3635_v46  ;;  %v3853_v10 = vsel %vm3844_vm14, %v3820_v17, %v3253_v20 }
 0x352   : > { %2400 = vst.msk [vmem:[#allocation3 + $0x171] sm:$0xff] %vm1728_vm3, %v2326_v18  ;;  %v2325_v0 = vmax.f32 %v2279_v30, 0.0  ;;  %3140 = vrot.lane.b32.xlu1 %v2642_v25, %s4993_s23  ;;  %4806 = vmatmul.mubr.msk.f32.gmra.mxu1 %vm3992_vm2, %v3951_v59  ;;  %v2676_v18 = vld [vmem:[#allocation3 + $0xf2] sm:$0xff] }
 0x353   : > { %3014 = vrot.lane.b32.xlu0 %v6879_v58, %s4991_s20  ;;  %v2645_v30 = vld [vmem:[#allocation3 + $0xf9] sm:$0xff] }
 0x354   : > { %2399 = vst.msk [vmem:[#allocation3 + $0x169] sm:$0xff] %vm1728_vm3, %v2325_v0  ;;  %v6893_v63 = vpop.permute.xlu1 %2872  ;;  %v6895_v22 = vpop.permute.xlu0 %2746 }
 0x356   : > { %3648 = vrot.lane.b32.xlu1 %v2674_v29, %s4997_s16 }
 0x357   : > { %3522 = vrot.lane.b32.xlu0 %v2643_v43, %s4996_s29 }
 0x358   : > { %v3381_v54 = vpop.permute.xlu1 %3380  ;;  %v3255_v33 = vpop.permute.xlu0 %3254 }
 0x359   : > { %v3886_v13 = vsel %vm3877_vm15, %v3853_v10, %v3381_v54  ;;  %v3854_v50 = vsel %vm3844_vm14, %v3821_v8, %v3255_v33  ;;  %v3726_v33 = vsel %vm1728_vm3, %v6570_v32, %v6872_v53  ;;  %v2646_v10 = vld [vmem:[#allocation3 + $0x109] sm:$0xff] }
 0x35a   : > { %3142 = vrot.lane.b32.xlu1 %v2643_v43, %s4993_s23 }
 0x35b   : > { %2760 = vrot.lane.b32.xlu0 %v2642_v25, %s4987_s19 }
 0x35c   : > { %v6901_v6 = vpop.permute.xlu1 %3000 }
 0x35d   : > { %v6903_v51 = vpop.permute.xlu0 %2874 }
 0x35e   : > { %3650 = vrot.lane.b32.xlu1 %v2675_v1, %s4997_s16 }
 0x35f   : > { %3268 = vrot.lane.b32.xlu0 %v2674_v29, %s4994_s9  ;;  %v4777_v28 = vpop.f32.mrf.mxu0 }
 0x360   : > { %v2294_v16 = vadd.f32 %v6781_v7, %v4777_v28  ;;  %v3509_v11 = vpop.permute.xlu1 %3508 }
 0x361   : > { %v3383_v39 = vpop.permute.xlu0 %3382  ;;  %v2288_v4 = vpop.f32.mrf.mxu0  ;;  %v3919_v52 = vsel %vm3910_vm0, %v3886_v13, %v3509_v11 }
 0x362   : > { %v2328_v38 = vmax.f32 %v2294_v16, 0.0  ;;  %v2289_v62 = vadd.f32 %v6781_v7, %v2288_v4  ;;  %2888 = vrot.lane.b32.xlu1 %v2674_v29, %s4989_s21  ;;  %v6923_v7 = vld [vmem:[#allocation3 + $0xf0] sm:$0xff]  ;;  %v3887_v14 = vsel %vm3877_vm15, %v3854_v50, %v3383_v39  ;;  %v2677_v29 = vld [vmem:[#allocation3 + $0xfa] sm:$0xff]  ;;  %v6987_v4 = vld [vmem:[#allocation3 + $0x108] sm:$0xff] }
 0x363   : > { %2762 = vrot.lane.b32.xlu0 %v2643_v43, %s4987_s19  ;;  %v2679_v50 = vld [vmem:[#allocation3 + $0x112] sm:$0xff] }
 0x364   : > { %2402 = vst.msk [vmem:[#allocation3 + $0x189] sm:$0xff] %vm1728_vm3, %v2328_v38  ;;  %v2327_v12 = vmax.f32 %v2289_v62, 0.0  ;;  %v3129_v57 = vpop.permute.xlu1 %3128  ;;  %v3727_v62 = vsel %vm1728_vm3, %v6584_v40, %v6895_v22  ;;  %v7012_v22 = vld [vmem:[#allocation3 + $0x110] sm:$0xff] }
 0x365   : > { %v6921_v45 = vpop.permute.xlu0 %3002  ;;  %v3759_v31 = vsel %vm1794_vm6, %v3727_v62, %v6903_v51  ;;  %v2680_v62 = vld [vmem:[#allocation3 + $0x122] sm:$0xff] }
 0x366   : > { %2401 = vst.msk [vmem:[#allocation3 + $0x181] sm:$0xff] %vm1728_vm3, %v2327_v12  ;;  %3396 = vrot.lane.b32.xlu1 %v6923_v7, %s4995_s22  ;;  %v3791_v47 = vsel %vm1860_vm8, %v3759_v31, %v6921_v45  ;;  %v2649_v31 = vld [vmem:[#allocation3 + $0x129] sm:$0xff] }
 0x367   : > { %3270 = vrot.lane.b32.xlu0 %v2675_v1, %s4994_s9 }
 0x368   : > { %v3637_v19 = vpop.permute.xlu1 %3636 }
 0x369   : > { %v3952_v44 = vsel %vm3943_vm1, %v3919_v52, %v3637_v19  ;;  %v3511_v49 = vpop.permute.xlu0 %3510 }
 0x36a   : > { %3016 = vrot.lane.b32.xlu1 %v6923_v7, %s4991_s20  ;;  %4808 = vmatprep.mubr.msk.f32.mxu1 %vm3992_vm2, %v3952_v44  ;;  %v3920_v23 = vsel %vm3910_vm0, %v3887_v14, %v3511_v49 }
 0x36b   : > { %2890 = vrot.lane.b32.xlu0 %v2675_v1, %s4989_s21  ;;  %v3758_v1 = vsel %vm1794_vm6, %v3726_v33, %v6893_v63 }
 0x36c   : > { %v3131_v55 = vpop.permute.xlu1 %3130  ;;  %v3790_v28 = vsel %vm1860_vm8, %v3758_v1, %v6901_v6 }
 0x36d   : > { %v6946_v25 = vpop.permute.xlu0 %2748  ;;  %v3822_v11 = vsel %vm1926_vm9, %v3790_v28, %v3129_v57  ;;  %v3823_v57 = vsel %vm1926_vm9, %v3791_v47, %v3131_v55 }
 0x36e   : > { %3524 = vrot.lane.b32.xlu1 %v2644_v61, %s4996_s29 }
 0x36f   : > { %3398 = vrot.lane.b32.xlu0 %v6950_v5, %s4995_s22 }
 0x370   : > { %v3639_v35 = vpop.permute.xlu1 %3638 }
 0x371   : > { %v3953_v2 = vsel %vm3943_vm1, %v3920_v23, %v3639_v35  ;;  %v3257_v26 = vpop.permute.xlu0 %3256  ;;  %v3728_v35 = vsel %vm1728_vm3, %v6622_v36, %v6946_v25 }
 0x372   : > { %3144 = vrot.lane.b32.xlu1 %v2644_v61, %s4993_s23  ;;  %4809 = vmatmul.mubr.msk.f32.gmra.mxu1 %vm3992_vm2, %v3953_v2  ;;  %v3855_v60 = vsel %vm3844_vm14, %v3822_v11, %v3257_v26 }
 0x373   : > { %3018 = vrot.lane.b32.xlu0 %v6950_v5, %s4991_s20 }
 0x374   : > { %v6961_v9 = vpop.permute.xlu1 %2876 }
 0x375   : > { %v6963_v42 = vpop.permute.xlu0 %2750  ;;  %v3760_v2 = vsel %vm1794_vm6, %v3728_v35, %v6961_v9 }
 0x376   : > { %3652 = vrot.lane.b32.xlu1 %v2676_v18, %s4997_s16 }
 0x377   : > { %3526 = vrot.lane.b32.xlu0 %v2645_v30, %s4996_s29 }
 0x378   : > { %v3385_v46 = vpop.permute.xlu1 %3384 }
 0x379   : > { %v3259_v20 = vpop.permute.xlu0 %3258  ;;  %v3888_v32 = vsel %vm3877_vm15, %v3855_v60, %v3385_v46  ;;  %v2648_v60 = vld [vmem:[#allocation3 + $0x121] sm:$0xff] }
 0x37a   : > { %3146 = vrot.lane.b32.xlu1 %v2645_v30, %s4993_s23  ;;  %v3856_v40 = vsel %vm3844_vm14, %v3823_v57, %v3259_v20  ;;  %v7049_v20 = vld [vmem:[#allocation3 + $0x120] sm:$0xff] }
 0x37b   : > { %2764 = vrot.lane.b32.xlu0 %v2644_v61, %s4987_s19 }
 0x37c   : > { %v6969_v59 = vpop.permute.xlu1 %3004 }
 0x37d   : > { %v6971_v0 = vpop.permute.xlu0 %2878  ;;  %v3792_v26 = vsel %vm1860_vm8, %v3760_v2, %v6969_v59 }
 0x37e   : > { %3654 = vrot.lane.b32.xlu1 %v2677_v29, %s4997_s16 }
 0x37f   : > { %3272 = vrot.lane.b32.xlu0 %v2676_v18, %s4994_s9 }
 0x380   : > { %v3513_v43 = vpop.permute.xlu1 %3512 }
 0x381   : > { %v3387_v54 = vpop.permute.xlu0 %3386  ;;  %v3921_v53 = vsel %vm3910_vm0, %v3888_v32, %v3513_v43 }
 0x382   : > { %2892 = vrot.lane.b32.xlu1 %v2676_v18, %s4989_s21  ;;  %v3889_v13 = vsel %vm3877_vm15, %v3856_v40, %v3387_v54  ;;  %v3729_v54 = vsel %vm1728_vm3, %v6652_v48, %v6963_v42  ;;  %v7074_v42 = vld [vmem:[#allocation3 + $0x128] sm:$0xff] }
 0x383   : > { %2766 = vrot.lane.b32.xlu0 %v2645_v30, %s4987_s19  ;;  %v3761_v33 = vsel %vm1794_vm6, %v3729_v54, %v6971_v0  ;;  %v2681_v40 = vld [vmem:[#allocation3 + $0x12a] sm:$0xff]  ;;  %v2682_v54 = vld [vmem:[#allocation3 + $0x13a] sm:$0xff] }
 0x384   : > { %v3133_v16 = vpop.permute.xlu1 %3132 }
 0x385   : > { %v6985_v39 = vpop.permute.xlu0 %3006  ;;  %v3824_v30 = vsel %vm1926_vm9, %v3792_v26, %v3133_v16 }
 0x386   : > { %3400 = vrot.lane.b32.xlu1 %v6987_v4, %s4995_s22  ;;  %v3793_v1 = vsel %vm1860_vm8, %v3761_v33, %v6985_v39  ;;  %v2651_v33 = vld [vmem:[#allocation3 + $0x141] sm:$0xff] }
 0x387   : > { %3274 = vrot.lane.b32.xlu0 %v2677_v29, %s4994_s9 }
 0x388   : > { %v3641_v63 = vpop.permute.xlu1 %3640 }
 0x389   : > { %v3954_v6 = vsel %vm3943_vm1, %v3921_v53, %v3641_v63  ;;  %v3515_v38 = vpop.permute.xlu0 %3514 }
 0x38a   : > { %3020 = vrot.lane.b32.xlu1 %v6987_v4, %s4991_s20  ;;  %4811 = vmatprep.mubr.msk.f32.mxu1 %vm3992_vm2, %v3954_v6  ;;  %v3922_v51 = vsel %vm3910_vm0, %v3889_v13, %v3515_v38 }
 0x38b   : > { %2894 = vrot.lane.b32.xlu0 %v2677_v29, %s4989_s21 }
 0x38c   : > { %v3135_v12 = vpop.permute.xlu1 %3134 }
 0x38d   : > { %v7008_v17 = vpop.permute.xlu0 %2752  ;;  %v3825_v16 = vsel %vm1926_vm9, %v3793_v1, %v3135_v12 }
 0x38e   : > { %3528 = vrot.lane.b32.xlu1 %v2646_v10, %s4996_s29 }
 0x38f   : > { %3402 = vrot.lane.b32.xlu0 %v7012_v22, %s4995_s22 }
 0x390   : > { %v3643_v45 = vpop.permute.xlu1 %3642 }
 0x391   : > { %v3955_v52 = vsel %vm3943_vm1, %v3922_v51, %v3643_v45  ;;  %v3261_v19 = vpop.permute.xlu0 %3260  ;;  %v3730_v45 = vsel %vm1728_vm3, %v6697_v56, %v7008_v17 }
 0x392   : > { %3148 = vrot.lane.b32.xlu1 %v2646_v10, %s4993_s23  ;;  %4812 = vmatmul.mubr.msk.f32.gmra.mxu1 %vm3992_vm2, %v3955_v52  ;;  %v3857_v29 = vsel %vm3844_vm14, %v3824_v30, %v3261_v19 }
 0x393   : > { %3022 = vrot.lane.b32.xlu0 %v7012_v22, %s4991_s20 }
 0x394   : > { %v7023_v44 = vpop.permute.xlu1 %2880 }
 0x395   : > { %v7025_v49 = vpop.permute.xlu0 %2754  ;;  %v3762_v52 = vsel %vm1794_vm6, %v3730_v45, %v7023_v44 }
 0x396   : > { %3656 = vrot.lane.b32.xlu1 %v2678_v27, %s4997_s16 }
 0x397   : > { %3530 = vrot.lane.b32.xlu0 %v2647_v21, %s4996_s29 }
 0x398   : > { %v3389_v41 = vpop.permute.xlu1 %3388 }
 0x399   : > { %v3263_v55 = vpop.permute.xlu0 %3262  ;;  %v3890_v36 = vsel %vm3877_vm15, %v3857_v29, %v3389_v41  ;;  %v2650_v29 = vld [vmem:[#allocation3 + $0x139] sm:$0xff] }
 0x39a   : > { %3150 = vrot.lane.b32.xlu1 %v2647_v21, %s4993_s23  ;;  %v3858_v48 = vsel %vm3844_vm14, %v3825_v16, %v3263_v55  ;;  %v7111_v55 = vld [vmem:[#allocation3 + $0x138] sm:$0xff] }
 0x39b   : > { %2768 = vrot.lane.b32.xlu0 %v2646_v10, %s4987_s19 }
 0x39c   : > { %v7031_v8 = vpop.permute.xlu1 %3008 }
 0x39d   : > { %v7033_v61 = vpop.permute.xlu0 %2882  ;;  %v3794_v19 = vsel %vm1860_vm8, %v3762_v52, %v7031_v8 }
 0x39e   : > { %3658 = vrot.lane.b32.xlu1 %v2679_v50, %s4997_s16 }
 0x39f   : > { %3276 = vrot.lane.b32.xlu0 %v2678_v27, %s4994_s9 }
 0x3a0   : > { %v3517_v14 = vpop.permute.xlu1 %3516 }
 0x3a1   : > { %v3391_v23 = vpop.permute.xlu0 %3390  ;;  %v3923_v25 = vsel %vm3910_vm0, %v3890_v36, %v3517_v14 }
 0x3a2   : > { %2896 = vrot.lane.b32.xlu1 %v2678_v27, %s4989_s21  ;;  %v3891_v32 = vsel %vm3877_vm15, %v3858_v48, %v3391_v23  ;;  %v3731_v23 = vsel %vm1728_vm3, %v6725_v15, %v7025_v49  ;;  %v7136_v49 = vld [vmem:[#allocation3 + $0x140] sm:$0xff] }
 0x3a3   : > { %2770 = vrot.lane.b32.xlu0 %v2647_v21, %s4987_s19  ;;  %v3763_v35 = vsel %vm1794_vm6, %v3731_v23, %v7033_v61  ;;  %v2683_v48 = vld [vmem:[#allocation3 + $0x142] sm:$0xff]  ;;  %v2684_v23 = vld [vmem:[#allocation3 + $0x152] sm:$0xff] }
 0x3a4   : > { %v3137_v18 = vpop.permute.xlu1 %3136 }
 0x3a5   : > { %v7047_v46 = vpop.permute.xlu0 %3010  ;;  %v3826_v21 = vsel %vm1926_vm9, %v3794_v19, %v3137_v18 }
 0x3a6   : > { %3404 = vrot.lane.b32.xlu1 %v7049_v20, %s4995_s22  ;;  %v3795_v2 = vsel %vm1860_vm8, %v3763_v35, %v7047_v46  ;;  %v2653_v35 = vld [vmem:[#allocation3 + $0x159] sm:$0xff] }
 0x3a7   : > { %3278 = vrot.lane.b32.xlu0 %v2679_v50, %s4994_s9 }
 0x3a8   : > { %v3645_v9 = vpop.permute.xlu1 %3644 }
 0x3a9   : > { %v3956_v59 = vsel %vm3943_vm1, %v3923_v25, %v3645_v9  ;;  %v3519_v43 = vpop.permute.xlu0 %3518 }
 0x3aa   : > { %3024 = vrot.lane.b32.xlu1 %v7049_v20, %s4991_s20  ;;  %4814 = vmatprep.mubr.msk.f32.mxu1 %vm3992_vm2, %v3956_v59  ;;  %v3924_v0 = vsel %vm3910_vm0, %v3891_v32, %v3519_v43 }
 0x3ab   : > { %2898 = vrot.lane.b32.xlu0 %v2679_v50, %s4989_s21 }
 0x3ac   : > { %v3139_v28 = vpop.permute.xlu1 %3138 }
 0x3ad   : > { %v7070_v11 = vpop.permute.xlu0 %2756  ;;  %v3827_v18 = vsel %vm1926_vm9, %v3795_v2, %v3139_v28 }
 0x3ae   : > { %3532 = vrot.lane.b32.xlu1 %v2648_v60, %s4996_s29 }
 0x3af   : > { %3406 = vrot.lane.b32.xlu0 %v7074_v42, %s4995_s22 }
 0x3b0   : > { %v3647_v39 = vpop.permute.xlu1 %3646 }
 0x3b1   : > { %v3957_v53 = vsel %vm3943_vm1, %v3924_v0, %v3647_v39  ;;  %v3265_v63 = vpop.permute.xlu0 %3264  ;;  %v3732_v39 = vsel %vm1728_vm3, %v6769_v34, %v7070_v11 }
 0x3b2   : > { %3152 = vrot.lane.b32.xlu1 %v2648_v60, %s4993_s23  ;;  %4815 = vmatmul.mubr.msk.f32.gmra.mxu1 %vm3992_vm2, %v3957_v53  ;;  %v3859_v50 = vsel %vm3844_vm14, %v3826_v21, %v3265_v63 }
 0x3b3   : > { %3026 = vrot.lane.b32.xlu0 %v7074_v42, %s4991_s20 }
 0x3b4   : > { %v7085_v6 = vpop.permute.xlu1 %2884 }
 0x3b5   : > { %v7087_v38 = vpop.permute.xlu0 %2758  ;;  %v3764_v53 = vsel %vm1794_vm6, %v3732_v39, %v7085_v6 }
 0x3b6   : > { %3660 = vrot.lane.b32.xlu1 %v2680_v62, %s4997_s16 }
 0x3b7   : > { %3534 = vrot.lane.b32.xlu0 %v2649_v31, %s4996_s29 }
 0x3b8   : > { %v3393_v47 = vpop.permute.xlu1 %3392 }
 0x3b9   : > { %v3267_v12 = vpop.permute.xlu0 %3266  ;;  %v3892_v56 = vsel %vm3877_vm15, %v3859_v50, %v3393_v47  ;;  %v2652_v50 = vld [vmem:[#allocation3 + $0x151] sm:$0xff] }
 0x3ba   : > { %3154 = vrot.lane.b32.xlu1 %v2649_v31, %s4993_s23  ;;  %v3860_v15 = vsel %vm3844_vm14, %v3827_v18, %v3267_v12  ;;  %v7173_v12 = vld [vmem:[#allocation3 + $0x150] sm:$0xff] }
 0x3bb   : > { %2772 = vrot.lane.b32.xlu0 %v2648_v60, %s4987_s19 }
 0x3bc   : > { %v7093_v57 = vpop.permute.xlu1 %3012 }
 0x3bd   : > { %v7095_v10 = vpop.permute.xlu0 %2886  ;;  %v3796_v63 = vsel %vm1860_vm8, %v3764_v53, %v7093_v57 }
 0x3be   : > { %3662 = vrot.lane.b32.xlu1 %v2681_v40, %s4997_s16 }
 0x3bf   : > { %3280 = vrot.lane.b32.xlu0 %v2680_v62, %s4994_s9 }
 0x3c0   : > { %v3521_v13 = vpop.permute.xlu1 %3520 }
 0x3c1   : > { %v3395_v51 = vpop.permute.xlu0 %3394  ;;  %v3925_v17 = vsel %vm3910_vm0, %v3892_v56, %v3521_v13 }
 0x3c2   : > { %2900 = vrot.lane.b32.xlu1 %v2680_v62, %s4989_s21  ;;  %v3893_v36 = vsel %vm3877_vm15, %v3860_v15, %v3395_v51  ;;  %v3733_v51 = vsel %vm1728_vm3, %v6806_v24, %v7087_v38  ;;  %v7198_v38 = vld [vmem:[#allocation3 + $0x158] sm:$0xff] }
 0x3c3   : > { %2774 = vrot.lane.b32.xlu0 %v2649_v31, %s4987_s19  ;;  %v3765_v45 = vsel %vm1794_vm6, %v3733_v51, %v7095_v10  ;;  %v2685_v15 = vld [vmem:[#allocation3 + $0x15a] sm:$0xff]  ;;  %v2686_v51 = vld [vmem:[#allocation3 + $0x16a] sm:$0xff] }
 0x3c4   : > { %v3141_v27 = vpop.permute.xlu1 %3140 }
 0x3c5   : > { %v7109_v41 = vpop.permute.xlu0 %3014  ;;  %v3828_v31 = vsel %vm1926_vm9, %v3796_v63, %v3141_v27 }
 0x3c6   : > { %3408 = vrot.lane.b32.xlu1 %v7111_v55, %s4995_s22  ;;  %v3797_v52 = vsel %vm1860_vm8, %v3765_v45, %v7109_v41  ;;  %v2655_v45 = vld [vmem:[#allocation3 + $0x171] sm:$0xff] }
 0x3c7   : > { %3282 = vrot.lane.b32.xlu0 %v2681_v40, %s4994_s9 }
 0x3c8   : > { %v3649_v44 = vpop.permute.xlu1 %3648 }
 0x3c9   : > { %v3958_v8 = vsel %vm3943_vm1, %v3925_v17, %v3649_v44  ;;  %v3523_v14 = vpop.permute.xlu0 %3522 }
 0x3ca   : > { %3028 = vrot.lane.b32.xlu1 %v7111_v55, %s4991_s20  ;;  %4817 = vmatprep.mubr.msk.f32.mxu1 %vm3992_vm2, %v3958_v8  ;;  %v3926_v61 = vsel %vm3910_vm0, %v3893_v36, %v3523_v14 }
 0x3cb   : > { %2902 = vrot.lane.b32.xlu0 %v2681_v40, %s4989_s21 }
 0x3cc   : > { %v3143_v26 = vpop.permute.xlu1 %3142 }
 0x3cd   : > { %v7132_v30 = vpop.permute.xlu0 %2760  ;;  %v3829_v27 = vsel %vm1926_vm9, %v3797_v52, %v3143_v26 }
 0x3ce   : > { %3536 = vrot.lane.b32.xlu1 %v2650_v29, %s4996_s29 }
 0x3cf   : > { %3410 = vrot.lane.b32.xlu0 %v7136_v49, %s4995_s22 }
 0x3d0   : > { %v3651_v46 = vpop.permute.xlu1 %3650 }
 0x3d1   : > { %v3959_v25 = vsel %vm3943_vm1, %v3926_v61, %v3651_v46  ;;  %v3269_v9 = vpop.permute.xlu0 %3268  ;;  %v3734_v46 = vsel %vm1728_vm3, %v6850_v37, %v7132_v30 }
 0x3d2   : > { %3156 = vrot.lane.b32.xlu1 %v2650_v29, %s4993_s23  ;;  %4818 = vmatmul.mubr.msk.f32.gmra.mxu1 %vm3992_vm2, %v3959_v25  ;;  %v3861_v40 = vsel %vm3844_vm14, %v3828_v31, %v3269_v9 }
 0x3d3   : > { %3030 = vrot.lane.b32.xlu0 %v7136_v49, %s4991_s20 }
 0x3d4   : > { %v7147_v59 = vpop.permute.xlu1 %2888 }
 0x3d5   : > { %v7149_v43 = vpop.permute.xlu0 %2762  ;;  %v3766_v25 = vsel %vm1794_vm6, %v3734_v46, %v7147_v59 }
 0x3d6   : > { %3664 = vrot.lane.b32.xlu1 %v2682_v54, %s4997_s16 }
 0x3d7   : > { %3538 = vrot.lane.b32.xlu0 %v2651_v33, %s4996_s29 }
 0x3d8   : > { %v3397_v1 = vpop.permute.xlu1 %3396 }
 0x3d9   : > { %v3271_v28 = vpop.permute.xlu0 %3270  ;;  %v3894_v34 = vsel %vm3877_vm15, %v3861_v40, %v3397_v1  ;;  %v2654_v40 = vld [vmem:[#allocation3 + $0x169] sm:$0xff] }
 0x3da   : > { %3158 = vrot.lane.b32.xlu1 %v2651_v33, %s4993_s23  ;;  %v3862_v24 = vsel %vm3844_vm14, %v3829_v27, %v3271_v28  ;;  %v7235_v28 = vld [vmem:[#allocation3 + $0x168] sm:$0xff] }
 0x3db   : > { %2776 = vrot.lane.b32.xlu0 %v2650_v29, %s4987_s19 }
 0x3dc   : > { %v7155_v16 = vpop.permute.xlu1 %3016 }
 0x3dd   : > { %v7157_v60 = vpop.permute.xlu0 %2890  ;;  %v3798_v9 = vsel %vm1860_vm8, %v3766_v25, %v7155_v16 }
 0x3de   : > { %3666 = vrot.lane.b32.xlu1 %v2683_v48, %s4997_s16 }
 0x3df   : > { %3284 = vrot.lane.b32.xlu0 %v2682_v54, %s4994_s9 }
 0x3e0   : > { %v3525_v32 = vpop.permute.xlu1 %3524 }
 0x3e1   : > { %v3399_v0 = vpop.permute.xlu0 %3398  ;;  %v3927_v11 = vsel %vm3910_vm0, %v3894_v34, %v3525_v32 }
 0x3e2   : > { %2904 = vrot.lane.b32.xlu1 %v2682_v54, %s4989_s21  ;;  %v3895_v56 = vsel %vm3877_vm15, %v3862_v24, %v3399_v0  ;;  %v3735_v0 = vsel %vm1728_vm3, %v6879_v58, %v7149_v43  ;;  %v7260_v43 = vld [vmem:[#allocation3 + $0x170] sm:$0xff] }
 0x3e3   : > { %2778 = vrot.lane.b32.xlu0 %v2651_v33, %s4987_s19  ;;  %v3767_v39 = vsel %vm1794_vm6, %v3735_v0, %v7157_v60  ;;  %v2687_v24 = vld [vmem:[#allocation3 + $0x172] sm:$0xff]  ;;  %v2688_v0 = vld [vmem:[#allocation3 + $0x182] sm:$0xff] }
 0x3e4   : > { %v3145_v62 = vpop.permute.xlu1 %3144 }
 0x3e5   : > { %v7171_v47 = vpop.permute.xlu0 %3018  ;;  %v3830_v33 = vsel %vm1926_vm9, %v3798_v9, %v3145_v62 }
 0x3e6   : > { %3412 = vrot.lane.b32.xlu1 %v7173_v12, %s4995_s22  ;;  %v3799_v53 = vsel %vm1860_vm8, %v3767_v39, %v7171_v47  ;;  %v2657_v39 = vld [vmem:[#allocation3 + $0x189] sm:$0xff] }
 0x3e7   : > { %3286 = vrot.lane.b32.xlu0 %v2683_v48, %s4994_s9 }
 0x3e8   : > { %v3653_v6 = vpop.permute.xlu1 %3652 }
 0x3e9   : > { %v3960_v57 = vsel %vm3943_vm1, %v3927_v11, %v3653_v6  ;;  %v3527_v13 = vpop.permute.xlu0 %3526 }
 0x3ea   : > { %3032 = vrot.lane.b32.xlu1 %v7173_v12, %s4991_s20  ;;  %4820 = vmatprep.mubr.msk.f32.mxu1 %vm3992_vm2, %v3960_v57  ;;  %v3928_v10 = vsel %vm3910_vm0, %v3895_v56, %v3527_v13 }
 0x3eb   : > { %2906 = vrot.lane.b32.xlu0 %v2683_v48, %s4989_s21 }
 0x3ec   : > { %v3147_v19 = vpop.permute.xlu1 %3146 }
 0x3ed   : > { %v7194_v21 = vpop.permute.xlu0 %2764  ;;  %v3831_v62 = vsel %vm1926_vm9, %v3799_v53, %v3147_v19 }
 0x3ee   : > { %3540 = vrot.lane.b32.xlu1 %v2652_v50, %s4996_s29 }
 0x3ef   : > { %3414 = vrot.lane.b32.xlu0 %v7198_v38, %s4995_s22 }
 0x3f0   : > { %v3655_v41 = vpop.permute.xlu1 %3654 }
 0x3f1   : > { %v3961_v17 = vsel %vm3943_vm1, %v3928_v10, %v3655_v41  ;;  %v3273_v44 = vpop.permute.xlu0 %3272  ;;  %v3736_v41 = vsel %vm1728_vm3, %v6923_v7, %v7194_v21 }
 0x3f2   : > { %3160 = vrot.lane.b32.xlu1 %v2652_v50, %s4993_s23  ;;  %4821 = vmatmul.mubr.msk.f32.gmra.mxu1 %vm3992_vm2, %v3961_v17  ;;  %v3863_v48 = vsel %vm3844_vm14, %v3830_v33, %v3273_v44 }
 0x3f3   : > { %3034 = vrot.lane.b32.xlu0 %v7198_v38, %s4991_s20 }
 0x3f4   : > { %v7209_v8 = vpop.permute.xlu1 %2892 }
 0x3f5   : > { %v7211_v14 = vpop.permute.xlu0 %2766  ;;  %v3768_v17 = vsel %vm1794_vm6, %v3736_v41, %v7209_v8 }
 0x3f6   : > { %3668 = vrot.lane.b32.xlu1 %v2684_v23, %s4997_s16 }
 0x3f7   : > { %3542 = vrot.lane.b32.xlu0 %v2653_v35, %s4996_s29 }
 0x3f8   : > { %v3401_v2 = vpop.permute.xlu1 %3400 }
 0x3f9   : > { %v3275_v26 = vpop.permute.xlu0 %3274  ;;  %v3896_v37 = vsel %vm3877_vm15, %v3863_v48, %v3401_v2  ;;  %v2656_v48 = vld [vmem:[#allocation3 + $0x181] sm:$0xff] }
 0x3fa   : > { %3162 = vrot.lane.b32.xlu1 %v2653_v35, %s4993_s23  ;;  %v3864_v58 = vsel %vm3844_vm14, %v3831_v62, %v3275_v26  ;;  %v2624_v26 = vld [vmem:[#allocation3 + $0x180] sm:$0xff] }
 0x3fb   : > { %2780 = vrot.lane.b32.xlu0 %v2652_v50, %s4987_s19 }
 0x3fc   : > { %v7217_v18 = vpop.permute.xlu1 %3020 }
 0x3fd   : > { %v7219_v29 = vpop.permute.xlu0 %2894  ;;  %v3800_v44 = vsel %vm1860_vm8, %v3768_v17, %v7217_v18 }
 0x3fe   : > { %3670 = vrot.lane.b32.xlu1 %v2685_v15, %s4997_s16 }
 0x3ff   : > { %3288 = vrot.lane.b32.xlu0 %v2684_v23, %s4994_s9 }
 0x400   : > { %v3529_v36 = vpop.permute.xlu1 %3528 }
 0x401   : > { %v3403_v61 = vpop.permute.xlu0 %3402  ;;  %v3929_v30 = vsel %vm3910_vm0, %v3896_v37, %v3529_v36 }
 0x402   : > { %2908 = vrot.lane.b32.xlu1 %v2684_v23, %s4989_s21  ;;  %v3897_v34 = vsel %vm3877_vm15, %v3864_v58, %v3403_v61  ;;  %v3737_v61 = vsel %vm1728_vm3, %v6950_v5, %v7211_v14  ;;  %v2625_v14 = vld [vmem:[#allocation3 + $0x188] sm:$0xff] }
 0x403   : > { %2782 = vrot.lane.b32.xlu0 %v2653_v35, %s4987_s19  ;;  %v3769_v46 = vsel %vm1794_vm6, %v3737_v61, %v7219_v29  ;;  %v2594_v58 = vld [vmem:[#allocation3 + $0x18a] sm:$0xff] }
 0x404   : > { %v3149_v54 = vpop.permute.xlu1 %3148 }
 0x405   : > { %v7233_v1 = vpop.permute.xlu0 %3022  ;;  %v3832_v35 = vsel %vm1926_vm9, %v3800_v44, %v3149_v54  ;;  %v2690_v44 = vld [vmem:[#allocation3 + $0x19a] sm:$0xff] }
 0x406   : > { %3416 = vrot.lane.b32.xlu1 %v7235_v28, %s4995_s22  ;;  %v3801_v25 = vsel %vm1860_vm8, %v3769_v46, %v7233_v1 }
 0x407   : > { %3290 = vrot.lane.b32.xlu0 %v2685_v15, %s4994_s9 }
 0x408   : > { %v3657_v59 = vpop.permute.xlu1 %3656 }
 0x409   : > { %v3962_v16 = vsel %vm3943_vm1, %v3929_v30, %v3657_v59  ;;  %v3531_v32 = vpop.permute.xlu0 %3530 }
 0x40a   : > { %3036 = vrot.lane.b32.xlu1 %v7235_v28, %s4991_s20  ;;  %4823 = vmatprep.mubr.msk.f32.mxu1 %vm3992_vm2, %v3962_v16  ;;  %v3930_v60 = vsel %vm3910_vm0, %v3897_v34, %v3531_v32  ;;  %v2627_v34 = vld [vmem:[#allocation3 + $0x1a0] sm:$0xff] }
 0x40b   : > { %2910 = vrot.lane.b32.xlu0 %v2685_v15, %s4989_s21 }
 0x40c   : > { %v3151_v63 = vpop.permute.xlu1 %3150 }
 0x40d   : > { %v7256_v31 = vpop.permute.xlu0 %2768  ;;  %v3833_v54 = vsel %vm1926_vm9, %v3801_v25, %v3151_v63 }
 0x40e   : > { %3544 = vrot.lane.b32.xlu1 %v2654_v40, %s4996_s29 }
 0x40f   : > { %3418 = vrot.lane.b32.xlu0 %v7260_v43, %s4995_s22 }
 0x410   : > { %v3659_v47 = vpop.permute.xlu1 %3658 }
 0x411   : > { %v3963_v11 = vsel %vm3943_vm1, %v3930_v60, %v3659_v47  ;;  %v3277_v6 = vpop.permute.xlu0 %3276  ;;  %v2626_v47 = vld [vmem:[#allocation3 + $0x198] sm:$0xff] }
 0x412   : > { %3164 = vrot.lane.b32.xlu1 %v2654_v40, %s4993_s23  ;;  %4824 = vmatmul.mubr.msk.f32.gmra.mxu1 %vm3992_vm2, %v3963_v11  ;;  %v3865_v15 = vsel %vm3844_vm14, %v3832_v35, %v3277_v6  ;;  %v3738_v6 = vsel %vm1728_vm3, %v6987_v4, %v7256_v31  ;;  %v2691_v31 = vld [vmem:[#allocation3 + $0x1a2] sm:$0xff] }
 0x413   : > { %3038 = vrot.lane.b32.xlu0 %v7260_v43, %s4991_s20 }
 0x414   : > { %v7271_v57 = vpop.permute.xlu1 %2896 }
 0x415   : > { %v7273_v13 = vpop.permute.xlu0 %2770 }
 0x416   : > { %3672 = vrot.lane.b32.xlu1 %v2686_v51, %s4997_s16 }
 0x417   : > { %3546 = vrot.lane.b32.xlu0 %v2655_v45, %s4996_s29 }
 0x418   : > { %v3405_v52 = vpop.permute.xlu1 %3404 }
 0x419   : > { %v3279_v19 = vpop.permute.xlu0 %3278  ;;  %v3898_v7 = vsel %vm3877_vm15, %v3865_v15, %v3405_v52 }
 0x41a   : > { %3166 = vrot.lane.b32.xlu1 %v2655_v45, %s4993_s23  ;;  %v3866_v5 = vsel %vm3844_vm14, %v3833_v54, %v3279_v19 }
 0x41b   : > { %2784 = vrot.lane.b32.xlu0 %v2654_v40, %s4987_s19 }
 0x41c   : > { %v7279_v27 = vpop.permute.xlu1 %3024 }
 0x41d   : > { %v7281_v50 = vpop.permute.xlu0 %2898 }
 0x41e   : > { %3674 = vrot.lane.b32.xlu1 %v2687_v24, %s4997_s16 }
 0x41f   : > { %3292 = vrot.lane.b32.xlu0 %v2686_v51, %s4994_s9 }
 0x420   : > { %v3533_v56 = vpop.permute.xlu1 %3532 }
 0x421   : > { %v3407_v10 = vpop.permute.xlu0 %3406  ;;  %v3931_v21 = vsel %vm3910_vm0, %v3898_v7, %v3533_v56 }
 0x422   : > { %2912 = vrot.lane.b32.xlu1 %v2686_v51, %s4989_s21  ;;  %v3899_v37 = vsel %vm3877_vm15, %v3866_v5, %v3407_v10  ;;  %v3770_v51 = vsel %vm1794_vm6, %v3738_v6, %v7271_v57 }
 0x423   : > { %2786 = vrot.lane.b32.xlu0 %v2655_v45, %s4987_s19  ;;  %v2659_v45 = vld [vmem:[#allocation3 + $0x1a1] sm:$0xff]  ;;  %v3802_v52 = vsel %vm1860_vm8, %v3770_v51, %v7279_v27 }
 0x424   : > { %v3153_v23 = vpop.permute.xlu1 %3152 }
 0x425   : > { %v7295_v2 = vpop.permute.xlu0 %3026  ;;  %v3834_v56 = vsel %vm1926_vm9, %v3802_v52, %v3153_v23  ;;  %v3739_v23 = vsel %vm1728_vm3, %v7012_v22, %v7273_v13 }
 0x426   : > { %3420 = vrot.lane.b32.xlu1 %v2624_v26, %s4995_s22 }
 0x427   : > { %3294 = vrot.lane.b32.xlu0 %v2687_v24, %s4994_s9 }
 0x428   : > { %v3661_v8 = vpop.permute.xlu1 %3660 }
 0x429   : > { %v3964_v36 = vsel %vm3943_vm1, %v3931_v21, %v3661_v8  ;;  %v3535_v18 = vpop.permute.xlu0 %3534 }
 0x42a   : > { %3040 = vrot.lane.b32.xlu1 %v2624_v26, %s4991_s20  ;;  %4826 = vmatprep.mubr.msk.f32.mxu1 %vm3992_vm2, %v3964_v36  ;;  %v3932_v29 = vsel %vm3910_vm0, %v3899_v37, %v3535_v18  ;;  %v3771_v26 = vsel %vm1794_vm6, %v3739_v23, %v7281_v50 }
 0x42b   : > { %2914 = vrot.lane.b32.xlu0 %v2687_v24, %s4989_s21  ;;  %v2658_v24 = vld [vmem:[#allocation3 + $0x199] sm:$0xff]  ;;  %v3803_v15 = vsel %vm1860_vm8, %v3771_v26, %v7295_v2  ;;  %s4927_s21 = sshll.u32 %s4999_s28, 4  ;;  %s4928_s21 = int_to_ptr.vmem [resolvable:$false] %s4927_s21 }
 0x42c   : > { %v7313_v9 = vpop.permute.xlu1 %3154 }
 0x42d   : > { %v7316_v33 = vpop.permute.xlu0 %2772  ;;  %v3835_v21 = vsel %vm1926_vm9, %v3803_v15, %v7313_v9 }
 0x42e   : > { %3548 = vrot.lane.b32.xlu1 %v2656_v48, %s4996_s29  ;;  %v3740_v37 = vsel %vm1728_vm3, %v7049_v20, %v7316_v33 }
 0x42f   : > { %3422 = vrot.lane.b32.xlu0 %v2625_v14, %s4995_s22 }
 0x430   : > { %v3663_v30 = vpop.permute.xlu1 %3662 }
 0x431   : > { %v3965_v1 = vsel %vm3943_vm1, %v3932_v29, %v3663_v30  ;;  %v3281_v59 = vpop.permute.xlu0 %3280 }
 0x432   : > { %3168 = vrot.lane.b32.xlu1 %v2656_v48, %s4993_s23  ;;  %4827 = vmatmul.mubr.msk.f32.gmra.mxu1 %vm3992_vm2, %v3965_v1  ;;  %v3867_v41 = vsel %vm3844_vm14, %v3834_v56, %v3281_v59 }
 0x433   : > { %3042 = vrot.lane.b32.xlu0 %v2625_v14, %s4991_s20  ;;  %s4929_s20 = scalar_lea.vmem %s4928_s21, 32 }
 0x434   : > { %v7327_v16 = vpop.permute.xlu1 %2900 }
 0x435   : > { %v7329_v32 = vpop.permute.xlu0 %2774  ;;  %v3772_v29 = vsel %vm1794_vm6, %v3740_v37, %v7327_v16 }
 0x436   : > { %3676 = vrot.lane.b32.xlu1 %v2688_v0, %s4997_s16  ;;  %v3741_v20 = vsel %vm1728_vm3, %v7074_v42, %v7329_v32 }
 0x437   : > { %3550 = vrot.lane.b32.xlu0 %v2657_v39, %s4996_s29 }
 0x438   : > { %v3409_v53 = vpop.permute.xlu1 %3408 }
 0x439   : > { %v3283_v63 = vpop.permute.xlu0 %3282  ;;  %v3900_v4 = vsel %vm3877_vm15, %v3867_v41, %v3409_v53 }
 0x43a   : > { %3296 = vrot.lane.b32.xlu1 %v2688_v0, %s4994_s9  ;;  %v3868_v36 = vsel %vm3844_vm14, %v3835_v21, %v3283_v63 }
 0x43b   : > { %3170 = vrot.lane.b32.xlu0 %v2657_v39, %s4993_s23 }
 0x43c   : > { %v3029_v62 = vpop.permute.xlu1 %3028 }
 0x43d   : > { %v7335_v40 = vpop.permute.xlu0 %2902  ;;  %v3804_v30 = vsel %vm1860_vm8, %v3772_v29, %v3029_v62 }
 0x43e   : > { %3298 = vrot.lane.b32.xlu1 %v2594_v58, %s4994_s9  ;;  %v3773_v33 = vsel %vm1794_vm6, %v3741_v20, %v7335_v40  ;;  %s269_s9 = sand.u32 1, %s4975_s25  }
 0x43f   : > { %3678 = vrot.lane.b32.xlu0 %v2594_v58, %s4997_s16  ;;  %s270_s13 = scalar_lea.vmem [#allocation4], %s269_s9  ;;  %s4495_s18 = scalar_lea.sflag [#allocation5], %s269_s9 }
 0x440   : > { %v3537_v60 = vpop.permute.xlu1 %3536  ;;  %s4507_s14 = sshll.u32 %s270_s13, 4  ;;  %s4508_s14 = int_to_ptr.vmem [resolvable:$true] %s4507_s14 }
 0x441   : > { %v3411_v11 = vpop.permute.xlu0 %3410  ;;  %v3933_v57 = vsel %vm3910_vm0, %v3900_v4, %v3537_v60  ;;  %s4923_s19 = scalar_lea.vmem %s4508_s14, 16  ;;  %p4930_p0 = scmp.lt.s32.totalorder %s4508_s14, %s4928_s21 }
 0x442   : > { %3426 = vrot.lane.b32.xlu1 %v2627_v34, %s4995_s22  ;;  %v3901_v22 = vsel %vm3877_vm15, %v3868_v36, %v3411_v11  ;;  %p4924_p11 = scmp.ne.s32.totalorder %s4508_s14, %s4923_s19  ;;  %p4931_p1 = scmp.lt.s32.totalorder %s4929_s20, %s4923_s19 }
 0x443   : > { %3424 = vrot.lane.b32.xlu0 %v2626_v47, %s4995_s22 }
 0x444   : > { %v3157_v19 = vpop.permute.xlu1 %3156  ;;  %p4925_p12 = pnand %p4924_p11, %p5078_p5  ;;  %p4932_p2 = por %p4931_p1, %p4930_p0 }
 0x445   : > { %v3031_v10 = vpop.permute.xlu0 %3030  ;;  %v3836_v59 = vsel %vm1926_vm9, %v3804_v30, %v3157_v19 }
 0x446   : > { %3554 = vrot.lane.b32.xlu1 %v2659_v45, %s4996_s29  ;;  %v3805_v16 = vsel %vm1860_vm8, %v3773_v33, %v3031_v10  ;;  %p4926_p13 = pneg %p4925_p12 }
 0x447   : > { %3552 = vrot.lane.b32.xlu0 %v2658_v24, %s4996_s29 }
 0x448   : > { %v3665_v17 = vpop.permute.xlu1 %3664  ;;  %p4933_p3 = pnand %p4932_p2, %p4926_p13 }
 0x449   : > { %v3966_v27 = vsel %vm3943_vm1, %v3933_v57, %v3665_v17  ;;  %v3539_v35 = vpop.permute.xlu0 %3538 }
 0x44a   : > { %3682 = vrot.lane.b32.xlu1 %v2691_v31, %s4997_s16  ;;  %4829 = vmatprep.mubr.msk.f32.mxu1 %vm3992_vm2, %v3966_v27  ;;  %v3934_v13 = vsel %vm3910_vm0, %v3901_v22, %v3539_v35 }
 0x44b   : > { %3680 = vrot.lane.b32.xlu0 %v2690_v44, %s4997_s16 }
 0x44c   : > { %v3159_v7 = vpop.permute.xlu1 %3158 }
 0x44d   : > { %v2777_v8 = vpop.permute.xlu0 %2776  ;;  %v3837_v47 = vsel %vm1926_vm9, %v3805_v16, %v3159_v7 }
 0x44e   : > { %v3742_v57 = vsel %vm1728_vm3, %v7111_v55, %v2777_v8 }
 0x450   : > { %v3667_v18 = vpop.permute.xlu1 %3666 }
 0x451   : > { %v3967_v61 = vsel %vm3943_vm1, %v3934_v13, %v3667_v18  ;;  %v3285_v50 = vpop.permute.xlu0 %3284 }
 0x452   : > { %4830 = vmatmul.mubr.msk.f32.gmra.mxu1 %vm3992_vm2, %v3967_v61  ;;  %v3869_v39 = vsel %vm3844_vm14, %v3836_v59, %v3285_v50 }
 0x454   : > { %v2905_v46 = vpop.permute.xlu1 %2904 }
 0x455   : > { %v2779_v25 = vpop.permute.xlu0 %2778  ;;  %v3774_v17 = vsel %vm1794_vm6, %v3742_v57, %v2905_v46 }
 0x456   : > { %v3743_v55 = vsel %vm1728_vm3, %v7136_v49, %v2779_v25 }
 0x458   : > { %v3413_v2 = vpop.permute.xlu1 %3412 }
 0x459   : > { %v3287_v54 = vpop.permute.xlu0 %3286  ;;  %v3902_v53 = vsel %vm3877_vm15, %v3869_v39, %v3413_v2 }
 0x45a   : > { %v3870_v6 = vsel %vm3844_vm14, %v3837_v47, %v3287_v54 }
 0x45c   : > { %v3033_v48 = vpop.permute.xlu1 %3032 }
 0x45d   : > { %v2907_v5 = vpop.permute.xlu0 %2906  ;;  %v3806_v44 = vsel %vm1860_vm8, %v3774_v17, %v3033_v48 }
 0x45e   : > { %v3775_v8 = vsel %vm1794_vm6, %v3743_v55, %v2907_v5 }
 0x460   : > { %v3541_v9 = vpop.permute.xlu1 %3540 }
 0x461   : > { %v3415_v14 = vpop.permute.xlu0 %3414  ;;  %v3935_v63 = vsel %vm3910_vm0, %v3902_v53, %v3541_v9 }
 0x462   : > { %v3903_v51 = vsel %vm3877_vm15, %v3870_v6, %v3415_v14 }
 0x464   : > { %v3161_v1 = vpop.permute.xlu1 %3160 }
 0x465   : > { %v3035_v0 = vpop.permute.xlu0 %3034  ;;  %v3838_v35 = vsel %vm1926_vm9, %v3806_v44, %v3161_v1 }
 0x466   : > { %v3807_v13 = vsel %vm1860_vm8, %v3775_v8, %v3035_v0 }
 0x468   : > { %v3669_v58 = vpop.permute.xlu1 %3668 }
 0x469   : > { %v3968_v34 = vsel %vm3943_vm1, %v3935_v63, %v3669_v58  ;;  %v3543_v60 = vpop.permute.xlu0 %3542 }
 0x46a   : > { %4832 = vmatprep.mubr.msk.f32.mxu1 %vm3992_vm2, %v3968_v34  ;;  %v3936_v45 = vsel %vm3910_vm0, %v3903_v51, %v3543_v60 }
 0x46c   : > { %v3163_v62 = vpop.permute.xlu1 %3162 }
 0x46d   : > { %v2781_v11 = vpop.permute.xlu0 %2780  ;;  %v3839_v61 = vsel %vm1926_vm9, %v3807_v13, %v3163_v62 }
 0x46e   : > { %v3744_v0 = vsel %vm1728_vm3, %v7173_v12, %v2781_v11 }
 0x470   : > { %v3671_v52 = vpop.permute.xlu1 %3670 }
 0x471   : > { %v3969_v42 = vsel %vm3943_vm1, %v3936_v45, %v3671_v52  ;;  %v3289_v32 = vpop.permute.xlu0 %3288 }
 0x472   : > { %4833 = vmatmul.mubr.msk.f32.gmra.mxu1 %vm3992_vm2, %v3969_v42  ;;  %v3871_v26 = vsel %vm3844_vm14, %v3838_v35, %v3289_v32 }
 0x474   : > { %v2909_v19 = vpop.permute.xlu1 %2908 }
 0x475   : > { %v2783_v40 = vpop.permute.xlu0 %2782  ;;  %v3776_v39 = vsel %vm1794_vm6, %v3744_v0, %v2909_v19 }
 0x476   : > { %v3745_v12 = vsel %vm1728_vm3, %v7198_v38, %v2783_v40 }
 0x478   : > { %v3417_v24 = vpop.permute.xlu1 %3416 }
 0x479   : > { %v3291_v56 = vpop.permute.xlu0 %3290  ;;  %v3904_v15 = vsel %vm3877_vm15, %v3871_v26, %v3417_v24 }
 0x47a   : > { %v3872_v46 = vsel %vm3844_vm14, %v3839_v61, %v3291_v56  ;;  %v4798_v61 = vpop.f32.mrf.mxu1 }
 0x47c   : > { %v3037_v10 = vpop.permute.xlu1 %3036 }
 0x47d   : > { %v2911_v41 = vpop.permute.xlu0 %2910  ;;  %v3808_v53 = vsel %vm1860_vm8, %v3776_v39, %v3037_v10 }
 0x47e   : > { %v3777_v11 = vsel %vm1794_vm6, %v3745_v12, %v2911_v41 }
 0x480   : > { %v3545_v4 = vpop.permute.xlu1 %3544 }
 0x481   : > { %v3419_v31 = vpop.permute.xlu0 %3418  ;;  %v3937_v7 = vsel %vm3910_vm0, %v3904_v15, %v3545_v4 }
 0x482   : > { %v3905_v2 = vsel %vm3877_vm15, %v3872_v46, %v3419_v31 }
 0x484   : > { %v3165_v27 = vpop.permute.xlu1 %3164 }
 0x485   : > { %v3039_v23 = vpop.permute.xlu0 %3038  ;;  %v3840_v58 = vsel %vm1926_vm9, %v3808_v53, %v3165_v27 }
 0x486   : > { %v3809_v51 = vsel %vm1860_vm8, %v3777_v11, %v3039_v23 }
 0x488   : > { %v3673_v21 = vpop.permute.xlu1 %3672 }
 0x489   : > { %v3970_v36 = vsel %vm3943_vm1, %v3937_v7, %v3673_v21  ;;  %v3547_v22 = vpop.permute.xlu0 %3546 }
 0x48a   : > { %4835 = vmatprep.mubr.msk.f32.mxu1 %vm3992_vm2, %v3970_v36  ;;  %v3938_v54 = vsel %vm3910_vm0, %v3905_v2, %v3547_v22  ;;  %v7463_v2 = vld [vmem:[%s7577_s4] ss:$0 sm:$0xff] }
 0x48c   : > { %v3167_v18 = vpop.permute.xlu1 %3166 }
 0x48d   : > { %v2785_v50 = vpop.permute.xlu0 %2784  ;;  %v3841_v52 = vsel %vm1926_vm9, %v3809_v51, %v3167_v18  ;;  %v4417_v18 = vld [vmem:[%s7578_s5] sm:$0xff] }
 0x48e   : > { %v3746_v4 = vsel %vm1728_vm3, %v7235_v28, %v2785_v50  ;;  %4845 = vmatpush3.msra.mxu0 %v4417_v18  ;;  %v4155_v50 = vpop.f32.mrf.mxu1 }
 0x490   : > { %v3675_v48 = vpop.permute.xlu1 %3674  ;;  %v4801_v46 = vpop.f32.mrf.mxu1 }
 0x491   : > { %v3971_v9 = vsel %vm3943_vm1, %v3938_v54, %v3675_v48  ;;  %v3293_v49 = vpop.permute.xlu0 %3292  ;;  %v4156_v48 = vadd.f32 %v7463_v2, %v4155_v50 }
 0x492   : > { %4836 = vmatmul.mubr.msk.f32.gmra.mxu1 %vm3992_vm2, %v3971_v9  ;;  %v3873_v60 = vsel %vm3844_vm14, %v3840_v58, %v3293_v49  ;;  %v4165_v54 = vpop.f32.mrf.mxu1  ;;  %v4161_v49 = vadd.f32 %v4798_v61, %v7463_v2 }
 0x494   : > { %v2913_v25 = vpop.permute.xlu1 %2912  ;;  %v4804_v9 = vpop.f32.mrf.mxu1 }
 0x495   : > { %v2787_v5 = vpop.permute.xlu0 %2786  ;;  %v3778_v57 = vsel %vm1794_vm6, %v3746_v4, %v2913_v25  ;;  %v4166_v25 = vadd.f32 %v7463_v2, %v4165_v54 }
 0x496   : > { %v3747_v41 = vsel %vm1728_vm3, %v7260_v43, %v2787_v5  ;;  %v4314_v5 = vmax.f32 %v4156_v48, 0.0 }
 0x497   : > { %v4316_v3 = vmax.f32 %v4166_v25, 0.0 }
 0x498   : > { %v3421_v14 = vpop.permute.xlu1 %3420 }
 0x499   : > { %v3295_v37 = vpop.permute.xlu0 %3294  ;;  %v3906_v20 = vsel %vm3877_vm15, %v3873_v60, %v3421_v14  ;;  %v4175_v14 = vpop.f32.mrf.mxu1  ;;  %v4349_v39 = vsel %vm1728_vm3, %v4316_v3, 0.0 }
 0x49a   : > { %v3874_v42 = vsel %vm3844_vm14, %v3841_v52, %v3295_v37  ;;  %v4315_v37 = vmax.f32 %v4161_v49, 0.0 }
 0x49c   : > { %v3041_v29 = vpop.permute.xlu1 %3040  ;;  %v4347_v0 = vsel %vm1728_vm3, %v4315_v37, 0.0 }
 0x49d   : > { %v2915_v30 = vpop.permute.xlu0 %2914  ;;  %v3810_v27 = vsel %vm1860_vm8, %v3778_v57, %v3041_v29  ;;  %v4807_v29 = vpop.f32.mrf.mxu1 }
 0x49e   : > { %v3779_v31 = vsel %vm1794_vm6, %v3747_v41, %v2915_v30  ;;  %v4346_v30 = vsel %vm1728_vm3, %v4314_v5, 0.0 }
 0x49f   : > { %v4348_v53 = vadd.f32 %v4347_v0, %v4346_v30 }
 0x4a0   : > { %v3549_v1 = vpop.permute.xlu1 %3548 }
 0x4a1   : > { %v3423_v59 = vpop.permute.xlu0 %3422  ;;  %v3939_v33 = vsel %vm3910_vm0, %v3906_v20, %v3549_v1  ;;  %v4171_v1 = vadd.f32 %v4801_v46, %v7463_v2  ;;  %v4350_v60 = vadd.f32 %v4349_v39, %v4348_v53 }
 0x4a2   : > { %v3907_v32 = vsel %vm3877_vm15, %v3874_v42, %v3423_v59  ;;  %v4176_v59 = vadd.f32 %v7463_v2, %v4175_v14  ;;  %v4191_v42 = vadd.f32 %v4807_v29, %v7463_v2 }
 0x4a3   : > { %v4317_v58 = vmax.f32 %v4171_v1, 0.0 }
 0x4a4   : > { %v3169_v63 = vpop.permute.xlu1 %3168 }
 0x4a5   : > { %v3043_v34 = vpop.permute.xlu0 %3042  ;;  %v3842_v26 = vsel %vm1926_vm9, %v3810_v27, %v3169_v63  ;;  %v4185_v63 = vpop.f32.mrf.mxu1 }
 0x4a6   : > { %v3811_v17 = vsel %vm1860_vm8, %v3779_v31, %v3043_v34  ;;  %v4318_v34 = vmax.f32 %v4176_v59, 0.0 }
 0x4a7   : > { %v4810_v20 = vpop.f32.mrf.mxu1 }
 0x4a8   : > { %v3677_v16 = vpop.permute.xlu1 %3676  ;;  %v4201_v31 = vadd.f32 %v4810_v20, %v7463_v2 }
 0x4a9   : > { %v3972_v62 = vsel %vm3943_vm1, %v3939_v33, %v3677_v16  ;;  %v3551_v47 = vpop.permute.xlu0 %3550  ;;  %v4181_v33 = vadd.f32 %v4804_v9, %v7463_v2  ;;  %v4186_v16 = vadd.f32 %v7463_v2, %v4185_v63  ;;  %v4195_v11 = vpop.f32.mrf.mxu1 }
 0x4aa   : > { %4838 = vmatprep.mubr.msk.f32.mxu1 %vm3992_vm2, %v3972_v62  ;;  %v3940_v24 = vsel %vm3910_vm0, %v3907_v32, %v3551_v47  ;;  %v4351_v62 = vsel %vm1728_vm3, %v4317_v58, 0.0  ;;  %v4353_v47 = vsel %vm1728_vm3, %v4318_v34, 0.0  ;;  %v4196_v32 = vadd.f32 %v7463_v2, %v4195_v11 }
 0x4ab   : > { %v4352_v12 = vadd.f32 %v4351_v62, %v4350_v60  ;;  %v4320_v51 = vmax.f32 %v4186_v16, 0.0  ;;  %v4813_v52 = vpop.f32.mrf.mxu1 }
 0x4ac   : > { %v3297_v6 = vpop.permute.xlu1 %3296 }
 0x4ad   : > { %v3171_v45 = vpop.permute.xlu0 %3170  ;;  %v3875_v43 = vsel %vm3844_vm14, %v3842_v26, %v3297_v6  ;;  %v4319_v6 = vmax.f32 %v4181_v33, 0.0 }
 0x4ae   : > { %v3843_v35 = vsel %vm1926_vm9, %v3811_v17, %v3171_v45  ;;  %v4354_v45 = vadd.f32 %v4353_v47, %v4352_v12 }
 0x4b0   : > { %v3299_v19 = vpop.permute.xlu1 %3298 }
 0x4b1   : > { %v3679_v56 = vpop.permute.xlu0 %3678  ;;  %v3876_v15 = vsel %vm3844_vm14, %v3843_v35, %v3299_v19  ;;  %v4355_v19 = vsel %vm1728_vm3, %v4319_v6, 0.0 }
 0x4b2   : > { %v3973_v10 = vsel %vm3943_vm1, %v3940_v24, %v3679_v56  ;;  %v4357_v24 = vsel %vm1728_vm3, %v4320_v51, 0.0  ;;  %v4356_v56 = vadd.f32 %v4355_v19, %v4354_v45 }
 0x4b3   : > { %4839 = vmatmul.mubr.msk.f32.gmra.mxu1 %vm3992_vm2, %v3973_v10  ;;  %v4205_v10 = vpop.f32.mrf.mxu1 }
 0x4b4   : > { %v3427_v38 = vpop.permute.xlu1 %3426  ;;  %v4358_v41 = vadd.f32 %v4357_v24, %v4356_v56  ;;  %v4206_v57 = vadd.f32 %v7463_v2, %v4205_v10 }
 0x4b5   : > { %v3425_v40 = vpop.permute.xlu0 %3424  ;;  %v3909_v28 = vsel %vm3877_vm15, %v3876_v15, %v3427_v38  ;;  %v4321_v38 = vmax.f32 %v4191_v42, 0.0  ;;  %v4816_v4 = vpop.f32.mrf.mxu1 }
 0x4b6   : > { %v3908_v7 = vsel %vm3877_vm15, %v3875_v43, %v3425_v40  ;;  %v4322_v40 = vmax.f32 %v4196_v32, 0.0  ;;  %v4324_v26 = vmax.f32 %v4206_v57, 0.0  ;;  %v4221_v50 = vadd.f32 %v4816_v4, %v7463_v2 }
 0x4b7   : > { %v4359_v17 = vsel %vm1728_vm3, %v4321_v38, 0.0  ;;  %v4215_v35 = vpop.f32.mrf.mxu1 }
 0x4b8   : > { %v3555_v44 = vpop.permute.xlu1 %3554  ;;  %v4360_v27 = vadd.f32 %v4359_v17, %v4358_v41  ;;  %v4327_v25 = vmax.f32 %v4221_v50, 0.0 }
 0x4b9   : > { %v3553_v23 = vpop.permute.xlu0 %3552  ;;  %v3942_v21 = vsel %vm3910_vm0, %v3909_v28, %v3555_v44  ;;  %v4361_v44 = vsel %vm1728_vm3, %v4322_v40, 0.0  ;;  %v4819_v43 = vpop.f32.mrf.mxu1  ;;  %v4211_v28 = vadd.f32 %v4813_v52, %v7463_v2 }
 0x4ba   : > { %v3941_v22 = vsel %vm3910_vm0, %v3908_v7, %v3553_v23  ;;  %v4323_v23 = vmax.f32 %v4201_v31, 0.0  ;;  %v4362_v15 = vadd.f32 %v4361_v44, %v4360_v27  ;;  %v4216_v7 = vadd.f32 %v7463_v2, %v4215_v35 }
 0x4bb   : > { %v4231_v3 = vadd.f32 %v4819_v43, %v7463_v2  ;;  %v4371_v30 = vsel %vm1728_vm3, %v4327_v25, 0.0 }
 0x4bc   : > { %v3683_v36 = vpop.permute.xlu1 %3682 }
 0x4bd   : > { %v3975_v55 = vsel %vm3943_vm1, %v3942_v21, %v3683_v36  ;;  %v3681_v8 = vpop.permute.xlu0 %3680  ;;  %v4363_v21 = vsel %vm1728_vm3, %v4323_v23, 0.0  ;;  %v4365_v36 = vsel %vm1728_vm3, %v4324_v26, 0.0  ;;  %v4329_v39 = vmax.f32 %v4231_v3, 0.0 }
 0x4be   : > { %v3974_v13 = vsel %vm3943_vm1, %v3941_v22, %v3681_v8  ;;  %v4364_v22 = vadd.f32 %v4363_v21, %v4362_v15  ;;  %v4325_v8 = vmax.f32 %v4211_v28, 0.0 }
 0x4bf   : > { %4841 = vmatprep.mubr.msk.f32.mxu1 %vm3992_vm2, %v3974_v13  ;;  %v4326_v13 = vmax.f32 %v4216_v7, 0.0  ;;  %v4375_v20 = vsel %vm1728_vm3, %v4329_v39, 0.0 }
 0x4c0   : > { %4842 = vmatmul.mubr.msk.f32.gmra.mxu1 %vm3992_vm2, %v3975_v55  ;;  %v4225_v55 = vpop.f32.mrf.mxu1  ;;  %v4366_v18 = vadd.f32 %v4365_v36, %v4364_v22  ;;  %v4367_v54 = vsel %vm1728_vm3, %v4325_v8, 0.0 }
 0x4c1   : > { %v4226_v46 = vadd.f32 %v7463_v2, %v4225_v55  ;;  %v4369_v48 = vsel %vm1728_vm3, %v4326_v13, 0.0 }
 0x4c2   : > { %v4822_v61 = vpop.f32.mrf.mxu1  ;;  %v4368_v9 = vadd.f32 %v4367_v54, %v4366_v18 }
 0x4c3   : > { %v4328_v5 = vmax.f32 %v4226_v46, 0.0  ;;  %v4241_v34 = vadd.f32 %v4822_v61, %v7463_v2 }
 0x4c4   : > { %v4235_v49 = vpop.f32.mrf.mxu1  ;;  %v4370_v14 = vadd.f32 %v4369_v48, %v4368_v9 }
 0x4c5   : > { %v4236_v29 = vadd.f32 %v7463_v2, %v4235_v49  ;;  %v4373_v1 = vsel %vm1728_vm3, %v4328_v5, 0.0  ;;  %v4331_v47 = vmax.f32 %v4241_v34, 0.0 }
 0x4c6   : > { %v4372_v59 = vadd.f32 %v4371_v30, %v4370_v14 }
 0x4c7   : > { %v4330_v53 = vmax.f32 %v4236_v29, 0.0  ;;  %v4379_v52 = vsel %vm1728_vm3, %v4331_v47, 0.0 }
 0x4c8   : > { %v4374_v63 = vadd.f32 %v4373_v1, %v4372_v59 }
 0x4c9   : > { %v4377_v33 = vsel %vm1728_vm3, %v4330_v53, 0.0 }
 0x4ca   : > { %v4376_v16 = vadd.f32 %v4375_v20, %v4374_v63 }
 0x4cc   : > { %v4378_v11 = vadd.f32 %v4377_v33, %v4376_v16 }
 0x4ce   : > { %v4380_v32 = vadd.f32 %v4379_v52, %v4378_v11 }
 0x4d2   : > { %v4825_v37 = vpop.f32.mrf.mxu1 }
 0x4d3   : > { %v4251_v51 = vadd.f32 %v4825_v37, %v7463_v2 }
 0x4d4   : > { %v4245_v0 = vpop.f32.mrf.mxu1 }
 0x4d5   : > { %v4246_v60 = vadd.f32 %v7463_v2, %v4245_v0  ;;  %v4333_v24 = vmax.f32 %v4251_v51, 0.0 }
 0x4d7   : > { %v4332_v12 = vmax.f32 %v4246_v60, 0.0  ;;  %v4383_v4 = vsel %vm1728_vm3, %v4333_v24, 0.0 }
 0x4d9   : > { %v4381_v42 = vsel %vm1728_vm3, %v4332_v12, 0.0 }
 0x4da   : > { %v4382_v10 = vadd.f32 %v4381_v42, %v4380_v32 }
 0x4dc   : > { %v4384_v57 = vadd.f32 %v4383_v4, %v4382_v10  ;;  %v4418_v10 = vld [vmem:[%s7579_s6] sm:$0x1] }
 0x4f2   : > { %v4828_v58 = vpop.f32.mrf.mxu1 }
 0x4f3   : > { %v4261_v40 = vadd.f32 %v4828_v58, %v7463_v2 }
 0x4f4   : > { %v4255_v62 = vpop.f32.mrf.mxu1 }
 0x4f5   : > { %v4256_v45 = vadd.f32 %v7463_v2, %v4255_v62  ;;  %v4335_v44 = vmax.f32 %v4261_v40, 0.0 }
 0x4f7   : > { %v4334_v56 = vmax.f32 %v4256_v45, 0.0  ;;  %v4387_v43 = vsel %vm1728_vm3, %v4335_v44, 0.0 }
 0x4f9   : > { %v4385_v31 = vsel %vm1728_vm3, %v4334_v56, 0.0 }
 0x4fa   : > { %v4386_v35 = vadd.f32 %v4385_v31, %v4384_v57 }
 0x4fc   : > { %v4388_v7 = vadd.f32 %v4387_v43, %v4386_v35 }
 0x512   : > { %v4831_v6 = vpop.f32.mrf.mxu1 }
 0x513   : > { %v4271_v26 = vadd.f32 %v4831_v6, %v7463_v2 }
 0x514   : > { %v4265_v19 = vpop.f32.mrf.mxu1 }
 0x515   : > { %v4266_v41 = vadd.f32 %v7463_v2, %v4265_v19  ;;  %v4337_v36 = vmax.f32 %v4271_v26, 0.0 }
 0x517   : > { %v4336_v27 = vmax.f32 %v4266_v41, 0.0  ;;  %v4391_v18 = vsel %vm1728_vm3, %v4337_v36, 0.0 }
 0x519   : > { %v4389_v28 = vsel %vm1728_vm3, %v4336_v27, 0.0 }
 0x51a   : > { %v4390_v55 = vadd.f32 %v4389_v28, %v4388_v7 }
 0x51c   : > { %v4392_v46 = vadd.f32 %v4391_v18, %v4390_v55 }
 0x532   : > { %v4834_v38 = vpop.f32.mrf.mxu1 }
 0x533   : > { %v4281_v8 = vadd.f32 %v4834_v38, %v7463_v2 }
 0x534   : > { %v4275_v17 = vpop.f32.mrf.mxu1 }
 0x535   : > { %v4276_v15 = vadd.f32 %v7463_v2, %v4275_v17  ;;  %v4339_v54 = vmax.f32 %v4281_v8, 0.0 }
 0x537   : > { %v4338_v22 = vmax.f32 %v4276_v15, 0.0  ;;  %v4395_v14 = vsel %vm1728_vm3, %v4339_v54, 0.0 }
 0x539   : > { %v4393_v61 = vsel %vm1728_vm3, %v4338_v22, 0.0 }
 0x53a   : > { %v4394_v49 = vadd.f32 %v4393_v61, %v4392_v46 }
 0x53c   : > { %v4396_v3 = vadd.f32 %v4395_v14, %v4394_v49 }
 0x552   : > { %v4837_v23 = vpop.f32.mrf.mxu1 }
 0x553   : > { %v4291_v25 = vadd.f32 %v4837_v23, %v7463_v2 }
 0x554   : > { %v4285_v21 = vpop.f32.mrf.mxu1 }
 0x555   : > { %v4286_v13 = vadd.f32 %v7463_v2, %v4285_v21  ;;  %v4341_v29 = vmax.f32 %v4291_v25, 0.0 }
 0x557   : > { %v4340_v48 = vmax.f32 %v4286_v13, 0.0  ;;  %v4399_v0 = vsel %vm1728_vm3, %v4341_v29, 0.0 }
 0x559   : > { %v4397_v37 = vsel %vm1728_vm3, %v4340_v48, 0.0 }
 0x55a   : > { %v4398_v1 = vadd.f32 %v4397_v37, %v4396_v3 }
 0x55c   : > { %v4400_v53 = vadd.f32 %v4399_v0, %v4398_v1 }
 0x573   : > { %v4840_v50 = vpop.f32.mrf.mxu1 }
 0x574   : > { %v4301_v59 = vadd.f32 %v4840_v50, %v7463_v2 }
 0x575   : > { %v4295_v9 = vpop.f32.mrf.mxu1 }
 0x576   : > { %v4296_v5 = vadd.f32 %v7463_v2, %v4295_v9  ;;  %v4343_v58 = vmax.f32 %v4301_v59, 0.0 }
 0x578   : > { %v4342_v30 = vmax.f32 %v4296_v5, 0.0  ;;  %v4403_v16 = vsel %vm1728_vm3, %v4343_v58, 0.0 }
 0x57a   : > { %v4401_v39 = vsel %vm1728_vm3, %v4342_v30, 0.0 }
 0x57b   : > { %v4402_v60 = vadd.f32 %v4401_v39, %v4400_v53 }
 0x57d   : > { %v4404_v12 = vadd.f32 %v4403_v16, %v4402_v60 }
 0x580   : > { %v4843_v63 = vpop.f32.mrf.mxu1 }
 0x581   : > { %v4311_v34 = vadd.f32 %v4843_v63, %v7463_v2 }
 0x582   : > { %v4305_v20 = vpop.f32.mrf.mxu1 }
 0x583   : > { %v4306_v33 = vadd.f32 %v7463_v2, %v4305_v20  ;;  %v4345_v62 = vmax.f32 %v4311_v34, 0.0 }
 0x585   : > { %v4344_v47 = vmax.f32 %v4306_v33, 0.0  ;;  %v4407_v51 = vsel %vm1728_vm3, %v4345_v62, 0.0 }
 0x587   : > { %v4405_v11 = vsel %vm1728_vm3, %v4344_v47, 0.0 }
 0x588   : > { %v4406_v6 = vadd.f32 %v4405_v11, %v4404_v12 }
 0x58a   : > { %v4408_v45 = vadd.f32 %v4407_v51, %v4406_v6 }
 0x58c   : > { %v4409_v52 = vrot.slane %v4408_v45, 4 }
 0x58e   : > { %v4410_v42 = vadd.f32 %v4409_v52, %v4408_v45 }
 0x590   : > { %v4411_v32 = vrot.slane %v4410_v42, 2 }
 0x592   : > { %v4412_v19 = vadd.f32 %v4411_v32, %v4410_v42 }
 0x594   : > { %v4413_v24 = vrot.slane %v4412_v19, 1 }
 0x596   : > { %v4414_v56 = vadd.f32 %v4413_v24, %v4412_v19 }
 0x598   : > { %v4416_v2 = vmul.f32 0.00390625, %v4414_v56 }
 0x59a   : > { %4847 = vmatmul.mubr.msk.f32.vlgmr.msra.gmra.mxu0 %vm1728_vm3, %v4416_v2 }
 0x65a   : > { %v4488_v38 = vpop.f32.mrf.mxu0 }
 0x65b   : > { %v4489_v40 = vadd.f32 %v4488_v38, %v4418_v10 }
 0x65c   : > { %v4848_v41 = vpop.f32.mrf.mxu0 }
 0x65d   : > { %4493 = vst.msk [vmem:[%s270_s13] sm:$0x1] %vm4492_vm5, %v4489_v40 }
 0x65e   : > { %4936 = shalt.err (!%p4933_p3)
}
 0x65f   : > { %s4937_s23 = scalar_lea.hbm %s7538_s17, 16  ;;  %s4941_s29 = scalar_lea.hbm %s7580_s7, 32 }
 0x660   : > { %p4938_p4 = scmp.ne.s32.totalorder %s7538_s17, %s4937_s23  ;;  %p4942_p9 = scmp.lt.s32.totalorder %s7538_s17, %s7580_s7 }
 0x661   : > { %p4943_p10 = scmp.lt.s32.totalorder %s4941_s29, %s4937_s23 }
 0x662   : > { %p4939_p7 = pnand %p4938_p4, %p5078_p5 }
 0x663   : > { %p4944_p11 = por %p4943_p10, %p4942_p9 }
 0x664   : > { %p4940_p8 = pneg %p4939_p7 }
 0x666   : > { %p4945_p12 = pnand %p4944_p11, %p4940_p8 }
 0x668   : > { %4948 = shalt.err (!%p4945_p12)
}
 0x669   : > { %4849 = dma.vmem_to_hbm [thread:$0]  (%p5078_p5), %s4508_s14, 16, %s7538_s17, %s4495_s18  }
 0x66a PF: > { %p4855_p13 = scmp.ge.s32.totalorder %s4983_s27, 2  ;;  %s4519_s15 = sand.u32 1, %s4971_s24  }
 0x66b   : > { %s4520_s16 = scalar_lea.sflag [#allocation5], %s4519_s15 }
 0x66c   : > { %p4852_p0 = pnand %p4855_p13, %p5082_p6 }
 0x66e   : > { %p4853_p1 = pneg %p4852_p0 }
 0x670   : > { %4966 = dma.done.wait (%p4853_p1), %s4520_s16, 16  }
 0x671   : > { %4968 = vsyncadd (%p4853_p1), %s4520_s16, 4294967280  ;;  %p17_p2 = scmp.ge.s32.totalorder %s5065_s30, 4   ;;  %s7738_s24 = smov %s4975_s25 }
 0x672   : > { %s7739_s25 = smov %s4979_s26  ;;  %s7740_s26 = smov %s5076_s10 }
 0x673   : > { %s7741_s27 = smov %s5065_s30  ;;  %19 = sbr.rel (!%p17_p2) target bundleno = 3 (0x3), region = 89 }
 0x678   :  { %4524 = vsyncpa [#allocation5], 1 }
 0x679   :  { %4526 = vsyncpa [#allocation5 + $0x1], 1 }

</bundles_post_ra>
